<compile_context>
chip_gen: v6e
topology: v6e:2x2x1
jax: 0.10.0
libtpu: 0.0.40
codegen_flags: <defaults>
</compile_context>

<pallas_src>
import functools
import math

import jax
import jax.numpy as jnp
from jax.experimental import pallas as pl
from jax.experimental.pallas import tpu as pltpu

EPS_RMS = 1e-8
NEG_INF = -1e30  # finite "minus infinity" for the running-max init (avoids NaN)


@functools.lru_cache(maxsize=None)
def _vmem_limit(frac=0.8, fallback_bytes=64 * 1024 * 1024):
    """Generation-aware VMEM budget with headroom (v5e/v6e 128MiB, v7x 64MiB)."""
    try:
        info = pltpu.get_tpu_info()
        cap = int(getattr(info, "vmem_capacity_bytes", 0)) or fallback_bytes
    except Exception:  # pragma: no cover - defensive fallback
        cap = fallback_bytes
    return int(cap * frac)


def _pick_tile(n, cap, multiple):
    """Largest tile <= cap that divides n and is a multiple of `multiple`,
    otherwise the full dimension (always legal per the (8,128) rule)."""
    if n <= cap:
        return n
    t = cap - (cap % multiple)
    while t >= multiple:
        if n % t == 0:
            return t
        t -= multiple
    return n


def _rms_norm(x, scale):
    # x: (rows, E) f32, scale: (1, E) f32 — statistics kept in f32.
    ms = jnp.mean(x * x, axis=-1, keepdims=True)
    return x * jax.lax.rsqrt(ms + EPS_RMS) * scale


# ---------------- fused RMSNorm + MHA (flash-style) + residual ----------------
def _flash_attn_kernel(n_head, head_dim, pre_lnorm, norm_kv, has_mask, *refs):
    q_scr, m_scr, l_scr, acc_scr = refs[-4:]
    o_ref = refs[-5]
    x_ref, kv_ref = refs[0], refs[1]
    if has_mask:
        mask_ref = refs[2]
        w = refs[3:-5]
    else:
        mask_ref = None
        w = refs[2:-5]
    scale_ref, wq_ref, bq_ref, wkv_ref, bkv_ref, wo_ref, bo_ref = w

    E = n_head * head_dim
    k_idx = pl.program_id(2)
    last_k = pl.num_programs(2) - 1
    sm_scale = 1.0 / math.sqrt(head_dim)

    # --- once per (batch, q-tile): normalize + project Q, reset accumulators --
    @pl.when(k_idx == 0)
    def _init():
        x = x_ref[...].astype(jnp.float32)                       # (tq, E)
        scale = scale_ref[...].astype(jnp.float32)
        q_in = _rms_norm(x, scale) if pre_lnorm else x
        q = jnp.dot(q_in.astype(jnp.bfloat16), wq_ref[...],
                    preferred_element_type=jnp.float32) + bq_ref[...]
        q = q * sm_scale
        qh = jnp.stack([q[:, h * head_dim:(h + 1) * head_dim]
                        for h in range(n_head)], axis=0)          # (H, tq, hd)
        q_scr[...] = qh.astype(q_scr.dtype)
        m_scr[...] = jnp.full_like(m_scr, NEG_INF)
        l_scr[...] = jnp.zeros_like(l_scr)
        acc_scr[...] = jnp.zeros_like(acc_scr)

    # --- every step: project this KV chunk with one fused (E,2E) matmul -------
    scale = scale_ref[...].astype(jnp.float32)
    kv = kv_ref[...].astype(jnp.float32)                          # (tk, E)
    kv_in = _rms_norm(kv, scale) if (pre_lnorm and norm_kv) else kv
    kvp = jnp.dot(kv_in.astype(jnp.bfloat16), wkv_ref[...],
                  preferred_element_type=jnp.float32) + bkv_ref[...]   # (tk, 2E)
    kp = kvp[:, :E]
    vp = kvp[:, E:]
    kh = jnp.stack([kp[:, h * head_dim:(h + 1) * head_dim]
                    for h in range(n_head)], axis=0)              # (H, tk, hd)
    vh = jnp.stack([vp[:, h * head_dim:(h + 1) * head_dim]
                    for h in range(n_head)], axis=0)              # (H, tk, hd)

    s = jnp.einsum("hqd,hkd->hqk", q_scr[...], kh.astype(jnp.bfloat16),
                   preferred_element_type=jnp.float32)            # (H, tq, tk)
    if has_mask:
        s = s + mask_ref[...].astype(jnp.float32)                 # additive mask

    # --- online softmax update ------------------------------------------------
    m_prev = m_scr[...]
    m_new = jnp.maximum(m_prev, jnp.max(s, axis=-1, keepdims=True))
    alpha = jnp.exp(m_prev - m_new)
    p = jnp.exp(s - m_new)
    l_scr[...] = alpha * l_scr[...] + jnp.sum(p, axis=-1, keepdims=True)
    acc_scr[...] = alpha * acc_scr[...] + jnp.einsum(
        "hqk,hkd->hqd", p.astype(jnp.bfloat16), vh.astype(jnp.bfloat16),
        preferred_element_type=jnp.float32)
    m_scr[...] = m_new

    # --- once per (batch, q-tile): output projection + residual ---------------
    @pl.when(k_idx == last_k)
    def _finalize():
        ctx = acc_scr[...] / l_scr[...]                           # exact softmax
        ctx2 = jnp.concatenate([ctx[h] for h in range(n_head)], axis=-1)  # (tq,E)
        attn = jnp.dot(ctx2.astype(jnp.bfloat16), wo_ref[...],
                       preferred_element_type=jnp.float32) + bo_ref[...]
        x = x_ref[...].astype(jnp.float32)
        y = x + attn
        if not pre_lnorm:
            y = _rms_norm(y, scale_ref[...].astype(jnp.float32))
        o_ref[...] = y.astype(o_ref.dtype)


def fused_mha(x, kv, attn_p, norm_scale, *, n_head, mask=None,
              pre_lnorm=True, norm_kv=False, tq_cap=256, tk_cap=512):
    # x: (B, Lq, E) residual / query input, kv: (B, Lk, E)
    B, Lq, E = x.shape
    Lk = kv.shape[1]
    head_dim = E // n_head
    tq = _pick_tile(Lq, tq_cap, 8)
    tk = _pick_tile(Lk, tk_cap, 128)
    grid = (B, Lq // tq, Lk // tk)

    kernel = functools.partial(_flash_attn_kernel, n_head, head_dim,
                               pre_lnorm, norm_kv, mask is not None)

    def rep(arr):  # replicated, full-extent block (constant block index)
        return pl.BlockSpec(arr.shape, lambda b, q, k, _n=arr.ndim: (0,) * _n)

    inputs = [x, kv]
    in_specs = [
        pl.BlockSpec((None, tq, E), lambda b, q, k: (b, q, 0)),   # residual / q tile
        pl.BlockSpec((None, tk, E), lambda b, q, k: (b, k, 0)),   # kv chunk
    ]
    if mask is not None:
        inputs.append(mask)
        in_specs.append(pl.BlockSpec((tq, tk), lambda b, q, k: (q, k)))

    weights = [norm_scale, attn_p["wq"], attn_p["bq"], attn_p["wkv"],
               attn_p["bkv"], attn_p["wo"], attn_p["bo"]]
    inputs += weights
    in_specs += [rep(w) for w in weights]

    return pl.pallas_call(
        kernel,
        out_shape=jax.ShapeDtypeStruct((B, Lq, E), x.dtype),
        grid=grid,
        in_specs=in_specs,
        out_specs=pl.BlockSpec((None, tq, E), lambda b, q, k: (b, q, 0)),
        scratch_shapes=[
            pltpu.VMEM((n_head, tq, head_dim), jnp.bfloat16),   # pre-scaled Q
            pltpu.VMEM((n_head, tq, 1), jnp.float32),           # running max
            pltpu.VMEM((n_head, tq, 1), jnp.float32),           # running sum
            pltpu.VMEM((n_head, tq, head_dim), jnp.float32),    # context acc
        ],
        compiler_params=pltpu.CompilerParams(
            dimension_semantics=("parallel", "parallel", "arbitrary"),
            vmem_limit_bytes=_vmem_limit()),
    )(*inputs)


# ---------------- fused RMSNorm + GLU-FFN (F-tiled) + residual ----------------
def _glu_ffn_kernel(pre_lnorm, x_ref, scale_ref, w1_ref, b1_ref, w2_ref,
                    b2_ref, w3_ref, b3_ref, o_ref, xn_scr, acc_scr):
    f_idx = pl.program_id(1)

    @pl.when(f_idx == 0)
    def _init():
        x = x_ref[...].astype(jnp.float32)                      # (tr, E)
        scale = scale_ref[...].astype(jnp.float32)
        xin = _rms_norm(x, scale) if pre_lnorm else x
        xn_scr[...] = xin.astype(xn_scr.dtype)
        acc_scr[...] = jnp.zeros_like(acc_scr)

    xn = xn_scr[...]                                             # (tr, E) bf16
    h1 = jnp.dot(xn, w1_ref[...], preferred_element_type=jnp.float32) + b1_ref[...]
    h2 = jnp.dot(xn, w2_ref[...], preferred_element_type=jnp.float32) + b2_ref[...]
    h = h1 * jax.nn.sigmoid(h2)                                  # (tr, tF) GLU
    acc_scr[...] += jnp.dot(h.astype(jnp.bfloat16), w3_ref[...],
                            preferred_element_type=jnp.float32)

    @pl.when(f_idx == pl.num_programs(1) - 1)
    def _finalize():
        x = x_ref[...].astype(jnp.float32)
        y = x + acc_scr[...] + b3_ref[...]
        if not pre_lnorm:
            y = _rms_norm(y, scale_ref[...].astype(jnp.float32))
        o_ref[...] = y.astype(o_ref.dtype)


def fused_ffn(x, pff_p, norm_scale, *, pre_lnorm=True, tr_cap=512, tf_cap=512):
    # x: (B, T, E) -> flattened row grid, reduction grid axis over F chunks.
    B, T, E = x.shape
    F = pff_p["w1"].shape[1]
    n = B * T
    x2d = x.reshape(n, E)
    tr = _pick_tile(n, tr_cap, 8)
    tf = _pick_tile(F, tf_cap, 128)
    grid = (n // tr, F // tf)

    kernel = functools.partial(_glu_ffn_kernel, pre_lnorm)

    def rep(arr):
        return pl.BlockSpec(arr.shape, lambda i, f, _n=arr.ndim: (0,) * _n)

    out = pl.pallas_call(
        kernel,
        out_shape=jax.ShapeDtypeStruct((n, E), x.dtype),
        grid=grid,
        in_specs=[
            pl.BlockSpec((tr, E), lambda i, f: (i, 0)),          # input rows
            rep(norm_scale),
            pl.BlockSpec((E, tf), lambda i, f: (0, f)),          # w1 chunk
            pl.BlockSpec((1, tf), lambda i, f: (0, f)),          # b1 chunk
            pl.BlockSpec((E, tf), lambda i, f: (0, f)),          # w2 chunk
            pl.BlockSpec((1, tf), lambda i, f: (0, f)),          # b2 chunk
            pl.BlockSpec((tf, E), lambda i, f: (f, 0)),          # w3 chunk
            rep(pff_p["b3"]),
        ],
        out_specs=pl.BlockSpec((tr, E), lambda i, f: (i, 0)),
        scratch_shapes=[
            pltpu.VMEM((tr, E), jnp.bfloat16),   # normalized input rows (cached)
            pltpu.VMEM((tr, E), jnp.float32),    # FFN-output accumulator
        ],
        compiler_params=pltpu.CompilerParams(
            dimension_semantics=("parallel", "arbitrary"),
            vmem_limit_bytes=_vmem_limit()),
    )(x2d, norm_scale, pff_p["w1"], pff_p["b1"], pff_p["w2"], pff_p["b2"],
      pff_p["w3"], pff_p["b3"])
    return out.reshape(B, T, E)


# ------------------------------- DecoderLayer --------------------------------
def decoder_layer(enc_out, trg, trg_mask, params, n_head, pre_lnorm=True):
    # enc_out: (S, B, E), trg: (T, B, E), trg_mask: (T, T) additive float mask.
    # One layout change to batch-major at layer entry/exit; intermediate
    # activations stay (B, L, E) and flow kernel -> kernel without copies.
    x = jnp.transpose(trg, (1, 0, 2))        # (B, T, E)
    enc = jnp.transpose(enc_out, (1, 0, 2))  # (B, S, E)

    # self-attention: q = k = v = norm(trg) (pre-lnorm), additive causal mask
    x = fused_mha(x, x, params["self_attn"], params["self_attn_norm"],
                  n_head=n_head, mask=trg_mask, pre_lnorm=pre_lnorm,
                  norm_kv=True)
    # encoder-decoder attention: q = norm(trg), k = v = enc_out (no mask)
    x = fused_mha(x, enc, params["ed_self_attn"], params["ed_self_attn_norm"],
                  n_head=n_head, mask=None, pre_lnorm=pre_lnorm, norm_kv=False)
    # cross attention: same structure
    x = fused_mha(x, enc, params["cross_attn"], params["cross_attn_norm"],
                  n_head=n_head, mask=None, pre_lnorm=pre_lnorm, norm_kv=False)
    # positionwise GLU feed-forward
    x = fused_ffn(x, params["pff"], params["pff_norm"], pre_lnorm=pre_lnorm)

    return jnp.transpose(x, (1, 0, 2))       # back to (T, B, E)


# ----------------------------- parameter setup --------------------------------
def init_params(key, hidden_size, filter_size, n_head):
    E, F = hidden_size, filter_size
    ks = iter(jax.random.split(key, 16))

    def lin_w(in_dim, out_dim):
        return jax.random.normal(next(ks), (in_dim, out_dim), jnp.float32) * 0.05

    def attn_params():
        wq, wk, wv, wo = lin_w(E, E), lin_w(E, E), lin_w(E, E), lin_w(E, E)
        return dict(
            wq=wq.astype(jnp.bfloat16),                                   # (E, E)
            wkv=jnp.concatenate([wk, wv], axis=1).astype(jnp.bfloat16),   # (E, 2E)
            wo=wo.astype(jnp.bfloat16),                                   # (E, E)
            bq=jnp.zeros((1, E), jnp.float32),
            bkv=jnp.zeros((1, 2 * E), jnp.float32),
            bo=jnp.zeros((1, E), jnp.float32),
        )

    pff = dict(
        w1=lin_w(E, F).astype(jnp.bfloat16),   # (E, F)
        b1=jnp.zeros((1, F), jnp.float32),
        w2=lin_w(E, F).astype(jnp.bfloat16),   # (E, F)
        b2=jnp.zeros((1, F), jnp.float32),
        w3=lin_w(F, E).astype(jnp.bfloat16),   # (F, E)
        b3=jnp.zeros((1, E), jnp.float32),
    )

    return dict(
        self_attn=attn_params(),
        ed_self_attn=attn_params(),
        cross_attn=attn_params(),
        pff=pff,
        self_attn_norm=jnp.ones((1, E), jnp.float32),
        ed_self_attn_norm=jnp.ones((1, E), jnp.float32),
        cross_attn_norm=jnp.ones((1, E), jnp.float32),
        pff_norm=jnp.ones((1, E), jnp.float32),
    )


if __name__ == "__main__":
    # Lane-friendly small demo shapes: E multiple of 128, head_dim = 64.
    hidden_size, filter_size, n_head = 256, 512, 4
    T, S, B = 16, 32, 2

    key = jax.random.PRNGKey(0)
    k_p, k_trg, k_enc = jax.random.split(key, 3)

    params = init_params(k_p, hidden_size, filter_size, n_head)
    trg = jax.random.normal(k_trg, (T, B, hidden_size), jnp.float32)
    enc_out = jax.random.normal(k_enc, (S, B, hidden_size), jnp.float32)

    # causal additive mask (same convention as PyTorch float attn_mask)
    causal = jnp.triu(jnp.ones((T, T), bool), k=1)
    trg_mask = jnp.where(causal, -jnp.inf, 0.0).astype(jnp.float32)

    fwd = jax.jit(functools.partial(decoder_layer, n_head=n_head, pre_lnorm=True))
    out = fwd(enc_out, trg, trg_mask, params)
    out = jax.block_until_ready(out)

    assert out.shape == (T, B, hidden_size)
    assert bool(jnp.all(jnp.isfinite(out)))
    print("KERNEL_OK")
</pallas_src>

<mosaic_0001>
module attributes {stable_mosaic.version = 11 : i64} {
  func.func @_flash_attn_kernel(%arg0: i32, %arg1: i32, %arg2: i32, %arg3: memref<1x16x256xf32, #tpu.memory_space<vmem>>, %arg4: memref<1x16x256xf32, #tpu.memory_space<vmem>>, %arg5: memref<16x16xf32, #tpu.memory_space<vmem>>, %arg6: memref<1x256xf32, #tpu.memory_space<vmem>>, %arg7: memref<256x256xbf16, #tpu.memory_space<vmem>>, %arg8: memref<1x256xf32, #tpu.memory_space<vmem>>, %arg9: memref<256x512xbf16, #tpu.memory_space<vmem>>, %arg10: memref<1x512xf32, #tpu.memory_space<vmem>>, %arg11: memref<256x256xbf16, #tpu.memory_space<vmem>>, %arg12: memref<1x256xf32, #tpu.memory_space<vmem>>, %arg13: memref<1x16x256xf32, #tpu.memory_space<vmem>>, %arg14: memref<4x16x64xbf16, #tpu.memory_space<vmem>>, %arg15: memref<4x16x1xf32, #tpu.memory_space<vmem>>, %arg16: memref<4x16x1xf32, #tpu.memory_space<vmem>>, %arg17: memref<4x16x64xf32, #tpu.memory_space<vmem>>) attributes {dimension_semantics = [#tpu.dimension_semantics<parallel>, #tpu.dimension_semantics<parallel>, #tpu.dimension_semantics<arbitrary>], iteration_bounds = array<i64: 2, 1, 1>, scalar_prefetch = 0 : i64, scratch_operands = 4 : i64, tpu.core_type = #tpu.core_type<tc>, window_params = [{transform_indices = @transform_0, window_bounds = array<i64: 1, 16, 256>}, {transform_indices = @transform_1, window_bounds = array<i64: 1, 16, 256>}, {transform_indices = @transform_2, window_bounds = array<i64: 16, 16>}, {pipeline_mode = #tpu.pipeline_mode<synchronous>, transform_indices = @transform_3, window_bounds = array<i64: 1, 256>}, {pipeline_mode = #tpu.pipeline_mode<synchronous>, transform_indices = @transform_4, window_bounds = array<i64: 256, 256>}, {pipeline_mode = #tpu.pipeline_mode<synchronous>, transform_indices = @transform_5, window_bounds = array<i64: 1, 256>}, {pipeline_mode = #tpu.pipeline_mode<synchronous>, transform_indices = @transform_6, window_bounds = array<i64: 256, 512>}, {pipeline_mode = #tpu.pipeline_mode<synchronous>, transform_indices = @transform_7, window_bounds = array<i64: 1, 512>}, {pipeline_mode = #tpu.pipeline_mode<synchronous>, transform_indices = @transform_8, window_bounds = array<i64: 256, 256>}, {pipeline_mode = #tpu.pipeline_mode<synchronous>, transform_indices = @transform_9, window_bounds = array<i64: 1, 256>}, {transform_indices = @transform_10, window_bounds = array<i64: 1, 16, 256>}]} {
    %c0_i32 = arith.constant 0 : i32
    %0 = arith.cmpi eq, %arg2, %c0_i32 : i32
    %1 = arith.extui %0 : i1 to i32
    %c0_i32_0 = arith.constant 0 : i32
    %2 = arith.cmpi ne, %1, %c0_i32_0 : i32
    scf.if %2 {
      %c0_41 = arith.constant 0 : index
      %c0_42 = arith.constant 0 : index
      %c0_43 = arith.constant 0 : index
      %78 = vector.load %arg3[%c0_41, %c0_42, %c0_43] : memref<1x16x256xf32, #tpu.memory_space<vmem>>, vector<1x16x256xf32>
      %79 = vector.shape_cast %78 : vector<1x16x256xf32> to vector<16x256xf32>
      %c0_44 = arith.constant 0 : index
      %c0_45 = arith.constant 0 : index
      %80 = vector.load %arg6[%c0_44, %c0_45] : memref<1x256xf32, #tpu.memory_space<vmem>>, vector<1x256xf32>
      %81 = arith.mulf %79, %79 : vector<16x256xf32>
      %cst_46 = arith.constant dense<0.000000e+00> : vector<16xf32>
      %82 = vector.multi_reduction <add>, %81, %cst_46 [1] : vector<16x256xf32> to vector<16xf32>
      %83 = vector.shape_cast %82 : vector<16xf32> to vector<16x1xf32>
      %cst_47 = arith.constant 2.560000e+02 : f32
      %84 = vector.broadcast %cst_47 : f32 to vector<16x1xf32>
      %85 = arith.divf %83, %84 : vector<16x1xf32>
      %cst_48 = arith.constant 9.99999993E-9 : f32
      %86 = vector.broadcast %cst_48 : f32 to vector<16x1xf32>
      %87 = arith.addf %85, %86 : vector<16x1xf32>
      %88 = math.rsqrt %87 : vector<16x1xf32>
      %89 = vector.broadcast %88 : vector<16x1xf32> to vector<16x256xf32>
      %90 = arith.mulf %79, %89 : vector<16x256xf32>
      %91 = vector.broadcast %80 : vector<1x256xf32> to vector<16x256xf32>
      %92 = arith.mulf %90, %91 : vector<16x256xf32>
      %93 = arith.truncf %92 : vector<16x256xf32> to vector<16x256xbf16>
      %c0_49 = arith.constant 0 : index
      %c0_50 = arith.constant 0 : index
      %94 = vector.load %arg7[%c0_49, %c0_50] : memref<256x256xbf16, #tpu.memory_space<vmem>>, vector<256x256xbf16>
      %cst_51 = arith.constant dense<0.000000e+00> : vector<16x256xf32>
      %95 = tpu.matmul %93, %94, %cst_51 {dimension_numbers = #tpu.dot_dimension_numbers<[1], [0], [0], [1], [0, 0, 1, 1], [], []>} : vector<16x256xbf16>, vector<256x256xbf16>, vector<16x256xf32> -> vector<16x256xf32>
      %c0_52 = arith.constant 0 : index
      %c0_53 = arith.constant 0 : index
      %96 = vector.load %arg8[%c0_52, %c0_53] : memref<1x256xf32, #tpu.memory_space<vmem>>, vector<1x256xf32>
      %97 = vector.broadcast %96 : vector<1x256xf32> to vector<16x256xf32>
      %98 = arith.addf %95, %97 : vector<16x256xf32>
      %cst_54 = arith.constant 1.250000e-01 : f32
      %99 = vector.broadcast %cst_54 : f32 to vector<16x256xf32>
      %100 = arith.mulf %98, %99 : vector<16x256xf32>
      %101 = vector.extract_strided_slice %100 {offsets = [0, 0], sizes = [16, 64], strides = [1, 1]} : vector<16x256xf32> to vector<16x64xf32>
      %102 = vector.extract_strided_slice %100 {offsets = [0, 64], sizes = [16, 64], strides = [1, 1]} : vector<16x256xf32> to vector<16x64xf32>
      %103 = vector.extract_strided_slice %100 {offsets = [0, 128], sizes = [16, 64], strides = [1, 1]} : vector<16x256xf32> to vector<16x64xf32>
      %104 = vector.extract_strided_slice %100 {offsets = [0, 192], sizes = [16, 64], strides = [1, 1]} : vector<16x256xf32> to vector<16x64xf32>
      %105 = vector.shape_cast %101 : vector<16x64xf32> to vector<1x16x64xf32>
      %106 = vector.shape_cast %102 : vector<16x64xf32> to vector<1x16x64xf32>
      %107 = vector.shape_cast %103 : vector<16x64xf32> to vector<1x16x64xf32>
      %108 = vector.shape_cast %104 : vector<16x64xf32> to vector<1x16x64xf32>
      %109 = tpu.concatenate %105, %106, %107, %108 in 0 : vector<1x16x64xf32>, vector<1x16x64xf32>, vector<1x16x64xf32>, vector<1x16x64xf32> -> vector<4x16x64xf32>
      %110 = arith.truncf %109 : vector<4x16x64xf32> to vector<4x16x64xbf16>
      %c0_55 = arith.constant 0 : index
      %c0_56 = arith.constant 0 : index
      %c0_57 = arith.constant 0 : index
      %111 = vector.load %arg14[%c0_55, %c0_56, %c0_57] : memref<4x16x64xbf16, #tpu.memory_space<vmem>>, vector<4x16x64xbf16>
      tpu.vector_store %arg14[%c0_55, %c0_56, %c0_57], %110 {strides = array<i32>} : memref<4x16x64xbf16, #tpu.memory_space<vmem>>, vector<4x16x64xbf16>,
      %cst_58 = arith.constant -1.000000e+30 : f32
      %112 = vector.broadcast %cst_58 : f32 to vector<4x16x1xf32>
      %c0_59 = arith.constant 0 : index
      %c0_60 = arith.constant 0 : index
      %c0_61 = arith.constant 0 : index
      %113 = vector.load %arg15[%c0_59, %c0_60, %c0_61] : memref<4x16x1xf32, #tpu.memory_space<vmem>>, vector<4x16x1xf32>
      tpu.vector_store %arg15[%c0_59, %c0_60, %c0_61], %112 {strides = array<i32>} : memref<4x16x1xf32, #tpu.memory_space<vmem>>, vector<4x16x1xf32>,
      %cst_62 = arith.constant 0.000000e+00 : f32
      %114 = vector.broadcast %cst_62 : f32 to vector<4x16x1xf32>
      %c0_63 = arith.constant 0 : index
      %c0_64 = arith.constant 0 : index
      %c0_65 = arith.constant 0 : index
      %115 = vector.load %arg16[%c0_63, %c0_64, %c0_65] : memref<4x16x1xf32, #tpu.memory_space<vmem>>, vector<4x16x1xf32>
      tpu.vector_store %arg16[%c0_63, %c0_64, %c0_65], %114 {strides = array<i32>} : memref<4x16x1xf32, #tpu.memory_space<vmem>>, vector<4x16x1xf32>,
      %cst_66 = arith.constant 0.000000e+00 : f32
      %116 = vector.broadcast %cst_66 : f32 to vector<4x16x64xf32>
      %c0_67 = arith.constant 0 : index
      %c0_68 = arith.constant 0 : index
      %c0_69 = arith.constant 0 : index
      %117 = vector.load %arg17[%c0_67, %c0_68, %c0_69] : memref<4x16x64xf32, #tpu.memory_space<vmem>>, vector<4x16x64xf32>
      tpu.vector_store %arg17[%c0_67, %c0_68, %c0_69], %116 {strides = array<i32>} : memref<4x16x64xf32, #tpu.memory_space<vmem>>, vector<4x16x64xf32>,
    } else {
    }
    %c0 = arith.constant 0 : index
    %c0_1 = arith.constant 0 : index
    %3 = vector.load %arg6[%c0, %c0_1] : memref<1x256xf32, #tpu.memory_space<vmem>>, vector<1x256xf32>
    %c0_2 = arith.constant 0 : index
    %c0_3 = arith.constant 0 : index
    %c0_4 = arith.constant 0 : index
    %4 = vector.load %arg4[%c0_2, %c0_3, %c0_4] : memref<1x16x256xf32, #tpu.memory_space<vmem>>, vector<1x16x256xf32>
    %5 = vector.shape_cast %4 : vector<1x16x256xf32> to vector<16x256xf32>
    %6 = arith.mulf %5, %5 : vector<16x256xf32>
    %cst = arith.constant dense<0.000000e+00> : vector<16xf32>
    %7 = vector.multi_reduction <add>, %6, %cst [1] : vector<16x256xf32> to vector<16xf32>
    %8 = vector.shape_cast %7 : vector<16xf32> to vector<16x1xf32>
    %cst_5 = arith.constant 2.560000e+02 : f32
    %9 = vector.broadcast %cst_5 : f32 to vector<16x1xf32>
    %10 = arith.divf %8, %9 : vector<16x1xf32>
    %cst_6 = arith.constant 9.99999993E-9 : f32
    %11 = vector.broadcast %cst_6 : f32 to vector<16x1xf32>
    %12 = arith.addf %10, %11 : vector<16x1xf32>
    %13 = math.rsqrt %12 : vector<16x1xf32>
    %14 = vector.broadcast %13 : vector<16x1xf32> to vector<16x256xf32>
    %15 = arith.mulf %5, %14 : vector<16x256xf32>
    %16 = vector.broadcast %3 : vector<1x256xf32> to vector<16x256xf32>
    %17 = arith.mulf %15, %16 : vector<16x256xf32>
    %18 = arith.truncf %17 : vector<16x256xf32> to vector<16x256xbf16>
    %c0_7 = arith.constant 0 : index
    %c0_8 = arith.constant 0 : index
    %19 = vector.load %arg9[%c0_7, %c0_8] : memref<256x512xbf16, #tpu.memory_space<vmem>>, vector<256x512xbf16>
    %cst_9 = arith.constant dense<0.000000e+00> : vector<16x512xf32>
    %20 = tpu.matmul %18, %19, %cst_9 {dimension_numbers = #tpu.dot_dimension_numbers<[1], [0], [0], [1], [0, 0, 1, 1], [], []>} : vector<16x256xbf16>, vector<256x512xbf16>, vector<16x512xf32> -> vector<16x512xf32>
    %c0_10 = arith.constant 0 : index
    %c0_11 = arith.constant 0 : index
    %21 = vector.load %arg10[%c0_10, %c0_11] : memref<1x512xf32, #tpu.memory_space<vmem>>, vector<1x512xf32>
    %22 = vector.broadcast %21 : vector<1x512xf32> to vector<16x512xf32>
    %23 = arith.addf %20, %22 : vector<16x512xf32>
    %24 = vector.extract_strided_slice %23 {offsets = [0, 0], sizes = [16, 256], strides = [1, 1]} : vector<16x512xf32> to vector<16x256xf32>
    %25 = vector.extract_strided_slice %23 {offsets = [0, 256], sizes = [16, 256], strides = [1, 1]} : vector<16x512xf32> to vector<16x256xf32>
    %26 = vector.extract_strided_slice %24 {offsets = [0, 0], sizes = [16, 64], strides = [1, 1]} : vector<16x256xf32> to vector<16x64xf32>
    %27 = vector.extract_strided_slice %24 {offsets = [0, 64], sizes = [16, 64], strides = [1, 1]} : vector<16x256xf32> to vector<16x64xf32>
    %28 = vector.extract_strided_slice %24 {offsets = [0, 128], sizes = [16, 64], strides = [1, 1]} : vector<16x256xf32> to vector<16x64xf32>
    %29 = vector.extract_strided_slice %24 {offsets = [0, 192], sizes = [16, 64], strides = [1, 1]} : vector<16x256xf32> to vector<16x64xf32>
    %30 = vector.shape_cast %26 : vector<16x64xf32> to vector<1x16x64xf32>
    %31 = vector.shape_cast %27 : vector<16x64xf32> to vector<1x16x64xf32>
    %32 = vector.shape_cast %28 : vector<16x64xf32> to vector<1x16x64xf32>
    %33 = vector.shape_cast %29 : vector<16x64xf32> to vector<1x16x64xf32>
    %34 = tpu.concatenate %30, %31, %32, %33 in 0 : vector<1x16x64xf32>, vector<1x16x64xf32>, vector<1x16x64xf32>, vector<1x16x64xf32> -> vector<4x16x64xf32>
    %35 = vector.extract_strided_slice %25 {offsets = [0, 0], sizes = [16, 64], strides = [1, 1]} : vector<16x256xf32> to vector<16x64xf32>
    %36 = vector.extract_strided_slice %25 {offsets = [0, 64], sizes = [16, 64], strides = [1, 1]} : vector<16x256xf32> to vector<16x64xf32>
    %37 = vector.extract_strided_slice %25 {offsets = [0, 128], sizes = [16, 64], strides = [1, 1]} : vector<16x256xf32> to vector<16x64xf32>
    %38 = vector.extract_strided_slice %25 {offsets = [0, 192], sizes = [16, 64], strides = [1, 1]} : vector<16x256xf32> to vector<16x64xf32>
    %39 = vector.shape_cast %35 : vector<16x64xf32> to vector<1x16x64xf32>
    %40 = vector.shape_cast %36 : vector<16x64xf32> to vector<1x16x64xf32>
    %41 = vector.shape_cast %37 : vector<16x64xf32> to vector<1x16x64xf32>
    %42 = vector.shape_cast %38 : vector<16x64xf32> to vector<1x16x64xf32>
    %43 = tpu.concatenate %39, %40, %41, %42 in 0 : vector<1x16x64xf32>, vector<1x16x64xf32>, vector<1x16x64xf32>, vector<1x16x64xf32> -> vector<4x16x64xf32>
    %c0_12 = arith.constant 0 : index
    %c0_13 = arith.constant 0 : index
    %c0_14 = arith.constant 0 : index
    %44 = vector.load %arg14[%c0_12, %c0_13, %c0_14] : memref<4x16x64xbf16, #tpu.memory_space<vmem>>, vector<4x16x64xbf16>
    %45 = arith.truncf %34 : vector<4x16x64xf32> to vector<4x16x64xbf16>
    "tpu.trace_start"() <{level = 10 : i32, message = "hqd,hkd->hqk"}> : () -> ()
    %cst_15 = arith.constant dense<0.000000e+00> : vector<4x16x16xf32>
    %46 = tpu.matmul %44, %45, %cst_15 {dimension_numbers = #tpu.dot_dimension_numbers<[2], [2], [1], [1], [0, 0, 0, 1, 1, 1], [0], [0]>} : vector<4x16x64xbf16>, vector<4x16x64xbf16>, vector<4x16x16xf32> -> vector<4x16x16xf32>
    "tpu.trace_stop"() : () -> ()
    %c0_16 = arith.constant 0 : index
    %c0_17 = arith.constant 0 : index
    %47 = vector.load %arg5[%c0_16, %c0_17] : memref<16x16xf32, #tpu.memory_space<vmem>>, vector<16x16xf32>
    %48 = vector.shape_cast %47 : vector<16x16xf32> to vector<1x16x16xf32>
    %49 = vector.broadcast %48 : vector<1x16x16xf32> to vector<4x16x16xf32>
    %50 = arith.addf %46, %49 : vector<4x16x16xf32>
    %c0_18 = arith.constant 0 : index
    %c0_19 = arith.constant 0 : index
    %c0_20 = arith.constant 0 : index
    %51 = vector.load %arg15[%c0_18, %c0_19, %c0_20] : memref<4x16x1xf32, #tpu.memory_space<vmem>>, vector<4x16x1xf32>
    %cst_21 = arith.constant dense<0xFF800000> : vector<4x16xf32>
    %52 = vector.multi_reduction <maximumf>, %50, %cst_21 [2] : vector<4x16x16xf32> to vector<4x16xf32>
    %53 = vector.shape_cast %52 : vector<4x16xf32> to vector<4x16x1xf32>
    %54 = arith.maximumf %51, %53 : vector<4x16x1xf32>
    %55 = arith.subf %51, %54 : vector<4x16x1xf32>
    %56 = math.exp %55 : vector<4x16x1xf32>
    %57 = vector.broadcast %54 : vector<4x16x1xf32> to vector<4x16x16xf32>
    %58 = arith.subf %50, %57 : vector<4x16x16xf32>
    %59 = math.exp %58 : vector<4x16x16xf32>
    %c0_22 = arith.constant 0 : index
    %c0_23 = arith.constant 0 : index
    %c0_24 = arith.constant 0 : index
    %60 = vector.load %arg16[%c0_22, %c0_23, %c0_24] : memref<4x16x1xf32, #tpu.memory_space<vmem>>, vector<4x16x1xf32>
    %61 = arith.mulf %56, %60 : vector<4x16x1xf32>
    %cst_25 = arith.constant dense<0.000000e+00> : vector<4x16xf32>
    %62 = vector.multi_reduction <add>, %59, %cst_25 [2] : vector<4x16x16xf32> to vector<4x16xf32>
    %63 = vector.shape_cast %62 : vector<4x16xf32> to vector<4x16x1xf32>
    %64 = arith.addf %61, %63 : vector<4x16x1xf32>
    %c0_26 = arith.constant 0 : index
    %c0_27 = arith.constant 0 : index
    %c0_28 = arith.constant 0 : index
    %65 = vector.load %arg16[%c0_26, %c0_27, %c0_28] : memref<4x16x1xf32, #tpu.memory_space<vmem>>, vector<4x16x1xf32>
    tpu.vector_store %arg16[%c0_26, %c0_27, %c0_28], %64 {strides = array<i32>} : memref<4x16x1xf32, #tpu.memory_space<vmem>>, vector<4x16x1xf32>,
    %c0_29 = arith.constant 0 : index
    %c0_30 = arith.constant 0 : index
    %c0_31 = arith.constant 0 : index
    %66 = vector.load %arg17[%c0_29, %c0_30, %c0_31] : memref<4x16x64xf32, #tpu.memory_space<vmem>>, vector<4x16x64xf32>
    %67 = vector.broadcast %56 : vector<4x16x1xf32> to vector<4x16x64xf32>
    %68 = arith.mulf %67, %66 : vector<4x16x64xf32>
    %69 = arith.truncf %59 : vector<4x16x16xf32> to vector<4x16x16xbf16>
    %70 = arith.truncf %43 : vector<4x16x64xf32> to vector<4x16x64xbf16>
    "tpu.trace_start"() <{level = 10 : i32, message = "hqk,hkd->hqd"}> : () -> ()
    %cst_32 = arith.constant dense<0.000000e+00> : vector<4x16x64xf32>
    %71 = tpu.matmul %69, %70, %cst_32 {dimension_numbers = #tpu.dot_dimension_numbers<[2], [1], [1], [2], [0, 0, 0, 1, 1, 2], [0], [0]>} : vector<4x16x16xbf16>, vector<4x16x64xbf16>, vector<4x16x64xf32> -> vector<4x16x64xf32>
    "tpu.trace_stop"() : () -> ()
    %72 = arith.addf %68, %71 : vector<4x16x64xf32>
    %c0_33 = arith.constant 0 : index
    %c0_34 = arith.constant 0 : index
    %c0_35 = arith.constant 0 : index
    %73 = vector.load %arg17[%c0_33, %c0_34, %c0_35] : memref<4x16x64xf32, #tpu.memory_space<vmem>>, vector<4x16x64xf32>
    tpu.vector_store %arg17[%c0_33, %c0_34, %c0_35], %72 {strides = array<i32>} : memref<4x16x64xf32, #tpu.memory_space<vmem>>, vector<4x16x64xf32>,
    %c0_36 = arith.constant 0 : index
    %c0_37 = arith.constant 0 : index
    %c0_38 = arith.constant 0 : index
    %74 = vector.load %arg15[%c0_36, %c0_37, %c0_38] : memref<4x16x1xf32, #tpu.memory_space<vmem>>, vector<4x16x1xf32>
    tpu.vector_store %arg15[%c0_36, %c0_37, %c0_38], %54 {strides = array<i32>} : memref<4x16x1xf32, #tpu.memory_space<vmem>>, vector<4x16x1xf32>,
    %c0_i32_39 = arith.constant 0 : i32
    %75 = arith.cmpi eq, %arg2, %c0_i32_39 : i32
    %76 = arith.extui %75 : i1 to i32
    %c0_i32_40 = arith.constant 0 : i32
    %77 = arith.cmpi ne, %76, %c0_i32_40 : i32
    scf.if %77 {
      %c0_41 = arith.constant 0 : index
      %c0_42 = arith.constant 0 : index
      %c0_43 = arith.constant 0 : index
      %78 = vector.load %arg17[%c0_41, %c0_42, %c0_43] : memref<4x16x64xf32, #tpu.memory_space<vmem>>, vector<4x16x64xf32>
      %c0_44 = arith.constant 0 : index
      %c0_45 = arith.constant 0 : index
      %c0_46 = arith.constant 0 : index
      %79 = vector.load %arg16[%c0_44, %c0_45, %c0_46] : memref<4x16x1xf32, #tpu.memory_space<vmem>>, vector<4x16x1xf32>
      %80 = vector.broadcast %79 : vector<4x16x1xf32> to vector<4x16x64xf32>
      %81 = arith.divf %78, %80 : vector<4x16x64xf32>
      %82 = vector.extract_strided_slice %81 {offsets = [0, 0, 0], sizes = [1, 16, 64], strides = [1, 1, 1]} : vector<4x16x64xf32> to vector<1x16x64xf32>
      %83 = vector.shape_cast %82 : vector<1x16x64xf32> to vector<16x64xf32>
      %84 = vector.extract_strided_slice %81 {offsets = [1, 0, 0], sizes = [1, 16, 64], strides = [1, 1, 1]} : vector<4x16x64xf32> to vector<1x16x64xf32>
      %85 = vector.shape_cast %84 : vector<1x16x64xf32> to vector<16x64xf32>
      %86 = vector.extract_strided_slice %81 {offsets = [2, 0, 0], sizes = [1, 16, 64], strides = [1, 1, 1]} : vector<4x16x64xf32> to vector<1x16x64xf32>
      %87 = vector.shape_cast %86 : vector<1x16x64xf32> to vector<16x64xf32>
      %88 = vector.extract_strided_slice %81 {offsets = [3, 0, 0], sizes = [1, 16, 64], strides = [1, 1, 1]} : vector<4x16x64xf32> to vector<1x16x64xf32>
      %89 = vector.shape_cast %88 : vector<1x16x64xf32> to vector<16x64xf32>
      %90 = tpu.concatenate %83, %85, %87, %89 in 1 : vector<16x64xf32>, vector<16x64xf32>, vector<16x64xf32>, vector<16x64xf32> -> vector<16x256xf32>
      %91 = arith.truncf %90 : vector<16x256xf32> to vector<16x256xbf16>
      %c0_47 = arith.constant 0 : index
      %c0_48 = arith.constant 0 : index
      %92 = vector.load %arg11[%c0_47, %c0_48] : memref<256x256xbf16, #tpu.memory_space<vmem>>, vector<256x256xbf16>
      %cst_49 = arith.constant dense<0.000000e+00> : vector<16x256xf32>
      %93 = tpu.matmul %91, %92, %cst_49 {dimension_numbers = #tpu.dot_dimension_numbers<[1], [0], [0], [1], [0, 0, 1, 1], [], []>} : vector<16x256xbf16>, vector<256x256xbf16>, vector<16x256xf32> -> vector<16x256xf32>
      %c0_50 = arith.constant 0 : index
      %c0_51 = arith.constant 0 : index
      %94 = vector.load %arg12[%c0_50, %c0_51] : memref<1x256xf32, #tpu.memory_space<vmem>>, vector<1x256xf32>
      %95 = vector.broadcast %94 : vector<1x256xf32> to vector<16x256xf32>
      %96 = arith.addf %93, %95 : vector<16x256xf32>
      %c0_52 = arith.constant 0 : index
      %c0_53 = arith.constant 0 : index
      %c0_54 = arith.constant 0 : index
      %97 = vector.load %arg3[%c0_52, %c0_53, %c0_54] : memref<1x16x256xf32, #tpu.memory_space<vmem>>, vector<1x16x256xf32>
      %98 = vector.shape_cast %97 : vector<1x16x256xf32> to vector<16x256xf32>
      %99 = arith.addf %98, %96 : vector<16x256xf32>
      %c0_55 = arith.constant 0 : index
      %c0_56 = arith.constant 0 : index
      %c0_57 = arith.constant 0 : index
      %100 = vector.load %arg13[%c0_55, %c0_56, %c0_57] : memref<1x16x256xf32, #tpu.memory_space<vmem>>, vector<1x16x256xf32>
      %101 = vector.shape_cast %100 : vector<1x16x256xf32> to vector<16x256xf32>
      %102 = vector.shape_cast %99 : vector<16x256xf32> to vector<1x16x256xf32>
      tpu.vector_store %arg13[%c0_55, %c0_56, %c0_57], %102 {strides = array<i32>} : memref<1x16x256xf32, #tpu.memory_space<vmem>>, vector<1x16x256xf32>,
    } else {
    }
    return
  }
  func.func @transform_0(%arg0: i32, %arg1: i32, %arg2: i32) -> (i32, i32, i32) {
    %c0_i32 = arith.constant 0 : i32
    %c0_i32_0 = arith.constant 0 : i32
    return %arg0, %arg1, %c0_i32 : i32, i32, i32
  }
  func.func @transform_1(%arg0: i32, %arg1: i32, %arg2: i32) -> (i32, i32, i32) {
    %c0_i32 = arith.constant 0 : i32
    %c0_i32_0 = arith.constant 0 : i32
    return %arg0, %arg2, %c0_i32 : i32, i32, i32
  }
  func.func @transform_2(%arg0: i32, %arg1: i32, %arg2: i32) -> (i32, i32) {
    %c0_i32 = arith.constant 0 : i32
    return %arg1, %arg2 : i32, i32
  }
  func.func @transform_3(%arg0: i32, %arg1: i32, %arg2: i32) -> (i32, i32) {
    %c0_i32 = arith.constant 0 : i32
    %c0_i32_0 = arith.constant 0 : i32
    %c0_i32_1 = arith.constant 0 : i32
    return %c0_i32, %c0_i32_0 : i32, i32
  }
  func.func @transform_4(%arg0: i32, %arg1: i32, %arg2: i32) -> (i32, i32) {
    %c0_i32 = arith.constant 0 : i32
    %c0_i32_0 = arith.constant 0 : i32
    %c0_i32_1 = arith.constant 0 : i32
    return %c0_i32, %c0_i32_0 : i32, i32
  }
  func.func @transform_5(%arg0: i32, %arg1: i32, %arg2: i32) -> (i32, i32) {
    %c0_i32 = arith.constant 0 : i32
    %c0_i32_0 = arith.constant 0 : i32
    %c0_i32_1 = arith.constant 0 : i32
    return %c0_i32, %c0_i32_0 : i32, i32
  }
  func.func @transform_6(%arg0: i32, %arg1: i32, %arg2: i32) -> (i32, i32) {
    %c0_i32 = arith.constant 0 : i32
    %c0_i32_0 = arith.constant 0 : i32
    %c0_i32_1 = arith.constant 0 : i32
    return %c0_i32, %c0_i32_0 : i32, i32
  }
  func.func @transform_7(%arg0: i32, %arg1: i32, %arg2: i32) -> (i32, i32) {
    %c0_i32 = arith.constant 0 : i32
    %c0_i32_0 = arith.constant 0 : i32
    %c0_i32_1 = arith.constant 0 : i32
    return %c0_i32, %c0_i32_0 : i32, i32
  }
  func.func @transform_8(%arg0: i32, %arg1: i32, %arg2: i32) -> (i32, i32) {
    %c0_i32 = arith.constant 0 : i32
    %c0_i32_0 = arith.constant 0 : i32
    %c0_i32_1 = arith.constant 0 : i32
    return %c0_i32, %c0_i32_0 : i32, i32
  }
  func.func @transform_9(%arg0: i32, %arg1: i32, %arg2: i32) -> (i32, i32) {
    %c0_i32 = arith.constant 0 : i32
    %c0_i32_0 = arith.constant 0 : i32
    %c0_i32_1 = arith.constant 0 : i32
    return %c0_i32, %c0_i32_0 : i32, i32
  }
  func.func @transform_10(%arg0: i32, %arg1: i32, %arg2: i32) -> (i32, i32, i32) {
    %c0_i32 = arith.constant 0 : i32
    %c0_i32_0 = arith.constant 0 : i32
    return %arg0, %arg1, %c0_i32 : i32, i32, i32
  }
}

module attributes {stable_mosaic.version = 11 : i64} {
  func.func @_flash_attn_kernel(%arg0: i32, %arg1: i32, %arg2: i32, %arg3: memref<1x16x256xf32, #tpu.memory_space<vmem>>, %arg4: memref<1x32x256xf32, #tpu.memory_space<vmem>>, %arg5: memref<1x256xf32, #tpu.memory_space<vmem>>, %arg6: memref<256x256xbf16, #tpu.memory_space<vmem>>, %arg7: memref<1x256xf32, #tpu.memory_space<vmem>>, %arg8: memref<256x512xbf16, #tpu.memory_space<vmem>>, %arg9: memref<1x512xf32, #tpu.memory_space<vmem>>, %arg10: memref<256x256xbf16, #tpu.memory_space<vmem>>, %arg11: memref<1x256xf32, #tpu.memory_space<vmem>>, %arg12: memref<1x16x256xf32, #tpu.memory_space<vmem>>, %arg13: memref<4x16x64xbf16, #tpu.memory_space<vmem>>, %arg14: memref<4x16x1xf32, #tpu.memory_space<vmem>>, %arg15: memref<4x16x1xf32, #tpu.memory_space<vmem>>, %arg16: memref<4x16x64xf32, #tpu.memory_space<vmem>>) attributes {dimension_semantics = [#tpu.dimension_semantics<parallel>, #tpu.dimension_semantics<parallel>, #tpu.dimension_semantics<arbitrary>], iteration_bounds = array<i64: 2, 1, 1>, scalar_prefetch = 0 : i64, scratch_operands = 4 : i64, tpu.core_type = #tpu.core_type<tc>, window_params = [{transform_indices = @transform_0, window_bounds = array<i64: 1, 16, 256>}, {transform_indices = @transform_1, window_bounds = array<i64: 1, 32, 256>}, {pipeline_mode = #tpu.pipeline_mode<synchronous>, transform_indices = @transform_2, window_bounds = array<i64: 1, 256>}, {pipeline_mode = #tpu.pipeline_mode<synchronous>, transform_indices = @transform_3, window_bounds = array<i64: 256, 256>}, {pipeline_mode = #tpu.pipeline_mode<synchronous>, transform_indices = @transform_4, window_bounds = array<i64: 1, 256>}, {pipeline_mode = #tpu.pipeline_mode<synchronous>, transform_indices = @transform_5, window_bounds = array<i64: 256, 512>}, {pipeline_mode = #tpu.pipeline_mode<synchronous>, transform_indices = @transform_6, window_bounds = array<i64: 1, 512>}, {pipeline_mode = #tpu.pipeline_mode<synchronous>, transform_indices = @transform_7, window_bounds = array<i64: 256, 256>}, {pipeline_mode = #tpu.pipeline_mode<synchronous>, transform_indices = @transform_8, window_bounds = array<i64: 1, 256>}, {transform_indices = @transform_9, window_bounds = array<i64: 1, 16, 256>}]} {
    %c0_i32 = arith.constant 0 : i32
    %0 = arith.cmpi eq, %arg2, %c0_i32 : i32
    %1 = arith.extui %0 : i1 to i32
    %c0_i32_0 = arith.constant 0 : i32
    %2 = arith.cmpi ne, %1, %c0_i32_0 : i32
    scf.if %2 {
      %c0_34 = arith.constant 0 : index
      %c0_35 = arith.constant 0 : index
      %c0_36 = arith.constant 0 : index
      %61 = vector.load %arg3[%c0_34, %c0_35, %c0_36] : memref<1x16x256xf32, #tpu.memory_space<vmem>>, vector<1x16x256xf32>
      %62 = vector.shape_cast %61 : vector<1x16x256xf32> to vector<16x256xf32>
      %c0_37 = arith.constant 0 : index
      %c0_38 = arith.constant 0 : index
      %63 = vector.load %arg5[%c0_37, %c0_38] : memref<1x256xf32, #tpu.memory_space<vmem>>, vector<1x256xf32>
      %64 = arith.mulf %62, %62 : vector<16x256xf32>
      %cst_39 = arith.constant dense<0.000000e+00> : vector<16xf32>
      %65 = vector.multi_reduction <add>, %64, %cst_39 [1] : vector<16x256xf32> to vector<16xf32>
      %66 = vector.shape_cast %65 : vector<16xf32> to vector<16x1xf32>
      %cst_40 = arith.constant 2.560000e+02 : f32
      %67 = vector.broadcast %cst_40 : f32 to vector<16x1xf32>
      %68 = arith.divf %66, %67 : vector<16x1xf32>
      %cst_41 = arith.constant 9.99999993E-9 : f32
      %69 = vector.broadcast %cst_41 : f32 to vector<16x1xf32>
      %70 = arith.addf %68, %69 : vector<16x1xf32>
      %71 = math.rsqrt %70 : vector<16x1xf32>
      %72 = vector.broadcast %71 : vector<16x1xf32> to vector<16x256xf32>
      %73 = arith.mulf %62, %72 : vector<16x256xf32>
      %74 = vector.broadcast %63 : vector<1x256xf32> to vector<16x256xf32>
      %75 = arith.mulf %73, %74 : vector<16x256xf32>
      %76 = arith.truncf %75 : vector<16x256xf32> to vector<16x256xbf16>
      %c0_42 = arith.constant 0 : index
      %c0_43 = arith.constant 0 : index
      %77 = vector.load %arg6[%c0_42, %c0_43] : memref<256x256xbf16, #tpu.memory_space<vmem>>, vector<256x256xbf16>
      %cst_44 = arith.constant dense<0.000000e+00> : vector<16x256xf32>
      %78 = tpu.matmul %76, %77, %cst_44 {dimension_numbers = #tpu.dot_dimension_numbers<[1], [0], [0], [1], [0, 0, 1, 1], [], []>} : vector<16x256xbf16>, vector<256x256xbf16>, vector<16x256xf32> -> vector<16x256xf32>
      %c0_45 = arith.constant 0 : index
      %c0_46 = arith.constant 0 : index
      %79 = vector.load %arg7[%c0_45, %c0_46] : memref<1x256xf32, #tpu.memory_space<vmem>>, vector<1x256xf32>
      %80 = vector.broadcast %79 : vector<1x256xf32> to vector<16x256xf32>
      %81 = arith.addf %78, %80 : vector<16x256xf32>
      %cst_47 = arith.constant 1.250000e-01 : f32
      %82 = vector.broadcast %cst_47 : f32 to vector<16x256xf32>
      %83 = arith.mulf %81, %82 : vector<16x256xf32>
      %84 = vector.extract_strided_slice %83 {offsets = [0, 0], sizes = [16, 64], strides = [1, 1]} : vector<16x256xf32> to vector<16x64xf32>
      %85 = vector.extract_strided_slice %83 {offsets = [0, 64], sizes = [16, 64], strides = [1, 1]} : vector<16x256xf32> to vector<16x64xf32>
      %86 = vector.extract_strided_slice %83 {offsets = [0, 128], sizes = [16, 64], strides = [1, 1]} : vector<16x256xf32> to vector<16x64xf32>
      %87 = vector.extract_strided_slice %83 {offsets = [0, 192], sizes = [16, 64], strides = [1, 1]} : vector<16x256xf32> to vector<16x64xf32>
      %88 = vector.shape_cast %84 : vector<16x64xf32> to vector<1x16x64xf32>
      %89 = vector.shape_cast %85 : vector<16x64xf32> to vector<1x16x64xf32>
      %90 = vector.shape_cast %86 : vector<16x64xf32> to vector<1x16x64xf32>
      %91 = vector.shape_cast %87 : vector<16x64xf32> to vector<1x16x64xf32>
      %92 = tpu.concatenate %88, %89, %90, %91 in 0 : vector<1x16x64xf32>, vector<1x16x64xf32>, vector<1x16x64xf32>, vector<1x16x64xf32> -> vector<4x16x64xf32>
      %93 = arith.truncf %92 : vector<4x16x64xf32> to vector<4x16x64xbf16>
      %c0_48 = arith.constant 0 : index
      %c0_49 = arith.constant 0 : index
      %c0_50 = arith.constant 0 : index
      %94 = vector.load %arg13[%c0_48, %c0_49, %c0_50] : memref<4x16x64xbf16, #tpu.memory_space<vmem>>, vector<4x16x64xbf16>
      tpu.vector_store %arg13[%c0_48, %c0_49, %c0_50], %93 {strides = array<i32>} : memref<4x16x64xbf16, #tpu.memory_space<vmem>>, vector<4x16x64xbf16>,
      %cst_51 = arith.constant -1.000000e+30 : f32
      %95 = vector.broadcast %cst_51 : f32 to vector<4x16x1xf32>
      %c0_52 = arith.constant 0 : index
      %c0_53 = arith.constant 0 : index
      %c0_54 = arith.constant 0 : index
      %96 = vector.load %arg14[%c0_52, %c0_53, %c0_54] : memref<4x16x1xf32, #tpu.memory_space<vmem>>, vector<4x16x1xf32>
      tpu.vector_store %arg14[%c0_52, %c0_53, %c0_54], %95 {strides = array<i32>} : memref<4x16x1xf32, #tpu.memory_space<vmem>>, vector<4x16x1xf32>,
      %cst_55 = arith.constant 0.000000e+00 : f32
      %97 = vector.broadcast %cst_55 : f32 to vector<4x16x1xf32>
      %c0_56 = arith.constant 0 : index
      %c0_57 = arith.constant 0 : index
      %c0_58 = arith.constant 0 : index
      %98 = vector.load %arg15[%c0_56, %c0_57, %c0_58] : memref<4x16x1xf32, #tpu.memory_space<vmem>>, vector<4x16x1xf32>
      tpu.vector_store %arg15[%c0_56, %c0_57, %c0_58], %97 {strides = array<i32>} : memref<4x16x1xf32, #tpu.memory_space<vmem>>, vector<4x16x1xf32>,
      %cst_59 = arith.constant 0.000000e+00 : f32
      %99 = vector.broadcast %cst_59 : f32 to vector<4x16x64xf32>
      %c0_60 = arith.constant 0 : index
      %c0_61 = arith.constant 0 : index
      %c0_62 = arith.constant 0 : index
      %100 = vector.load %arg16[%c0_60, %c0_61, %c0_62] : memref<4x16x64xf32, #tpu.memory_space<vmem>>, vector<4x16x64xf32>
      tpu.vector_store %arg16[%c0_60, %c0_61, %c0_62], %99 {strides = array<i32>} : memref<4x16x64xf32, #tpu.memory_space<vmem>>, vector<4x16x64xf32>,
    } else {
    }
    %c0 = arith.constant 0 : index
    %c0_1 = arith.constant 0 : index
    %c0_2 = arith.constant 0 : index
    %3 = vector.load %arg4[%c0, %c0_1, %c0_2] : memref<1x32x256xf32, #tpu.memory_space<vmem>>, vector<1x32x256xf32>
    %4 = vector.shape_cast %3 : vector<1x32x256xf32> to vector<32x256xf32>
    %5 = arith.truncf %4 : vector<32x256xf32> to vector<32x256xbf16>
    %c0_3 = arith.constant 0 : index
    %c0_4 = arith.constant 0 : index
    %6 = vector.load %arg8[%c0_3, %c0_4] : memref<256x512xbf16, #tpu.memory_space<vmem>>, vector<256x512xbf16>
    %cst = arith.constant dense<0.000000e+00> : vector<32x512xf32>
    %7 = tpu.matmul %5, %6, %cst {dimension_numbers = #tpu.dot_dimension_numbers<[1], [0], [0], [1], [0, 0, 1, 1], [], []>} : vector<32x256xbf16>, vector<256x512xbf16>, vector<32x512xf32> -> vector<32x512xf32>
    %c0_5 = arith.constant 0 : index
    %c0_6 = arith.constant 0 : index
    %8 = vector.load %arg9[%c0_5, %c0_6] : memref<1x512xf32, #tpu.memory_space<vmem>>, vector<1x512xf32>
    %9 = vector.broadcast %8 : vector<1x512xf32> to vector<32x512xf32>
    %10 = arith.addf %7, %9 : vector<32x512xf32>
    %11 = vector.extract_strided_slice %10 {offsets = [0, 0], sizes = [32, 256], strides = [1, 1]} : vector<32x512xf32> to vector<32x256xf32>
    %12 = vector.extract_strided_slice %10 {offsets = [0, 256], sizes = [32, 256], strides = [1, 1]} : vector<32x512xf32> to vector<32x256xf32>
    %13 = vector.extract_strided_slice %11 {offsets = [0, 0], sizes = [32, 64], strides = [1, 1]} : vector<32x256xf32> to vector<32x64xf32>
    %14 = vector.extract_strided_slice %11 {offsets = [0, 64], sizes = [32, 64], strides = [1, 1]} : vector<32x256xf32> to vector<32x64xf32>
    %15 = vector.extract_strided_slice %11 {offsets = [0, 128], sizes = [32, 64], strides = [1, 1]} : vector<32x256xf32> to vector<32x64xf32>
    %16 = vector.extract_strided_slice %11 {offsets = [0, 192], sizes = [32, 64], strides = [1, 1]} : vector<32x256xf32> to vector<32x64xf32>
    %17 = vector.shape_cast %13 : vector<32x64xf32> to vector<1x32x64xf32>
    %18 = vector.shape_cast %14 : vector<32x64xf32> to vector<1x32x64xf32>
    %19 = vector.shape_cast %15 : vector<32x64xf32> to vector<1x32x64xf32>
    %20 = vector.shape_cast %16 : vector<32x64xf32> to vector<1x32x64xf32>
    %21 = tpu.concatenate %17, %18, %19, %20 in 0 : vector<1x32x64xf32>, vector<1x32x64xf32>, vector<1x32x64xf32>, vector<1x32x64xf32> -> vector<4x32x64xf32>
    %22 = vector.extract_strided_slice %12 {offsets = [0, 0], sizes = [32, 64], strides = [1, 1]} : vector<32x256xf32> to vector<32x64xf32>
    %23 = vector.extract_strided_slice %12 {offsets = [0, 64], sizes = [32, 64], strides = [1, 1]} : vector<32x256xf32> to vector<32x64xf32>
    %24 = vector.extract_strided_slice %12 {offsets = [0, 128], sizes = [32, 64], strides = [1, 1]} : vector<32x256xf32> to vector<32x64xf32>
    %25 = vector.extract_strided_slice %12 {offsets = [0, 192], sizes = [32, 64], strides = [1, 1]} : vector<32x256xf32> to vector<32x64xf32>
    %26 = vector.shape_cast %22 : vector<32x64xf32> to vector<1x32x64xf32>
    %27 = vector.shape_cast %23 : vector<32x64xf32> to vector<1x32x64xf32>
    %28 = vector.shape_cast %24 : vector<32x64xf32> to vector<1x32x64xf32>
    %29 = vector.shape_cast %25 : vector<32x64xf32> to vector<1x32x64xf32>
    %30 = tpu.concatenate %26, %27, %28, %29 in 0 : vector<1x32x64xf32>, vector<1x32x64xf32>, vector<1x32x64xf32>, vector<1x32x64xf32> -> vector<4x32x64xf32>
    %c0_7 = arith.constant 0 : index
    %c0_8 = arith.constant 0 : index
    %c0_9 = arith.constant 0 : index
    %31 = vector.load %arg13[%c0_7, %c0_8, %c0_9] : memref<4x16x64xbf16, #tpu.memory_space<vmem>>, vector<4x16x64xbf16>
    %32 = arith.truncf %21 : vector<4x32x64xf32> to vector<4x32x64xbf16>
    "tpu.trace_start"() <{level = 10 : i32, message = "hqd,hkd->hqk"}> : () -> ()
    %cst_10 = arith.constant dense<0.000000e+00> : vector<4x16x32xf32>
    %33 = tpu.matmul %31, %32, %cst_10 {dimension_numbers = #tpu.dot_dimension_numbers<[2], [2], [1], [1], [0, 0, 0, 1, 1, 1], [0], [0]>} : vector<4x16x64xbf16>, vector<4x32x64xbf16>, vector<4x16x32xf32> -> vector<4x16x32xf32>
    "tpu.trace_stop"() : () -> ()
    %c0_11 = arith.constant 0 : index
    %c0_12 = arith.constant 0 : index
    %c0_13 = arith.constant 0 : index
    %34 = vector.load %arg14[%c0_11, %c0_12, %c0_13] : memref<4x16x1xf32, #tpu.memory_space<vmem>>, vector<4x16x1xf32>
    %cst_14 = arith.constant dense<0xFF800000> : vector<4x16xf32>
    %35 = vector.multi_reduction <maximumf>, %33, %cst_14 [2] : vector<4x16x32xf32> to vector<4x16xf32>
    %36 = vector.shape_cast %35 : vector<4x16xf32> to vector<4x16x1xf32>
    %37 = arith.maximumf %34, %36 : vector<4x16x1xf32>
    %38 = arith.subf %34, %37 : vector<4x16x1xf32>
    %39 = math.exp %38 : vector<4x16x1xf32>
    %40 = vector.broadcast %37 : vector<4x16x1xf32> to vector<4x16x32xf32>
    %41 = arith.subf %33, %40 : vector<4x16x32xf32>
    %42 = math.exp %41 : vector<4x16x32xf32>
    %c0_15 = arith.constant 0 : index
    %c0_16 = arith.constant 0 : index
    %c0_17 = arith.constant 0 : index
    %43 = vector.load %arg15[%c0_15, %c0_16, %c0_17] : memref<4x16x1xf32, #tpu.memory_space<vmem>>, vector<4x16x1xf32>
    %44 = arith.mulf %39, %43 : vector<4x16x1xf32>
    %cst_18 = arith.constant dense<0.000000e+00> : vector<4x16xf32>
    %45 = vector.multi_reduction <add>, %42, %cst_18 [2] : vector<4x16x32xf32> to vector<4x16xf32>
    %46 = vector.shape_cast %45 : vector<4x16xf32> to vector<4x16x1xf32>
    %47 = arith.addf %44, %46 : vector<4x16x1xf32>
    %c0_19 = arith.constant 0 : index
    %c0_20 = arith.constant 0 : index
    %c0_21 = arith.constant 0 : index
    %48 = vector.load %arg15[%c0_19, %c0_20, %c0_21] : memref<4x16x1xf32, #tpu.memory_space<vmem>>, vector<4x16x1xf32>
    tpu.vector_store %arg15[%c0_19, %c0_20, %c0_21], %47 {strides = array<i32>} : memref<4x16x1xf32, #tpu.memory_space<vmem>>, vector<4x16x1xf32>,
    %c0_22 = arith.constant 0 : index
    %c0_23 = arith.constant 0 : index
    %c0_24 = arith.constant 0 : index
    %49 = vector.load %arg16[%c0_22, %c0_23, %c0_24] : memref<4x16x64xf32, #tpu.memory_space<vmem>>, vector<4x16x64xf32>
    %50 = vector.broadcast %39 : vector<4x16x1xf32> to vector<4x16x64xf32>
    %51 = arith.mulf %50, %49 : vector<4x16x64xf32>
    %52 = arith.truncf %42 : vector<4x16x32xf32> to vector<4x16x32xbf16>
    %53 = arith.truncf %30 : vector<4x32x64xf32> to vector<4x32x64xbf16>
    "tpu.trace_start"() <{level = 10 : i32, message = "hqk,hkd->hqd"}> : () -> ()
    %cst_25 = arith.constant dense<0.000000e+00> : vector<4x16x64xf32>
    %54 = tpu.matmul %52, %53, %cst_25 {dimension_numbers = #tpu.dot_dimension_numbers<[2], [1], [1], [2], [0, 0, 0, 1, 1, 2], [0], [0]>} : vector<4x16x32xbf16>, vector<4x32x64xbf16>, vector<4x16x64xf32> -> vector<4x16x64xf32>
    "tpu.trace_stop"() : () -> ()
    %55 = arith.addf %51, %54 : vector<4x16x64xf32>
    %c0_26 = arith.constant 0 : index
    %c0_27 = arith.constant 0 : index
    %c0_28 = arith.constant 0 : index
    %56 = vector.load %arg16[%c0_26, %c0_27, %c0_28] : memref<4x16x64xf32, #tpu.memory_space<vmem>>, vector<4x16x64xf32>
    tpu.vector_store %arg16[%c0_26, %c0_27, %c0_28], %55 {strides = array<i32>} : memref<4x16x64xf32, #tpu.memory_space<vmem>>, vector<4x16x64xf32>,
    %c0_29 = arith.constant 0 : index
    %c0_30 = arith.constant 0 : index
    %c0_31 = arith.constant 0 : index
    %57 = vector.load %arg14[%c0_29, %c0_30, %c0_31] : memref<4x16x1xf32, #tpu.memory_space<vmem>>, vector<4x16x1xf32>
    tpu.vector_store %arg14[%c0_29, %c0_30, %c0_31], %37 {strides = array<i32>} : memref<4x16x1xf32, #tpu.memory_space<vmem>>, vector<4x16x1xf32>,
    %c0_i32_32 = arith.constant 0 : i32
    %58 = arith.cmpi eq, %arg2, %c0_i32_32 : i32
    %59 = arith.extui %58 : i1 to i32
    %c0_i32_33 = arith.constant 0 : i32
    %60 = arith.cmpi ne, %59, %c0_i32_33 : i32
    scf.if %60 {
      %c0_34 = arith.constant 0 : index
      %c0_35 = arith.constant 0 : index
      %c0_36 = arith.constant 0 : index
      %61 = vector.load %arg16[%c0_34, %c0_35, %c0_36] : memref<4x16x64xf32, #tpu.memory_space<vmem>>, vector<4x16x64xf32>
      %c0_37 = arith.constant 0 : index
      %c0_38 = arith.constant 0 : index
      %c0_39 = arith.constant 0 : index
      %62 = vector.load %arg15[%c0_37, %c0_38, %c0_39] : memref<4x16x1xf32, #tpu.memory_space<vmem>>, vector<4x16x1xf32>
      %63 = vector.broadcast %62 : vector<4x16x1xf32> to vector<4x16x64xf32>
      %64 = arith.divf %61, %63 : vector<4x16x64xf32>
      %65 = vector.extract_strided_slice %64 {offsets = [0, 0, 0], sizes = [1, 16, 64], strides = [1, 1, 1]} : vector<4x16x64xf32> to vector<1x16x64xf32>
      %66 = vector.shape_cast %65 : vector<1x16x64xf32> to vector<16x64xf32>
      %67 = vector.extract_strided_slice %64 {offsets = [1, 0, 0], sizes = [1, 16, 64], strides = [1, 1, 1]} : vector<4x16x64xf32> to vector<1x16x64xf32>
      %68 = vector.shape_cast %67 : vector<1x16x64xf32> to vector<16x64xf32>
      %69 = vector.extract_strided_slice %64 {offsets = [2, 0, 0], sizes = [1, 16, 64], strides = [1, 1, 1]} : vector<4x16x64xf32> to vector<1x16x64xf32>
      %70 = vector.shape_cast %69 : vector<1x16x64xf32> to vector<16x64xf32>
      %71 = vector.extract_strided_slice %64 {offsets = [3, 0, 0], sizes = [1, 16, 64], strides = [1, 1, 1]} : vector<4x16x64xf32> to vector<1x16x64xf32>
      %72 = vector.shape_cast %71 : vector<1x16x64xf32> to vector<16x64xf32>
      %73 = tpu.concatenate %66, %68, %70, %72 in 1 : vector<16x64xf32>, vector<16x64xf32>, vector<16x64xf32>, vector<16x64xf32> -> vector<16x256xf32>
      %74 = arith.truncf %73 : vector<16x256xf32> to vector<16x256xbf16>
      %c0_40 = arith.constant 0 : index
      %c0_41 = arith.constant 0 : index
      %75 = vector.load %arg10[%c0_40, %c0_41] : memref<256x256xbf16, #tpu.memory_space<vmem>>, vector<256x256xbf16>
      %cst_42 = arith.constant dense<0.000000e+00> : vector<16x256xf32>
      %76 = tpu.matmul %74, %75, %cst_42 {dimension_numbers = #tpu.dot_dimension_numbers<[1], [0], [0], [1], [0, 0, 1, 1], [], []>} : vector<16x256xbf16>, vector<256x256xbf16>, vector<16x256xf32> -> vector<16x256xf32>
      %c0_43 = arith.constant 0 : index
      %c0_44 = arith.constant 0 : index
      %77 = vector.load %arg11[%c0_43, %c0_44] : memref<1x256xf32, #tpu.memory_space<vmem>>, vector<1x256xf32>
      %78 = vector.broadcast %77 : vector<1x256xf32> to vector<16x256xf32>
      %79 = arith.addf %76, %78 : vector<16x256xf32>
      %c0_45 = arith.constant 0 : index
      %c0_46 = arith.constant 0 : index
      %c0_47 = arith.constant 0 : index
      %80 = vector.load %arg3[%c0_45, %c0_46, %c0_47] : memref<1x16x256xf32, #tpu.memory_space<vmem>>, vector<1x16x256xf32>
      %81 = vector.shape_cast %80 : vector<1x16x256xf32> to vector<16x256xf32>
      %82 = arith.addf %81, %79 : vector<16x256xf32>
      %c0_48 = arith.constant 0 : index
      %c0_49 = arith.constant 0 : index
      %c0_50 = arith.constant 0 : index
      %83 = vector.load %arg12[%c0_48, %c0_49, %c0_50] : memref<1x16x256xf32, #tpu.memory_space<vmem>>, vector<1x16x256xf32>
      %84 = vector.shape_cast %83 : vector<1x16x256xf32> to vector<16x256xf32>
      %85 = vector.shape_cast %82 : vector<16x256xf32> to vector<1x16x256xf32>
      tpu.vector_store %arg12[%c0_48, %c0_49, %c0_50], %85 {strides = array<i32>} : memref<1x16x256xf32, #tpu.memory_space<vmem>>, vector<1x16x256xf32>,
    } else {
    }
    return
  }
  func.func @transform_0(%arg0: i32, %arg1: i32, %arg2: i32) -> (i32, i32, i32) {
    %c0_i32 = arith.constant 0 : i32
    %c0_i32_0 = arith.constant 0 : i32
    return %arg0, %arg1, %c0_i32 : i32, i32, i32
  }
  func.func @transform_1(%arg0: i32, %arg1: i32, %arg2: i32) -> (i32, i32, i32) {
    %c0_i32 = arith.constant 0 : i32
    %c0_i32_0 = arith.constant 0 : i32
    return %arg0, %arg2, %c0_i32 : i32, i32, i32
  }
  func.func @transform_2(%arg0: i32, %arg1: i32, %arg2: i32) -> (i32, i32) {
    %c0_i32 = arith.constant 0 : i32
    %c0_i32_0 = arith.constant 0 : i32
    %c0_i32_1 = arith.constant 0 : i32
    return %c0_i32, %c0_i32_0 : i32, i32
  }
  func.func @transform_3(%arg0: i32, %arg1: i32, %arg2: i32) -> (i32, i32) {
    %c0_i32 = arith.constant 0 : i32
    %c0_i32_0 = arith.constant 0 : i32
    %c0_i32_1 = arith.constant 0 : i32
    return %c0_i32, %c0_i32_0 : i32, i32
  }
  func.func @transform_4(%arg0: i32, %arg1: i32, %arg2: i32) -> (i32, i32) {
    %c0_i32 = arith.constant 0 : i32
    %c0_i32_0 = arith.constant 0 : i32
    %c0_i32_1 = arith.constant 0 : i32
    return %c0_i32, %c0_i32_0 : i32, i32
  }
  func.func @transform_5(%arg0: i32, %arg1: i32, %arg2: i32) -> (i32, i32) {
    %c0_i32 = arith.constant 0 : i32
    %c0_i32_0 = arith.constant 0 : i32
    %c0_i32_1 = arith.constant 0 : i32
    return %c0_i32, %c0_i32_0 : i32, i32
  }
  func.func @transform_6(%arg0: i32, %arg1: i32, %arg2: i32) -> (i32, i32) {
    %c0_i32 = arith.constant 0 : i32
    %c0_i32_0 = arith.constant 0 : i32
    %c0_i32_1 = arith.constant 0 : i32
    return %c0_i32, %c0_i32_0 : i32, i32
  }
  func.func @transform_7(%arg0: i32, %arg1: i32, %arg2: i32) -> (i32, i32) {
    %c0_i32 = arith.constant 0 : i32
    %c0_i32_0 = arith.constant 0 : i32
    %c0_i32_1 = arith.constant 0 : i32
    return %c0_i32, %c0_i32_0 : i32, i32
  }
  func.func @transform_8(%arg0: i32, %arg1: i32, %arg2: i32) -> (i32, i32) {
    %c0_i32 = arith.constant 0 : i32
    %c0_i32_0 = arith.constant 0 : i32
    %c0_i32_1 = arith.constant 0 : i32
    return %c0_i32, %c0_i32_0 : i32, i32
  }
  func.func @transform_9(%arg0: i32, %arg1: i32, %arg2: i32) -> (i32, i32, i32) {
    %c0_i32 = arith.constant 0 : i32
    %c0_i32_0 = arith.constant 0 : i32
    return %arg0, %arg1, %c0_i32 : i32, i32, i32
  }
}

module attributes {stable_mosaic.version = 11 : i64} {
  func.func @_glu_ffn_kernel(%arg0: i32, %arg1: i32, %arg2: memref<32x256xf32, #tpu.memory_space<vmem>>, %arg3: memref<1x256xf32, #tpu.memory_space<vmem>>, %arg4: memref<256x512xbf16, #tpu.memory_space<vmem>>, %arg5: memref<1x512xf32, #tpu.memory_space<vmem>>, %arg6: memref<256x512xbf16, #tpu.memory_space<vmem>>, %arg7: memref<1x512xf32, #tpu.memory_space<vmem>>, %arg8: memref<512x256xbf16, #tpu.memory_space<vmem>>, %arg9: memref<1x256xf32, #tpu.memory_space<vmem>>, %arg10: memref<32x256xf32, #tpu.memory_space<vmem>>, %arg11: memref<32x256xbf16, #tpu.memory_space<vmem>>, %arg12: memref<32x256xf32, #tpu.memory_space<vmem>>) attributes {dimension_semantics = [#tpu.dimension_semantics<parallel>, #tpu.dimension_semantics<arbitrary>], iteration_bounds = array<i64: 1, 1>, scalar_prefetch = 0 : i64, scratch_operands = 2 : i64, tpu.core_type = #tpu.core_type<tc>, window_params = [{transform_indices = @transform_0, window_bounds = array<i64: 32, 256>}, {pipeline_mode = #tpu.pipeline_mode<synchronous>, transform_indices = @transform_1, window_bounds = array<i64: 1, 256>}, {transform_indices = @transform_2, window_bounds = array<i64: 256, 512>}, {transform_indices = @transform_3, window_bounds = array<i64: 1, 512>}, {transform_indices = @transform_4, window_bounds = array<i64: 256, 512>}, {transform_indices = @transform_5, window_bounds = array<i64: 1, 512>}, {transform_indices = @transform_6, window_bounds = array<i64: 512, 256>}, {pipeline_mode = #tpu.pipeline_mode<synchronous>, transform_indices = @transform_7, window_bounds = array<i64: 1, 256>}, {transform_indices = @transform_8, window_bounds = array<i64: 32, 256>}]} {
    %c0_i32 = arith.constant 0 : i32
    %0 = arith.cmpi eq, %arg1, %c0_i32 : i32
    %1 = arith.extui %0 : i1 to i32
    %c0_i32_0 = arith.constant 0 : i32
    %2 = arith.cmpi ne, %1, %c0_i32_0 : i32
    scf.if %2 {
      %c0_21 = arith.constant 0 : index
      %c0_22 = arith.constant 0 : index
      %29 = vector.load %arg2[%c0_21, %c0_22] : memref<32x256xf32, #tpu.memory_space<vmem>>, vector<32x256xf32>
      %c0_23 = arith.constant 0 : index
      %c0_24 = arith.constant 0 : index
      %30 = vector.load %arg3[%c0_23, %c0_24] : memref<1x256xf32, #tpu.memory_space<vmem>>, vector<1x256xf32>
      %31 = arith.mulf %29, %29 : vector<32x256xf32>
      %cst_25 = arith.constant dense<0.000000e+00> : vector<32xf32>
      %32 = vector.multi_reduction <add>, %31, %cst_25 [1] : vector<32x256xf32> to vector<32xf32>
      %33 = vector.shape_cast %32 : vector<32xf32> to vector<32x1xf32>
      %cst_26 = arith.constant 2.560000e+02 : f32
      %34 = vector.broadcast %cst_26 : f32 to vector<32x1xf32>
      %35 = arith.divf %33, %34 : vector<32x1xf32>
      %cst_27 = arith.constant 9.99999993E-9 : f32
      %36 = vector.broadcast %cst_27 : f32 to vector<32x1xf32>
      %37 = arith.addf %35, %36 : vector<32x1xf32>
      %38 = math.rsqrt %37 : vector<32x1xf32>
      %39 = vector.broadcast %38 : vector<32x1xf32> to vector<32x256xf32>
      %40 = arith.mulf %29, %39 : vector<32x256xf32>
      %41 = vector.broadcast %30 : vector<1x256xf32> to vector<32x256xf32>
      %42 = arith.mulf %40, %41 : vector<32x256xf32>
      %43 = arith.truncf %42 : vector<32x256xf32> to vector<32x256xbf16>
      %c0_28 = arith.constant 0 : index
      %c0_29 = arith.constant 0 : index
      %44 = vector.load %arg11[%c0_28, %c0_29] : memref<32x256xbf16, #tpu.memory_space<vmem>>, vector<32x256xbf16>
      tpu.vector_store %arg11[%c0_28, %c0_29], %43 {strides = array<i32>} : memref<32x256xbf16, #tpu.memory_space<vmem>>, vector<32x256xbf16>,
      %cst_30 = arith.constant 0.000000e+00 : f32
      %45 = vector.broadcast %cst_30 : f32 to vector<32x256xf32>
      %c0_31 = arith.constant 0 : index
      %c0_32 = arith.constant 0 : index
      %46 = vector.load %arg12[%c0_31, %c0_32] : memref<32x256xf32, #tpu.memory_space<vmem>>, vector<32x256xf32>
      tpu.vector_store %arg12[%c0_31, %c0_32], %45 {strides = array<i32>} : memref<32x256xf32, #tpu.memory_space<vmem>>, vector<32x256xf32>,
    } else {
    }
    %c0 = arith.constant 0 : index
    %c0_1 = arith.constant 0 : index
    %3 = vector.load %arg11[%c0, %c0_1] : memref<32x256xbf16, #tpu.memory_space<vmem>>, vector<32x256xbf16>
    %c0_2 = arith.constant 0 : index
    %c0_3 = arith.constant 0 : index
    %4 = vector.load %arg4[%c0_2, %c0_3] : memref<256x512xbf16, #tpu.memory_space<vmem>>, vector<256x512xbf16>
    %cst = arith.constant dense<0.000000e+00> : vector<32x512xf32>
    %5 = tpu.matmul %3, %4, %cst {dimension_numbers = #tpu.dot_dimension_numbers<[1], [0], [0], [1], [0, 0, 1, 1], [], []>} : vector<32x256xbf16>, vector<256x512xbf16>, vector<32x512xf32> -> vector<32x512xf32>
    %c0_4 = arith.constant 0 : index
    %c0_5 = arith.constant 0 : index
    %6 = vector.load %arg5[%c0_4, %c0_5] : memref<1x512xf32, #tpu.memory_space<vmem>>, vector<1x512xf32>
    %7 = vector.broadcast %6 : vector<1x512xf32> to vector<32x512xf32>
    %8 = arith.addf %5, %7 : vector<32x512xf32>
    %c0_6 = arith.constant 0 : index
    %c0_7 = arith.constant 0 : index
    %9 = vector.load %arg6[%c0_6, %c0_7] : memref<256x512xbf16, #tpu.memory_space<vmem>>, vector<256x512xbf16>
    %cst_8 = arith.constant dense<0.000000e+00> : vector<32x512xf32>
    %10 = tpu.matmul %3, %9, %cst_8 {dimension_numbers = #tpu.dot_dimension_numbers<[1], [0], [0], [1], [0, 0, 1, 1], [], []>} : vector<32x256xbf16>, vector<256x512xbf16>, vector<32x512xf32> -> vector<32x512xf32>
    %c0_9 = arith.constant 0 : index
    %c0_10 = arith.constant 0 : index
    %11 = vector.load %arg7[%c0_9, %c0_10] : memref<1x512xf32, #tpu.memory_space<vmem>>, vector<1x512xf32>
    %12 = vector.broadcast %11 : vector<1x512xf32> to vector<32x512xf32>
    %13 = arith.addf %10, %12 : vector<32x512xf32>
    %14 = arith.negf %13 : vector<32x512xf32>
    %15 = math.exp %14 : vector<32x512xf32>
    %cst_11 = arith.constant 1.000000e+00 : f32
    %16 = vector.broadcast %cst_11 : f32 to vector<32x512xf32>
    %17 = arith.addf %16, %15 : vector<32x512xf32>
    %18 = arith.divf %16, %17 : vector<32x512xf32>
    %19 = arith.mulf %8, %18 : vector<32x512xf32>
    %c0_12 = arith.constant 0 : index
    %c0_13 = arith.constant 0 : index
    %20 = vector.load %arg12[%c0_12, %c0_13] : memref<32x256xf32, #tpu.memory_space<vmem>>, vector<32x256xf32>
    %21 = arith.truncf %19 : vector<32x512xf32> to vector<32x512xbf16>
    %c0_14 = arith.constant 0 : index
    %c0_15 = arith.constant 0 : index
    %22 = vector.load %arg8[%c0_14, %c0_15] : memref<512x256xbf16, #tpu.memory_space<vmem>>, vector<512x256xbf16>
    %cst_16 = arith.constant dense<0.000000e+00> : vector<32x256xf32>
    %23 = tpu.matmul %21, %22, %cst_16 {dimension_numbers = #tpu.dot_dimension_numbers<[1], [0], [0], [1], [0, 0, 1, 1], [], []>} : vector<32x512xbf16>, vector<512x256xbf16>, vector<32x256xf32> -> vector<32x256xf32>
    %24 = arith.addf %20, %23 : vector<32x256xf32>
    %c0_17 = arith.constant 0 : index
    %c0_18 = arith.constant 0 : index
    %25 = vector.load %arg12[%c0_17, %c0_18] : memref<32x256xf32, #tpu.memory_space<vmem>>, vector<32x256xf32>
    tpu.vector_store %arg12[%c0_17, %c0_18], %24 {strides = array<i32>} : memref<32x256xf32, #tpu.memory_space<vmem>>, vector<32x256xf32>,
    %c0_i32_19 = arith.constant 0 : i32
    %26 = arith.cmpi eq, %arg1, %c0_i32_19 : i32
    %27 = arith.extui %26 : i1 to i32
    %c0_i32_20 = arith.constant 0 : i32
    %28 = arith.cmpi ne, %27, %c0_i32_20 : i32
    scf.if %28 {
      %c0_21 = arith.constant 0 : index
      %c0_22 = arith.constant 0 : index
      %29 = vector.load %arg2[%c0_21, %c0_22] : memref<32x256xf32, #tpu.memory_space<vmem>>, vector<32x256xf32>
      %c0_23 = arith.constant 0 : index
      %c0_24 = arith.constant 0 : index
      %30 = vector.load %arg12[%c0_23, %c0_24] : memref<32x256xf32, #tpu.memory_space<vmem>>, vector<32x256xf32>
      %31 = arith.addf %29, %30 : vector<32x256xf32>
      %c0_25 = arith.constant 0 : index
      %c0_26 = arith.constant 0 : index
      %32 = vector.load %arg9[%c0_25, %c0_26] : memref<1x256xf32, #tpu.memory_space<vmem>>, vector<1x256xf32>
      %33 = vector.broadcast %32 : vector<1x256xf32> to vector<32x256xf32>
      %34 = arith.addf %31, %33 : vector<32x256xf32>
      %c0_27 = arith.constant 0 : index
      %c0_28 = arith.constant 0 : index
      %35 = vector.load %arg10[%c0_27, %c0_28] : memref<32x256xf32, #tpu.memory_space<vmem>>, vector<32x256xf32>
      tpu.vector_store %arg10[%c0_27, %c0_28], %34 {strides = array<i32>} : memref<32x256xf32, #tpu.memory_space<vmem>>, vector<32x256xf32>,
    } else {
    }
    return
  }
  func.func @transform_0(%arg0: i32, %arg1: i32) -> (i32, i32) {
    %c0_i32 = arith.constant 0 : i32
    %c0_i32_0 = arith.constant 0 : i32
    return %arg0, %c0_i32 : i32, i32
  }
  func.func @transform_1(%arg0: i32, %arg1: i32) -> (i32, i32) {
    %c0_i32 = arith.constant 0 : i32
    %c0_i32_0 = arith.constant 0 : i32
    %c0_i32_1 = arith.constant 0 : i32
    return %c0_i32, %c0_i32_0 : i32, i32
  }
  func.func @transform_2(%arg0: i32, %arg1: i32) -> (i32, i32) {
    %c0_i32 = arith.constant 0 : i32
    %c0_i32_0 = arith.constant 0 : i32
    return %c0_i32, %arg1 : i32, i32
  }
  func.func @transform_3(%arg0: i32, %arg1: i32) -> (i32, i32) {
    %c0_i32 = arith.constant 0 : i32
    %c0_i32_0 = arith.constant 0 : i32
    return %c0_i32, %arg1 : i32, i32
  }
  func.func @transform_4(%arg0: i32, %arg1: i32) -> (i32, i32) {
    %c0_i32 = arith.constant 0 : i32
    %c0_i32_0 = arith.constant 0 : i32
    return %c0_i32, %arg1 : i32, i32
  }
  func.func @transform_5(%arg0: i32, %arg1: i32) -> (i32, i32) {
    %c0_i32 = arith.constant 0 : i32
    %c0_i32_0 = arith.constant 0 : i32
    return %c0_i32, %arg1 : i32, i32
  }
  func.func @transform_6(%arg0: i32, %arg1: i32) -> (i32, i32) {
    %c0_i32 = arith.constant 0 : i32
    %c0_i32_0 = arith.constant 0 : i32
    return %arg1, %c0_i32 : i32, i32
  }
  func.func @transform_7(%arg0: i32, %arg1: i32) -> (i32, i32) {
    %c0_i32 = arith.constant 0 : i32
    %c0_i32_0 = arith.constant 0 : i32
    %c0_i32_1 = arith.constant 0 : i32
    return %c0_i32, %c0_i32_0 : i32, i32
  }
  func.func @transform_8(%arg0: i32, %arg1: i32) -> (i32, i32) {
    %c0_i32 = arith.constant 0 : i32
    %c0_i32_0 = arith.constant 0 : i32
    return %arg0, %c0_i32 : i32, i32
  }
}

</mosaic_0001>

<bundles_post_ra>
// kernel: decoder_layer.4
= control target key start
LH: loop header
LB: loop body
LE: loop exit
PB: predicated region body
PF: predicated region fallthrough
CT: control target
= control target key end

     0   :  { %15 = vsyncpa [#allocation7], 0  ;;  %s3971_s0 = inlined_call_operand.vmem [shape: f32[2,16,256], index: 0, kind: input, shape index: {}, may-alias: {0,1}]   ;;  %s3972_s1 = inlined_call_operand.vmem [shape: f32[2,16,256], index: 1, kind: input, shape index: {}, may-alias: {0,1}]   ;;  %s3973_s2 = inlined_call_operand.vmem [shape: f32[16,16], index: 2, kind: input, shape index: {}]   ;;  %s3974_s3 = inlined_call_operand.vmem [shape: f32[1,256], index: 3, kind: input, shape index: {}]   ;;  %s3975_s4 = inlined_call_operand.hbm [shape: bf16[256,256], index: 4, kind: input, shape index: {}]   ;;  %s3976_s5 = inlined_call_operand.vmem [shape: f32[1,256], index: 5, kind: input, shape index: {}]   ;;  %s3977_s6 = inlined_call_operand.hbm [shape: bf16[256,512], index: 6, kind: input, shape index: {}]   ;;  %s3978_s7 = inlined_call_operand.vmem [shape: f32[1,512], index: 7, kind: input, shape index: {}]   ;;  %s3979_s8 = inlined_call_operand.hbm [shape: bf16[256,256], index: 8, kind: input, shape index: {}]   ;;  %s3980_s9 = inlined_call_operand.vmem [shape: f32[1,256], index: 9, kind: input, shape index: {}]   ;;  %s3981_s10 = inlined_call_operand.vmem [shape: f32[2,16,256], index: 10, kind: output, shape index: {}]  }
   0x1   :  { %16 = vsyncpa [#allocation9], 0  ;;  %s3452_s13 = smov 0   ;;  %s3454_s14 = smov 0  }
   0x2   :  { %s3456_s15 = smov 0  }
   0x3 LB: > { %s3385_s16 = smov [#allocation8]   ;;  %s2674_s18 = sadd.s32 4294967295, %s3383_s15   ;;  %s3383_s15 = sphi %s3456_s15, %s22_s15   ;;  %s3379_s14 = sphi %s3454_s14, %s3987_s14   ;;  %s3375_s13 = sphi %s3452_s13, %s3986_s13  }
   0x4   : > { %s348_s17 = sshll.u32 %s3385_s16, 4  ;;  %p2676_p0 = scmp.ge.s32.totalorder %s3383_s15, 1  ;;  %s349_s17 = int_to_ptr.vmem [resolvable:$true] %s348_s17 }
   0x5   : > { %p305_p1 = scmp.lt.s32.totalorder %s3383_s15, 3  ;;  %p3470_p2 = scmp.eq.s32.totalorder %s2674_s18, 0 }
   0x6   : > { %s41_s22 = sadd.s32 1, %s3379_s14  ;;  %s3386_s24 = smov [#allocation6]  }
   0x7   : > { %p3474_p3 = pnand %p2676_p0, %p305_p1  ;;  %p3487_p6 = scmp.ge.s32.totalorder %s41_s22, 2 }
   0x8   : > { %s332_s25 = sshll.u32 %s3386_s24, 4  ;;  %s3286_s26 = scalar_lea.vmem %s349_s17, 8192  ;;  %s333_s25 = int_to_ptr.vmem [resolvable:$true] %s332_s25 }
   0x9   : > { %p2929_p4 = pneg %p3474_p3  ;;  %p3287_p8 = scmp.ne.s32.totalorder %s349_s17, %s3286_s26 }
   0xa   : > { %p3294_p11 = scmp.lt.s32.totalorder %s349_s17, %s349_s17  ;;  %p3295_p12 = scmp.lt.s32.totalorder %s3286_s26, %s3286_s26 }
   0xb   : > { %p3482_p5 = pnand %p3470_p2, %p2929_p4 }
   0xc   : > { %p3296_p13 = por %p3295_p12, %p3294_p11 }
   0xd   : > { %p3277_p7 = pneg %p3482_p5 }
   0xf   : > { %p3289_p9 = pnand %p3287_p8, %p3277_p7 }
  0x11   : > { %p3290_p10 = pneg %p3289_p9 }
  0x13   : > { %p3297_p0 = pnand %p3296_p13, %p3290_p10 }
  0x15   : > { %3300 = shalt.err (!%p3297_p0)
}
  0x16   : > { %s3387_s27 = smov 256   ;;  %s3388_s28 = smov 16  }
  0x17   : > { %2935 = dma.hbm_to_vmem [thread:$0]  (!%p3482_p5), %s3977_s6, 8192, %s349_s17, [#allocation9], %s3387_s27, %s3387_s27, %s3388_s28  }
  0x18   : > { %s3989_s22 = smov (%p3487_p6, %s41_s22), 0  ;;  %s3312_s11 = scalar_lea.vmem %s333_s25, 4096 }
  0x19   : > { %p3313_p1 = scmp.ne.s32.totalorder %s333_s25, %s3312_s11  ;;  %p3320_p9 = scmp.lt.s32.totalorder %s333_s25, %s333_s25 }
  0x1a   : > { %p3321_p10 = scmp.lt.s32.totalorder %s3312_s11, %s3312_s11 }
  0x1b   : > { %p3315_p4 = pnand %p3313_p1, %p3277_p7 }
  0x1c   : > { %p3322_p11 = por %p3321_p10, %p3320_p9 }
  0x1d   : > { %p3316_p8 = pneg %p3315_p4 }
  0x1f   : > { %p3323_p12 = pnand %p3322_p11, %p3316_p8 }
  0x21   : > { %3326 = shalt.err (!%p3323_p12)
}
  0x22   : > { %s3389_s12 = smov 128   ;;  %s3390_s16 = smov 8  }
  0x23   : > { %2932 = dma.hbm_to_vmem [thread:$0]  (!%p3482_p5), %s3975_s4, 4096, %s333_s25, [#allocation7], %s3389_s12, %s3389_s12, %s3390_s16  }
  0x24   : > { %s3391_s23 = smov [#allocation10]  }
  0x25   : > { %s364_s24 = sshll.u32 %s3391_s23, 4  ;;  %s365_s24 = int_to_ptr.vmem [resolvable:$true] %s364_s24 }
  0x26   : > { %s3338_s26 = scalar_lea.vmem %s365_s24, 4096  ;;  %p3346_p1 = scmp.lt.s32.totalorder %s365_s24, %s365_s24 }
  0x27   : > { %p3339_p6 = scmp.ne.s32.totalorder %s365_s24, %s3338_s26  ;;  %p3347_p4 = scmp.lt.s32.totalorder %s3338_s26, %s3338_s26 }
  0x29   : > { %p3341_p13 = pnand %p3339_p6, %p3277_p7  ;;  %p3348_p8 = por %p3347_p4, %p3346_p1 }
  0x2b   : > { %p3342_p0 = pneg %p3341_p13 }
  0x2d   : > { %p3349_p9 = pnand %p3348_p8, %p3342_p0 }
  0x2f   : > { %3352 = shalt.err (!%p3349_p9)
}
  0x30   : > { %2938 = dma.hbm_to_vmem [thread:$0]  (!%p3482_p5), %s3979_s8, 4096, %s365_s24, [#allocation9], %s3389_s12, %s3389_s12, %s3390_s16  }
  0x31   : > { %411 = sbr.rel (%p3474_p3) target bundleno = 1688 (0x698), region = 60 }
  0x36   : > { %3366 = dma.done.wait (%p3470_p2), [#allocation7], 4096  }
  0x37   : > { %3368 = vsyncadd (%p3470_p2), [#allocation7], 4294963200 }
  0x38   : > { %3370 = dma.done.wait (%p3470_p2), [#allocation9], 12288  }
  0x39   : > { %3372 = vsyncadd (%p3470_p2), [#allocation9], 4294955008  ;;  %p486_p7 = scmp.lt.s32.totalorder %s3375_s13, 1  ;;  %v3023_v17 = vld [vmem:[#allocation6 + $0x74] ss:$8 sps:$4 sm:$0xff]   ;;  %vm900_vm0 = vcmask 523264  }
  0x3a   : > { %v3025_v18 = vld [vmem:[#allocation6 + $0x70] ss:$8 sps:$4 sm:$0xff]   ;;  %v3026_v20 = vld [vmem:[#allocation8 + $0xe4] ss:$16 sps:$4 sm:$0xff]   ;;  %779 = vmatprep.subr.bf16.mxu0 %v3023_v17  ;;  %v3031_v25 = vld [vmem:[#allocation6 + $0x60] ss:$8 sps:$4 sm:$0xff]  }
  0x3b   : > { %s3991_s13 = smov (!%p486_p7, %s3375_s13), 1  ;;  %v3028_v22 = vld [vmem:[#allocation8 + $0xe0] ss:$16 sps:$4 sm:$0xff]   ;;  %780 = vmatpush1.bf16.msra.mxu0 %v3025_v18  ;;  %v3029_v24 = vld [vmem:[#allocation6 + $0x64] ss:$8 sps:$4 sm:$0xff]   ;;  %1358 = vmatprep.subr.bf16.mxu1 %v3026_v20  ;;  %vm3393_vm1 = vmmov 0  }
  0x3c   : > { %s3533_s21 = sshll.u32 %s3991_s13, 5  ;;  %v3032_v26 = vld [vmem:[#allocation8 + $0xc4] ss:$16 sps:$4 sm:$0xff]   ;;  %v3034_v27 = vld [vmem:[#allocation8 + $0xc0] ss:$16 sps:$4 sm:$0xff]   ;;  %1359 = vmatpush1.bf16.msra.mxu1 %v3028_v22  ;;  %781 = vmatprep.subr.bf16.mxu0 %v3029_v24  ;;  %vm874_vm2 = vcmask 519168  }
  0x3d   : > { %s3539_s29 = scalar_lea.vmem %s3971_s0, %s3533_s21  ;;  %s505_s19 = scalar_lea.vmem %s3972_s1, %s3533_s21  ;;  %v3035_v28 = vld [vmem:[#allocation6 + $0x54] ss:$8 sps:$4 sm:$0xff]   ;;  %1360 = vmatprep.subr.bf16.mxu1 %v3032_v26  ;;  %v3037_v29 = vld [vmem:[#allocation6 + $0x50] ss:$8 sps:$4 sm:$0xff]   ;;  %v3041_v31 = vld [vmem:[#allocation6 + $0x44] ss:$8 sps:$4 sm:$0xff]  }
  0x3e   : > { %v3545_v0 = vld [vmem:[%s505_s19] sm:$0xff]  ;;  %v3547_v1 = vld [vmem:[%s505_s19 + $0x8] sm:$0xff]  ;;  %v3561_v7 = vld [vmem:[%s505_s19 + $0x10] sm:$0xff]  ;;  %s3394_s27 = smov 64   ;;  %vm1707_vm3 = vcmask 130048   ;;  %vm883_vm4 = vcmask 7168   ;;  %s525_s16 = scalar_lea.vmem %s3981_s10, %s3533_s21 }
  0x3f   : > { %v3550_v2 = vld [vmem:[%s3539_s29] sm:$0xff]  ;;  %v914_v3 = vmul.f32 %v3545_v0, %v3545_v0  ;;  %v915_v4 = vmul.f32 %v3547_v1, %v3547_v1  ;;  %v3557_v5 = vld [vmem:[%s3539_s29 + $0x8] sm:$0xff]  ;;  %v3563_v8 = vld [vmem:[%s505_s19 + $0x18] sm:$0xff]  ;;  %v916_v10 = vmul.f32 %v3561_v7, %v3561_v7  ;;  %782 = vmatpush1.bf16.msra.mxu0 %v3031_v25 }
  0x40   : > { %v537_v6 = vmul.f32 %v3550_v2, %v3550_v2  ;;  %v538_v9 = vmul.f32 %v3557_v5, %v3557_v5  ;;  %v917_v11 = vmul.f32 %v3563_v8, %v3563_v8  ;;  %v3572_v12 = vld [vmem:[%s3539_s29 + $0x10] sm:$0xff]  ;;  %v3575_v13 = vld [vmem:[%s3539_s29 + $0x18] sm:$0xff]  ;;  %783 = vmatprep.subr.bf16.mxu0 %v3035_v28  ;;  %1361 = vmatpush1.bf16.msra.mxu1 %v3034_v27  ;;  %v3043_v34 = vld [vmem:[#allocation6 + $0x40] ss:$8 sps:$4 sm:$0xff]  }
  0x41   : > { %v918_v14 = vadd.f32 %v915_v4, %v914_v3  ;;  %v539_v15 = vmul.f32 %v3572_v12, %v3572_v12  ;;  %v540_v16 = vmul.f32 %v3575_v13, %v3575_v13  ;;  %v3038_v30 = vld [vmem:[#allocation8 + $0xa4] ss:$16 sps:$4 sm:$0xff]   ;;  %v3040_v32 = vld [vmem:[#allocation8 + $0xa0] ss:$16 sps:$4 sm:$0xff]   ;;  %v3121_v28 = vld [vmem:[#allocation8 + $0xec] ss:$16 sps:$4 sm:$0xff]  }
  0x42   : > { %v541_v19 = vadd.f32 %v538_v9, %v537_v6  ;;  %v921_v21 = vadd.f32 %v917_v11, %v916_v10  ;;  %1362 = vmatprep.subr.bf16.mxu1 %v3038_v30  ;;  %v3044_v33 = vld [vmem:[#allocation8 + $0x84] ss:$16 sps:$4 sm:$0xff]   ;;  %v3046_v36 = vld [vmem:[#allocation8 + $0x80] ss:$16 sps:$4 sm:$0xff]  }
  0x43   : > { %919 = vadd.xlane.f32.xlu1 %v918_v14  ;;  %v544_v23 = vadd.f32 %v540_v16, %v539_v15  ;;  %784 = vmatpush1.bf16.msra.mxu0 %v3037_v29  ;;  %v3047_v35 = vld [vmem:[#allocation6 + $0x34] ss:$8 sps:$4 sm:$0xff]   ;;  %v3049_v38 = vld [vmem:[#allocation6 + $0x30] ss:$8 sps:$4 sm:$0xff]   ;;  %v3053_v39 = vld [vmem:[#allocation6 + $0x24] ss:$8 sps:$4 sm:$0xff]  }
  0x44   : > { %542 = vadd.xlane.f32.xlu0 %v541_v19  ;;  %785 = vmatprep.subr.bf16.mxu0 %v3041_v31  ;;  %v3050_v37 = vld [vmem:[#allocation8 + $0x64] ss:$16 sps:$4 sm:$0xff]   ;;  %v3052_v40 = vld [vmem:[#allocation8 + $0x60] ss:$16 sps:$4 sm:$0xff]  }
  0x45   : > { %1363 = vmatpush1.bf16.msra.mxu1 %v3040_v32  ;;  %v3056_v41 = vld [vmem:[#allocation8 + $0x44] ss:$16 sps:$4 sm:$0xff]   ;;  %v3055_v42 = vld [vmem:[#allocation6 + $0x20] ss:$8 sps:$4 sm:$0xff]   ;;  %v3061_v46 = vld [vmem:[#allocation6 + $0x10] ss:$8 sps:$4 sm:$0xff]  }
  0x46   : > { %1364 = vmatprep.subr.bf16.mxu1 %v3044_v33  ;;  %v3059_v43 = vld [vmem:[#allocation6 + $0x14] ss:$8 sps:$4 sm:$0xff]   ;;  %v3058_v44 = vld [vmem:[#allocation8 + $0x40] ss:$16 sps:$4 sm:$0xff]   ;;  %v3065_v47 = vld [vmem:[#allocation6 + $0x4] ss:$8 sps:$4 sm:$0xff]  }
  0x47   : > { %922 = vadd.xlane.f32.xlu1 %v921_v21  ;;  %786 = vmatpush1.bf16.msra.mxu0 %v3043_v34  ;;  %v3062_v45 = vld [vmem:[#allocation8 + $0x24] ss:$16 sps:$4 sm:$0xff]   ;;  %v3064_v48 = vld [vmem:[#allocation8 + $0x20] ss:$16 sps:$4 sm:$0xff]  }
  0x48   : > { %545 = vadd.xlane.f32.xlu0 %v544_v23  ;;  %787 = vmatprep.subr.bf16.mxu0 %v3047_v35  ;;  %v3068_v49 = vld [vmem:[#allocation8 + $0x4] ss:$16 sps:$4 sm:$0xff]   ;;  %v3067_v50 = vld [vmem:[#allocation6] ss:$8 sps:$4 sm:$0xff]   ;;  %v3073_v54 = vld [vmem:[#allocation6 + $0xf0] ss:$8 sps:$4 sm:$0xff]  }
  0x49   : > { %1365 = vmatpush1.bf16.msra.mxu1 %v3046_v36  ;;  %v3071_v51 = vld [vmem:[#allocation6 + $0xf4] ss:$8 sps:$4 sm:$0xff]   ;;  %v3070_v52 = vld [vmem:[#allocation8] ss:$16 sps:$4 sm:$0xff]   ;;  %v3077_v55 = vld [vmem:[#allocation6 + $0xe4] ss:$8 sps:$4 sm:$0xff]  }
  0x4a   : > { %1366 = vmatprep.subr.bf16.mxu1 %v3050_v37  ;;  %v3074_v53 = vld [vmem:[#allocation8 + $0x1e4] ss:$16 sps:$4 sm:$0xff]   ;;  %v3076_v56 = vld [vmem:[#allocation8 + $0x1e0] ss:$16 sps:$4 sm:$0xff]  }
  0x4b   : > { %788 = vmatpush1.bf16.msra.mxu0 %v3049_v38  ;;  %v3080_v57 = vld [vmem:[#allocation8 + $0x1c4] ss:$16 sps:$4 sm:$0xff]   ;;  %v3079_v58 = vld [vmem:[#allocation6 + $0xe0] ss:$8 sps:$4 sm:$0xff]   ;;  %v3085_v62 = vld [vmem:[#allocation6 + $0xd0] ss:$8 sps:$4 sm:$0xff]  }
  0x4c   : > { %789 = vmatprep.subr.bf16.mxu0 %v3053_v39  ;;  %v3083_v59 = vld [vmem:[#allocation6 + $0xd4] ss:$8 sps:$4 sm:$0xff]   ;;  %v3082_v60 = vld [vmem:[#allocation8 + $0x1c0] ss:$16 sps:$4 sm:$0xff]   ;;  %v3089_v63 = vld [vmem:[#allocation6 + $0xc4] ss:$8 sps:$4 sm:$0xff]  }
  0x4d   : > { %1367 = vmatpush1.bf16.msra.mxu1 %v3052_v40  ;;  %v3086_v61 = vld [vmem:[#allocation8 + $0x1a4] ss:$16 sps:$4 sm:$0xff]   ;;  %v3088_v3 = vld [vmem:[#allocation8 + $0x1a0] ss:$16 sps:$4 sm:$0xff]  }
  0x4e   : > { %1368 = vmatprep.subr.bf16.mxu1 %v3056_v41  ;;  %v3091_v4 = vld [vmem:[#allocation6 + $0xc0] ss:$8 sps:$4 sm:$0xff]   ;;  %v3092_v6 = vld [vmem:[#allocation8 + $0x184] ss:$16 sps:$4 sm:$0xff]   ;;  %v3097_v11 = vld [vmem:[#allocation6 + $0xb0] ss:$8 sps:$4 sm:$0xff]   ;;  %v559_v41 = vlaneseq }
  0x4f   : > { %790 = vmatpush1.bf16.msra.mxu0 %v3055_v42  ;;  %v3094_v9 = vld [vmem:[#allocation8 + $0x180] ss:$16 sps:$4 sm:$0xff]   ;;  %v3095_v10 = vld [vmem:[#allocation6 + $0xb4] ss:$8 sps:$4 sm:$0xff]   ;;  %v3101_v16 = vld [vmem:[#allocation6 + $0xa4] ss:$8 sps:$4 sm:$0xff]  }
  0x50   : > { %791 = vmatprep.subr.bf16.mxu0 %v3059_v43  ;;  %v3098_v14 = vld [vmem:[#allocation8 + $0x164] ss:$16 sps:$4 sm:$0xff]   ;;  %v3100_v15 = vld [vmem:[#allocation8 + $0x160] ss:$16 sps:$4 sm:$0xff]   ;;  %v3581_v42 = vshrl.u32 %v559_v41, 7 }
  0x51   : > { %1369 = vmatpush1.bf16.msra.mxu1 %v3058_v44  ;;  %v3104_v17 = vld [vmem:[#allocation8 + $0x144] ss:$16 sps:$4 sm:$0xff]   ;;  %v3103_v18 = vld [vmem:[#allocation6 + $0xa0] ss:$8 sps:$4 sm:$0xff]   ;;  %v3109_v22 = vld [vmem:[#allocation6 + $0x90] ss:$8 sps:$4 sm:$0xff]  }
  0x52   : > { %1370 = vmatprep.subr.bf16.mxu1 %v3062_v45  ;;  %v3106_v19 = vld [vmem:[#allocation8 + $0x140] ss:$16 sps:$4 sm:$0xff]   ;;  %v3107_v20 = vld [vmem:[#allocation6 + $0x94] ss:$8 sps:$4 sm:$0xff]   ;;  %v3113_v24 = vld [vmem:[#allocation6 + $0x84] ss:$8 sps:$4 sm:$0xff]  }
  0x53   : > { %792 = vmatpush1.bf16.msra.mxu0 %v3061_v46  ;;  %v3110_v21 = vld [vmem:[#allocation8 + $0x124] ss:$16 sps:$4 sm:$0xff]   ;;  %v3112_v23 = vld [vmem:[#allocation8 + $0x120] ss:$16 sps:$4 sm:$0xff]   ;;  %v3587_v44 = vsub.s32 0, %v3581_v42  ;;  %v3590_v45 = vsub.s32 1, %v3581_v42 }
  0x54   : > { %793 = vmatprep.subr.bf16.mxu0 %v3065_v47  ;;  %v3116_v25 = vld [vmem:[#allocation8 + $0x104] ss:$16 sps:$4 sm:$0xff]   ;;  %v3115_v26 = vld [vmem:[#allocation6 + $0x80] ss:$8 sps:$4 sm:$0xff]  }
  0x55   : > { %1371 = vmatpush1.bf16.msra.mxu1 %v3064_v48  ;;  %v3118_v27 = vld [vmem:[#allocation8 + $0x100] ss:$16 sps:$4 sm:$0xff]   ;;  %v3164_v41 = vld [vmem:[#allocation8 + $0x108] ss:$16 sps:$4 sm:$0xff]  }
  0x56   : > { %1372 = vmatprep.subr.bf16.mxu1 %v3068_v49  ;;  %v909_v43 = vld [vmem:[%s3974_s3] sm:$0x3] }
  0x57   : > { %794 = vmatpush1.bf16.msra.mxu0 %v3067_v50  ;;  %v536_v48 = vld [vmem:[%s3974_s3] sm:$0x3]  ;;  %v939_v50 = vrot.slane %v909_v43, %v3587_v44 }
  0x58   : > { %795 = vmatprep.subr.bf16.mxu0 %v3071_v51  ;;  %v943_v51 = vrot.slane %v909_v43, %v3590_v45  ;;  %v3392_v43 = vmov 0.0  }
  0x59   : > { %1373 = vmatpush1.bf16.msra.mxu1 %v3070_v52  ;;  %901 = vst.msk [vmem:[#allocation5] sm:$0xff] %vm900_vm0, %v3392_v43  ;;  %902 = vst.msk [vmem:[#allocation5 + $0x8] sm:$0xff] %vm900_vm0, %v3392_v43 }
  0x5a   : > { %1374 = vmatprep.subr.bf16.mxu1 %v3074_v53  ;;  %903 = vst.msk [vmem:[#allocation5 + $0x10] sm:$0xff] %vm900_vm0, %v3392_v43  ;;  %904 = vst.msk [vmem:[#allocation5 + $0x18] sm:$0xff] %vm900_vm0, %v3392_v43 }
  0x5b   : > { %796 = vmatpush2.bf16.msra.mxu0 %v3073_v54  ;;  %905 = vst.msk [vmem:[#allocation5 + $0x20] sm:$0xff] %vm900_vm0, %v3392_v43  ;;  %906 = vst.msk [vmem:[#allocation5 + $0x28] sm:$0xff] %vm900_vm0, %v3392_v43 }
  0x5c   : > { %797 = vmatprep.subr.bf16.mxu0 %v3077_v55  ;;  %v562_v55 = vrot.slane %v536_v48, %v3587_v44  ;;  %907 = vst.msk [vmem:[#allocation5 + $0x30] sm:$0xff] %vm900_vm0, %v3392_v43  ;;  %908 = vst.msk [vmem:[#allocation5 + $0x38] sm:$0xff] %vm900_vm0, %v3392_v43 }
  0x5d   : > { %1375 = vmatpush2.bf16.msra.mxu1 %v3076_v56  ;;  %v566_v56 = vrot.slane %v536_v48, %v3590_v45  ;;  %v1016_v48 = vld [vmem:[%s3978_s7] sm:$0xf]  ;;  %892 = vst.msk [vmem:[#allocation4] sm:$0xff] %vm883_vm4, %v3392_v43  ;;  %893 = vst.msk [vmem:[#allocation4 + $0x8] sm:$0xff] %vm883_vm4, %v3392_v43 }
  0x5e   : > { %1376 = vmatprep.subr.bf16.mxu1 %v3080_v57  ;;  %894 = vst.msk [vmem:[#allocation4 + $0x10] sm:$0xff] %vm883_vm4, %v3392_v43  ;;  %895 = vst.msk [vmem:[#allocation4 + $0x18] sm:$0xff] %vm883_vm4, %v3392_v43 }
  0x5f   : > { %798 = vmatpush2.bf16.msra.mxu0 %v3079_v58  ;;  %896 = vst.msk [vmem:[#allocation4 + $0x20] sm:$0xff] %vm883_vm4, %v3392_v43  ;;  %897 = vst.msk [vmem:[#allocation4 + $0x28] sm:$0xff] %vm883_vm4, %v3392_v43 }
  0x60   : > { %799 = vmatprep.subr.bf16.mxu0 %v3083_v59  ;;  %898 = vst.msk [vmem:[#allocation4 + $0x30] sm:$0xff] %vm883_vm4, %v3392_v43  ;;  %899 = vst.msk [vmem:[#allocation4 + $0x38] sm:$0xff] %vm883_vm4, %v3392_v43 }
  0x61   : > { %1377 = vmatpush2.bf16.msra.mxu1 %v3082_v60 }
  0x62   : > { %1378 = vmatprep.subr.bf16.mxu1 %v3086_v61 }
  0x63   : > { %800 = vmatpush2.bf16.msra.mxu0 %v3085_v62 }
  0x64   : > { %801 = vmatprep.subr.bf16.mxu0 %v3089_v63 }
  0x65   : > { %1379 = vmatpush2.bf16.msra.mxu1 %v3088_v3 }
  0x66   : > { %1380 = vmatprep.subr.bf16.mxu1 %v3092_v6 }
  0x67   : > { %802 = vmatpush2.bf16.msra.mxu0 %v3091_v4 }
  0x68   : > { %803 = vmatprep.subr.bf16.mxu0 %v3095_v10 }
  0x69   : > { %1381 = vmatpush2.bf16.msra.mxu1 %v3094_v9 }
  0x6a   : > { %1382 = vmatprep.subr.bf16.mxu1 %v3098_v14  ;;  %v3119_v14 = vld [vmem:[#allocation8 + $0xe8] ss:$16 sps:$4 sm:$0xff]  }
  0x6b   : > { %804 = vmatpush2.bf16.msra.mxu0 %v3097_v11 }
  0x6c   : > { %805 = vmatprep.subr.bf16.mxu0 %v3101_v16  ;;  %v3130_v16 = vld [vmem:[#allocation8 + $0x8c] ss:$16 sps:$4 sm:$0xff]  }
  0x6d   : > { %1383 = vmatpush2.bf16.msra.mxu1 %v3100_v15  ;;  %v3124_v15 = vld [vmem:[#allocation8 + $0xcc] ss:$16 sps:$4 sm:$0xff]  }
  0x6e   : > { %1384 = vmatprep.subr.bf16.mxu1 %v3104_v17  ;;  %v3128_v17 = vld [vmem:[#allocation8 + $0x88] ss:$16 sps:$4 sm:$0xff]  }
  0x6f   : > { %806 = vmatpush2.bf16.msra.mxu0 %v3103_v18  ;;  %v3133_v18 = vld [vmem:[#allocation8 + $0x6c] ss:$16 sps:$4 sm:$0xff]  }
  0x70   : > { %807 = vmatprep.subr.bf16.mxu0 %v3107_v20  ;;  %v3136_v20 = vld [vmem:[#allocation8 + $0x4c] ss:$16 sps:$4 sm:$0xff]  }
  0x71   : > { %1385 = vmatpush2.bf16.msra.mxu1 %v3106_v19  ;;  %v3131_v19 = vld [vmem:[#allocation8 + $0x68] ss:$16 sps:$4 sm:$0xff]  }
  0x72   : > { %1386 = vmatprep.subr.bf16.mxu1 %v3110_v21  ;;  %v3134_v21 = vld [vmem:[#allocation8 + $0x48] ss:$16 sps:$4 sm:$0xff]  }
  0x73   : > { %808 = vmatpush2.bf16.msra.mxu0 %v3109_v22  ;;  %v3139_v22 = vld [vmem:[#allocation8 + $0x2c] ss:$16 sps:$4 sm:$0xff]  }
  0x74   : > { %809 = vmatprep.subr.bf16.mxu0 %v3113_v24  ;;  %v3142_v24 = vld [vmem:[#allocation8 + $0xc] ss:$16 sps:$4 sm:$0xff]  }
  0x75   : > { %1387 = vmatpush2.bf16.msra.mxu1 %v3112_v23  ;;  %v3137_v23 = vld [vmem:[#allocation8 + $0x28] ss:$16 sps:$4 sm:$0xff]  }
  0x76   : > { %1388 = vmatprep.subr.bf16.mxu1 %v3116_v25  ;;  %v3140_v25 = vld [vmem:[#allocation8 + $0x8] ss:$16 sps:$4 sm:$0xff]  }
  0x77   : > { %810 = vmatpush2.bf16.msra.mxu0 %v3115_v26  ;;  %v3145_v26 = vld [vmem:[#allocation8 + $0x1ec] ss:$16 sps:$4 sm:$0xff]  }
  0x78   : > { %1401 = vmatprep.subr.bf16.mxu0 %v3121_v28  ;;  %v3148_v28 = vld [vmem:[#allocation8 + $0x1cc] ss:$16 sps:$4 sm:$0xff]  }
  0x79   : > { %1389 = vmatpush2.bf16.msra.mxu1 %v3118_v27  ;;  %v3143_v27 = vld [vmem:[#allocation8 + $0x1e8] ss:$16 sps:$4 sm:$0xff]  }
  0x7a   : > { %2869 = vmatprep.subr.bf16.mxu1 %v3392_v43 }
  0xcc   : > { %v920_v29 = vpop.xlane.xlu1 %919 }
  0xcd   : > { %v925_v30 = vmul.f32 0.00390625, %v920_v29  ;;  %v543_v31 = vpop.xlane.xlu0 %542  ;;  %v3146_v29 = vld [vmem:[#allocation8 + $0x1c8] ss:$16 sps:$4 sm:$0xff]  }
  0xce   : > { %v548_v32 = vmul.f32 0.00390625, %v543_v31  ;;  %v3149_v31 = vld [vmem:[#allocation8 + $0x1a8] ss:$16 sps:$4 sm:$0xff]  }
  0xcf   : > { %v927_v33 = vadd.f32 1e-08, %v925_v30  ;;  %v3151_v30 = vld [vmem:[#allocation8 + $0x1ac] ss:$16 sps:$4 sm:$0xff]  }
  0xd0   : > { %v550_v34 = vadd.f32 1e-08, %v548_v32  ;;  %v923_v35 = vpop.xlane.xlu1 %922  ;;  %v3154_v32 = vld [vmem:[#allocation8 + $0x18c] ss:$16 sps:$4 sm:$0xff]  }
  0xd1   : > { %3219 = vrsqrt.f32 %v927_v33  ;;  %v926_v36 = vmul.f32 0.00390625, %v923_v35  ;;  %v546_v37 = vpop.xlane.xlu0 %545  ;;  %v3152_v33 = vld [vmem:[#allocation8 + $0x188] ss:$16 sps:$4 sm:$0xff]  }
  0xd2   : > { %3221 = vrsqrt.f32 %v550_v34  ;;  %v549_v38 = vmul.f32 0.00390625, %v546_v37  ;;  %v3157_v34 = vld [vmem:[#allocation8 + $0x16c] ss:$16 sps:$4 sm:$0xff]   ;;  %v3155_v35 = vld [vmem:[#allocation8 + $0x168] ss:$16 sps:$4 sm:$0xff]  }
  0xd3   : > { %v928_v39 = vadd.f32 1e-08, %v926_v36  ;;  %v3160_v36 = vld [vmem:[#allocation8 + $0x14c] ss:$16 sps:$4 sm:$0xff]   ;;  %v3158_v37 = vld [vmem:[#allocation8 + $0x148] ss:$16 sps:$4 sm:$0xff]  }
  0xd4   : > { %v551_v40 = vadd.f32 1e-08, %v549_v38  ;;  %v3163_v38 = vld [vmem:[#allocation8 + $0x12c] ss:$16 sps:$4 sm:$0xff]  }
  0xd5   : > { %3223 = vrsqrt.f32 %v928_v39  ;;  %v3161_v39 = vld [vmem:[#allocation8 + $0x128] ss:$16 sps:$4 sm:$0xff]  }
  0xd6   : > { %3225 = vrsqrt.f32 %v551_v40  ;;  %v3166_v40 = vld [vmem:[#allocation8 + $0x10c] ss:$16 sps:$4 sm:$0xff]  }
  0xde   : > { %v3220_v46 = vpop.eup %3219 }
  0xdf   : > { %v3222_v47 = vpop.eup %3221  ;;  %v932_v49 = vmul.f32 %v3220_v46, %v3547_v1  ;;  %v931_v52 = vmul.f32 %v3220_v46, %v3545_v0  ;;  %v607_v46 = vld [vmem:[%s3976_s5] sm:$0x3] }
  0xe0   : > { %v555_v54 = vmul.f32 %v3222_v47, %v3557_v5  ;;  %v554_v57 = vmul.f32 %v3222_v47, %v3550_v2  ;;  %v612_v47 = vrot.slane %v607_v46, %v3587_v44 }
  0xe1   : > { %v947_v60 = vmul.f32 %v943_v51, %v932_v49  ;;  %v946_v61 = vmul.f32 %v939_v50, %v931_v52  ;;  %v1021_v52 = vrot.slane %v1016_v48, %v3587_v44 }
  0xe2   : > { %v3224_v53 = vpop.eup %3223  ;;  %v570_v5 = vmul.f32 %v566_v56, %v555_v54  ;;  %v569_v6 = vmul.f32 %v562_v55, %v554_v57 }
  0xe3   : > { %v3226_v58 = vpop.eup %3225  ;;  %v934_v59 = vmul.f32 %v3224_v53, %v3563_v8  ;;  %v933_v1 = vmul.f32 %v3224_v53, %v3561_v7  ;;  %v3122_v7 = vld [vmem:[#allocation8 + $0xc8] ss:$16 sps:$4 sm:$0xff]  }
  0xe4   : > { %v557_v62 = vmul.f32 %v3226_v58, %v3575_v13  ;;  %v556_v0 = vmul.f32 %v3226_v58, %v3572_v12  ;;  %v3127_v12 = vld [vmem:[#allocation8 + $0xac] ss:$16 sps:$4 sm:$0xff]   ;;  %v3125_v13 = vld [vmem:[#allocation8 + $0xa8] ss:$16 sps:$4 sm:$0xff]  }
  0xe5   : > { %v949_v63 = vmul.f32 %v943_v51, %v934_v59  ;;  %v948_v3 = vmul.f32 %v939_v50, %v933_v1  ;;  %v616_v50 = vrot.slane %v607_v46, %v3590_v45 }
  0xe6   : > { %v572_v4 = vmul.f32 %v566_v56, %v557_v62  ;;  %v571_v9 = vmul.f32 %v562_v55, %v556_v0  ;;  %v1025_v56 = vrot.slane %v1016_v48, %v3590_v45 }
  0xe7   : > { %v951_v10 = vpack.c.bf16 %v949_v63, %v947_v60  ;;  %v3607_v11 = vpack.c.bf16 %v948_v3, %v946_v61 }
  0xe8   : > { %v574_v2 = vpack.c.bf16 %v572_v4, %v570_v5  ;;  %v573_v8 = vpack.c.bf16 %v571_v9, %v569_v6 }
  0xe9   : > { %1390 = vmatprep.mubr.bf16.mxu1 %v951_v10 }
  0xea   : > { %811 = vmatprep.mubr.bf16.mxu0 %v574_v2  ;;  %1391 = vmatmul.mubr.bf16.vlgmr.msra.gmra.mxu1 %v3607_v11 }
  0xeb   : > { %812 = vmatmul.mubr.bf16.vlgmr.msra.gmra.mxu0 %v573_v8  ;;  %2871 = vmatprep.mubr.msk.bf16.mxu1 %vm3393_vm1, %v3392_v43 }
  0xec   : > { %1402 = vmatpush1.bf16.msra.mxu0 %v3119_v14  ;;  %1433 = vmatprep.mubr.bf16.mxu0 %v951_v10 }
  0xed   : > { %1403 = vmatprep.subr.bf16.mxu0 %v3124_v15 }
  0xf0   : > { %1404 = vmatpush1.bf16.msra.mxu0 %v3122_v7 }
  0xf1   : > { %1405 = vmatprep.subr.bf16.mxu0 %v3127_v12 }
  0xf4   : > { %1406 = vmatpush1.bf16.msra.mxu0 %v3125_v13 }
  0xf5   : > { %1407 = vmatprep.subr.bf16.mxu0 %v3130_v16 }
  0xf8   : > { %1408 = vmatpush1.bf16.msra.mxu0 %v3128_v17 }
  0xf9   : > { %1409 = vmatprep.subr.bf16.mxu0 %v3133_v18 }
  0xfc   : > { %1410 = vmatpush1.bf16.msra.mxu0 %v3131_v19 }
  0xfd   : > { %1411 = vmatprep.subr.bf16.mxu0 %v3136_v20  ;;  %v1028_v20 = vsub.s32 2, %v3581_v42 }
 0x100   : > { %1412 = vmatpush1.bf16.msra.mxu0 %v3134_v21  ;;  %v1032_v21 = vsub.s32 3, %v3581_v42 }
 0x101   : > { %1413 = vmatprep.subr.bf16.mxu0 %v3139_v22 }
 0x104   : > { %1414 = vmatpush1.bf16.msra.mxu0 %v3137_v23  ;;  %v1029_v23 = vrot.slane %v1016_v48, %v1028_v20 }
 0x105   : > { %1415 = vmatprep.subr.bf16.mxu0 %v3142_v24 }
 0x108   : > { %1416 = vmatpush1.bf16.msra.mxu0 %v3140_v25  ;;  %v1033_v25 = vrot.slane %v1016_v48, %v1032_v21 }
 0x109   : > { %1417 = vmatprep.subr.bf16.mxu0 %v3145_v26 }
 0x10c   : > { %1418 = vmatpush2.bf16.msra.mxu0 %v3143_v27 }
 0x10d   : > { %1419 = vmatprep.subr.bf16.mxu0 %v3148_v28 }
 0x110   : > { %1420 = vmatpush2.bf16.msra.mxu0 %v3146_v29 }
 0x111   : > { %1421 = vmatprep.subr.bf16.mxu0 %v3151_v30 }
 0x114   : > { %1422 = vmatpush2.bf16.msra.mxu0 %v3149_v31 }
 0x115   : > { %1423 = vmatprep.subr.bf16.mxu0 %v3154_v32 }
 0x118   : > { %1424 = vmatpush2.bf16.msra.mxu0 %v3152_v33 }
 0x119   : > { %1425 = vmatprep.subr.bf16.mxu0 %v3157_v34 }
 0x11c   : > { %1426 = vmatpush2.bf16.msra.mxu0 %v3155_v35 }
 0x11d   : > { %1427 = vmatprep.subr.bf16.mxu0 %v3160_v36 }
 0x120   : > { %1428 = vmatpush2.bf16.msra.mxu0 %v3158_v37 }
 0x121   : > { %1429 = vmatprep.subr.bf16.mxu0 %v3163_v38 }
 0x124   : > { %1430 = vmatpush2.bf16.msra.mxu0 %v3161_v39 }
 0x125   : > { %1431 = vmatprep.subr.bf16.mxu0 %v3166_v40 }
 0x128   : > { %1432 = vmatpush2.bf16.msra.mxu0 %v3164_v41 }
 0x12b   : > { %1434 = vmatmul.mubr.bf16.vlgmr.msra.gmra.mxu0 %v3607_v11 }
 0x1aa   : > { %v1392_v49 = vpop.f32.mrf.mxu1 }
 0x1ab   : > { %v813_v51 = vpop.f32.mrf.mxu0  ;;  %v1393_v60 = vadd.f32 %v1392_v49, %v1021_v52 }
 0x1ac   : > { %v814_v53 = vadd.f32 %v813_v51, %v612_v47  ;;  %v1394_v54 = vpop.f32.mrf.mxu1 }
 0x1ad   : > { %v815_v55 = vpop.f32.mrf.mxu0  ;;  %v3640_v5 = vadd.f32 %v1394_v54, %v1025_v56 }
 0x1ae   : > { %v822_v57 = vmul.f32 0.125, %v814_v53  ;;  %v816_v58 = vadd.f32 %v815_v55, %v616_v50  ;;  %v1396_v59 = vpop.f32.mrf.mxu1 }
 0x1af   : > { %v817_v1 = vpop.f32.mrf.mxu0  ;;  %v1397_v61 = vadd.f32 %v1396_v59, %v1021_v52 }
 0x1b0   : > { %v2845_v62 = vpack.c.bf16 %v822_v57, %v822_v57  ;;  %v823_v0 = vmul.f32 0.125, %v816_v58  ;;  %v818_v63 = vadd.f32 %v817_v1, %v612_v47  ;;  %v1398_v3 = vpop.f32.mrf.mxu1 }
 0x1b1   : > { %v2986_v4 = vpack.i.bf16 %v1397_v61, %v1393_v60  ;;  %v1484_v6 = vpack.c.bf16 %v1397_v61, %v1393_v60  ;;  %v819_v9 = vpop.f32.mrf.mxu0  ;;  %v3642_v10 = vadd.f32 %v1398_v3, %v1025_v56  ;;  %v1488_v61 = vld [vmem:[%s3973_s2] sm:$0xff]  ;;  %v1489_v3 = vld [vmem:[%s3973_s2 + $0x8] sm:$0xff] }
 0x1b2   : > { %875 = vst.msk [vmem:[#allocation2] sm:$0xf] %vm874_vm2, %v2845_v62  ;;  %v2849_v11 = vpack.c.bf16 %v823_v0, %v823_v0  ;;  %v824_v2 = vmul.f32 0.125, %v818_v63  ;;  %v820_v14 = vadd.f32 %v819_v9, %v616_v50 }
 0x1b3   : > { %v1486_v8 = vpack.c.bf16 %v3642_v10, %v3640_v5  ;;  %2987 = vrot.lane.b32.xlu1 %v2986_v4, %s3394_s27  ;;  %v1500_v15 = vsel %vm900_vm0, %v1484_v6, 0  ;;  %v2996_v18 = vpack.i.bf16 %v3642_v10, %v3640_v5 }
 0x1b4   : > { %879 = vst.msk [vmem:[#allocation2 + $0x10] sm:$0xf] %vm874_vm2, %v2849_v11  ;;  %v2846_v7 = vpack.c.bf16 %v824_v2, %v824_v2  ;;  %v2981_v12 = vpack.i.bf16 %v824_v2, %v822_v57  ;;  %v825_v13 = vmul.f32 0.125, %v820_v14  ;;  %2870 = vmatpush3.bf16.xpose.msra.mxu1 %v1500_v15  ;;  %v3395_v11 = vmov -1e+30  }
 0x1b5   : > { %2875 = vmatprep.subr.bf16.mxu1 %v3392_v43  ;;  %v1604_v56 = vsel %vm900_vm0, %v1486_v8, 0  ;;  %884 = vst.msk [vmem:[#allocation3] sm:$0xff] %vm883_vm4, %v3395_v11  ;;  %885 = vst.msk [vmem:[#allocation3 + $0x8] sm:$0xff] %vm883_vm4, %v3395_v11  ;;  %v3396_v2 = vmov 0  }
 0x1b6   : > { %876 = vst.msk [vmem:[#allocation2 + $0x4] sm:$0xf] %vm874_vm2, %v2846_v7  ;;  %v2850_v16 = vpack.c.bf16 %v825_v13, %v825_v13  ;;  %v2991_v17 = vpack.i.bf16 %v825_v13, %v823_v0  ;;  %2982 = vrot.lane.b32.xlu0 %v2981_v12, %s3394_s27  ;;  %3002 = vset.pattern.permute.xlu1 %v3396_v2 }
 0x1b7   : > { %886 = vst.msk [vmem:[#allocation3 + $0x10] sm:$0xff] %vm883_vm4, %v3395_v11  ;;  %887 = vst.msk [vmem:[#allocation3 + $0x18] sm:$0xff] %vm883_vm4, %v3395_v11  ;;  %3001 = vset.pattern.permute.xlu0 %v3396_v2 }
 0x1b8   : > { %880 = vst.msk [vmem:[#allocation2 + $0x14] sm:$0xf] %vm874_vm2, %v2850_v16  ;;  %2992 = vrot.lane.b32.xlu1 %v2991_v17, %s3394_s27 }
 0x1b9   : > { %888 = vst.msk [vmem:[#allocation3 + $0x20] sm:$0xff] %vm883_vm4, %v3395_v11  ;;  %889 = vst.msk [vmem:[#allocation3 + $0x28] sm:$0xff] %vm883_vm4, %v3395_v11 }
 0x1ba   : > { %890 = vst.msk [vmem:[#allocation3 + $0x30] sm:$0xff] %vm883_vm4, %v3395_v11  ;;  %891 = vst.msk [vmem:[#allocation3 + $0x38] sm:$0xff] %vm883_vm4, %v3395_v11 }
 0x1bc   : > { %2997 = vrot.lane.b32.xlu1 %v2996_v18, %s3394_s27 }
 0x1bd   : > { %v3167_v19 = vld [vmem:[#allocation2] sm:$0xff]  }
 0x1be   : > { %2872 = vmatmul.mubr.msk.bf16.vlgmr.msra.gmra.mxu1 %vm900_vm0, %v3167_v19 }
 0x1bf   : > { %2877 = vmatprep.mubr.msk.bf16.mxu1 %vm3393_vm1, %v3392_v43  ;;  %v3169_v58 = vld [vmem:[#allocation2 + $0x10] sm:$0xff]  }
 0x1c1   : > { %v3827_v2 = vld [vmem:[#allocation3 + $0x38] sm:$0xff] }
 0x1eb   : > { %v1435_v22 = vpop.f32.mrf.mxu0 }
 0x1ec   : > { %v3663_v27 = vadd.f32 %v1435_v22, %v1029_v23 }
 0x1ed   : > { %v1437_v24 = vpop.f32.mrf.mxu0 }
 0x1ee   : > { %v3667_v30 = vadd.f32 %v1437_v24, %v1033_v25 }
 0x1ef   : > { %v1439_v26 = vpop.f32.mrf.mxu0 }
 0x1f0   : > { %v3665_v28 = vadd.f32 %v1439_v26, %v1029_v23 }
 0x1f1   : > { %v1441_v29 = vpop.f32.mrf.mxu0 }
 0x1f2   : > { %v3003_v31 = vpack.i.bf16 %v3665_v28, %v3663_v27  ;;  %v3671_v32 = vadd.f32 %v1441_v29, %v1033_v25  ;;  %v1945_v1 = vpack.c.bf16 %v3665_v28, %v3663_v27 }
 0x1f4   : > { %v1947_v42 = vpack.c.bf16 %v3671_v32, %v3667_v30 }
 0x225   : > { %v2988_v33 = vpop.permute.xlu1 %2987 }
 0x226   : > { %v2990_v34 = vunpack.i.h.bf16 %v2988_v33  ;;  %v2989_v35 = vunpack.i.l.bf16 %v2988_v33 }
 0x228   : > { %v1485_v36 = vpack.c.bf16 %v2990_v34, %v2989_v35  ;;  %v2983_v37 = vpop.permute.xlu0 %2982 }
 0x229   : > { %v2985_v38 = vunpack.i.h.bf16 %v2983_v37  ;;  %v2984_v39 = vunpack.i.l.bf16 %v2983_v37 }
 0x22a   : > { %v2993_v40 = vpop.permute.xlu1 %2992  ;;  %v1552_v41 = vsel %vm900_vm0, %v1485_v36, 0  ;;  %v3755_v36 = vld [vmem:[#allocation3] sm:$0xff] }
 0x22b   : > { %v2848_v46 = vpack.c.bf16 %v2985_v38, %v2985_v38  ;;  %v2847_v47 = vpack.c.bf16 %v2984_v39, %v2984_v39  ;;  %v2995_v48 = vunpack.i.h.bf16 %v2993_v40  ;;  %v2994_v49 = vunpack.i.l.bf16 %v2993_v40  ;;  %2876 = vmatpush3.bf16.xpose.msra.mxu1 %v1552_v41 }
 0x22c   : > { %2881 = vmatprep.subr.bf16.mxu1 %v3392_v43 }
 0x22d   : > { %878 = vst.msk [vmem:[#allocation2 + $0xc] sm:$0xf] %vm874_vm2, %v2848_v46  ;;  %877 = vst.msk [vmem:[#allocation2 + $0x8] sm:$0xf] %vm874_vm2, %v2847_v47  ;;  %v2852_v50 = vpack.c.bf16 %v2995_v48, %v2995_v48  ;;  %v2851_v51 = vpack.c.bf16 %v2994_v49, %v2994_v49  ;;  %v3764_v46 = vld [vmem:[#allocation3 + $0x8] sm:$0xff] }
 0x22e   : > { %v2998_v52 = vpop.permute.xlu1 %2997 }
 0x22f   : > { %882 = vst.msk [vmem:[#allocation2 + $0x1c] sm:$0xf] %vm874_vm2, %v2852_v50  ;;  %881 = vst.msk [vmem:[#allocation2 + $0x18] sm:$0xf] %vm874_vm2, %v2851_v51  ;;  %v3000_v54 = vunpack.i.h.bf16 %v2998_v52  ;;  %v2999_v55 = vunpack.i.l.bf16 %v2998_v52  ;;  %v3008_v51 = vpack.i.bf16 %v3671_v32, %v3667_v30  ;;  %v3782_v52 = vld [vmem:[#allocation3 + $0x10] sm:$0xff] }
 0x231   : > { %v1487_v57 = vpack.c.bf16 %v3000_v54, %v2999_v55  ;;  %v3787_v55 = vld [vmem:[#allocation3 + $0x18] sm:$0xff] }
 0x233   : > { %v1656_v59 = vsel %vm900_vm0, %v1487_v57, 0 }
 0x234   : > { %v3168_v53 = vld [vmem:[#allocation2 + $0x8] sm:$0xff]  }
 0x235   : > { %2878 = vmatmul.mubr.msk.bf16.vlgmr.msra.gmra.mxu1 %vm900_vm0, %v3168_v53 }
 0x236   : > { %2882 = vmatpush3.bf16.xpose.msra.mxu1 %v1604_v56  ;;  %2883 = vmatprep.mubr.msk.bf16.mxu1 %vm3393_vm1, %v3392_v43  ;;  %v3170_v60 = vld [vmem:[#allocation2 + $0x18] sm:$0xff]  }
 0x237   : > { %2887 = vmatprep.subr.bf16.mxu1 %v3392_v43 }
 0x23d   : > { %2884 = vmatmul.mubr.msk.bf16.vlgmr.msra.gmra.mxu1 %vm900_vm0, %v3169_v58 }
 0x23e   : > { %2888 = vmatpush3.bf16.xpose.msra.mxu1 %v1656_v59  ;;  %2889 = vmatprep.mubr.msk.bf16.mxu1 %vm3393_vm1, %v3392_v43  ;;  %v3797_v59 = vld [vmem:[#allocation3 + $0x20] sm:$0xff] }
 0x23f   : > { %2893 = vmatprep.subr.bf16.mxu1 %v3392_v43 }
 0x245   : > { %2890 = vmatmul.mubr.msk.bf16.vlgmr.msra.gmra.mxu1 %vm900_vm0, %v3170_v60 }
 0x246   : > { %2894 = vmatpush3.bf16.msra.mxu1 %v1945_v1  ;;  %2895 = vmatprep.mubr.msk.bf16.mxu1 %vm3393_vm1, %v3392_v43 }
 0x247   : > { %2899 = vmatprep.subr.bf16.mxu1 %v3392_v43 }
 0x27e   : > { %v1536_v62 = vpop.f32.mrf.mxu1 }
 0x27f   : > { %v3700_v0 = vadd.f32 %v1536_v62, %v1488_v61  ;;  %v3807_v62 = vld [vmem:[#allocation3 + $0x28] sm:$0xff] }
 0x280   : > { %v2873_v63 = vpop.f32.mrf.mxu1 }
 0x281   : > { %v1708_v5 = vsel %vm1707_vm3, %v3700_v0, -inf }
 0x282   : > { %1709 = vmax.xlane.f32.xlu0 %v1708_v5  ;;  %v1539_v4 = vpop.f32.mrf.mxu1 }
 0x283   : > { %v3707_v6 = vadd.f32 %v1539_v4, %v1489_v3  ;;  %v3817_v4 = vld [vmem:[#allocation3 + $0x30] sm:$0xff] }
 0x284   : > { %v2874_v9 = vpop.f32.mrf.mxu1 }
 0x285   : > { %v1711_v10 = vsel %vm1707_vm3, %v3707_v6, -inf }
 0x286   : > { %1712 = vmax.xlane.f32.xlu1 %v1711_v10 }
 0x2f5   : > { %v1588_v14 = vpop.f32.mrf.mxu1 }
 0x2f6   : > { %v3735_v8 = vadd.f32 %v1588_v14, %v1488_v61 }
 0x2f7   : > { %v2879_v15 = vpop.f32.mrf.mxu1 }
 0x2f8   : > { %v1714_v7 = vsel %vm1707_vm3, %v3735_v8, -inf }
 0x2f9   : > { %1715 = vmax.xlane.f32.xlu0 %v1714_v7  ;;  %v1591_v12 = vpop.f32.mrf.mxu1 }
 0x2fa   : > { %v3739_v13 = vadd.f32 %v1591_v12, %v1489_v3 }
 0x2fb   : > { %v2880_v16 = vpop.f32.mrf.mxu1 }
 0x2fc   : > { %v1717_v17 = vsel %vm1707_vm3, %v3739_v13, -inf }
 0x2fd   : > { %1718 = vmax.xlane.f32.xlu0 %v1717_v17  ;;  %v1640_v18 = vpop.f32.mrf.mxu1 }
 0x2fe   : > { %v3743_v19 = vadd.f32 %v1640_v18, %v1488_v61 }
 0x2ff   : > { %v2885_v20 = vpop.f32.mrf.mxu1 }
 0x300   : > { %v1720_v21 = vsel %vm1707_vm3, %v3743_v19, -inf }
 0x301   : > { %1721 = vmax.xlane.f32.xlu0 %v1720_v21  ;;  %v1643_v22 = vpop.f32.mrf.mxu1 }
 0x302   : > { %v3747_v23 = vadd.f32 %v1643_v22, %v1489_v3 }
 0x303   : > { %v2886_v24 = vpop.f32.mrf.mxu1 }
 0x304   : > { %v1723_v25 = vsel %vm1707_vm3, %v3747_v23, -inf }
 0x305   : > { %1724 = vmax.xlane.f32.xlu1 %v1723_v25  ;;  %v1692_v26 = vpop.f32.mrf.mxu1 }
 0x306   : > { %v3751_v29 = vadd.f32 %v1692_v26, %v1488_v61 }
 0x307   : > { %v2891_v33 = vpop.f32.mrf.mxu1 }
 0x308   : > { %v1726_v34 = vsel %vm1707_vm3, %v3751_v29, -inf }
 0x309   : > { %1727 = vmax.xlane.f32.xlu0 %v1726_v34  ;;  %v1695_v35 = vpop.f32.mrf.mxu1 }
 0x30a   : > { %v3757_v37 = vadd.f32 %v1695_v35, %v1489_v3 }
 0x30b   : > { %v1710_v38 = vpop.xlane.xlu0 %1709  ;;  %v2892_v39 = vpop.f32.mrf.mxu1 }
 0x30c   : > { %v3760_v40 = vmax.f32 %v3755_v36, %v1710_v38  ;;  %v1729_v41 = vsel %vm1707_vm3, %v3757_v37, -inf }
 0x30d   : > { %1730 = vmax.xlane.f32.xlu1 %v1729_v41 }
 0x30e   : > { %v1740_v47 = vsub.f32 %v3755_v36, %v3760_v40  ;;  %2141 = vst.msk [vmem:[#allocation3] sm:$0xff] %vm883_vm4, %v3760_v40  ;;  %v1833_v36 = vld [vmem:[#allocation4 + $0x28] sm:$0xff] }
 0x30f   : > { %v1713_v48 = vpop.xlane.xlu1 %1712 }
 0x310   : > { %v3771_v49 = vmax.f32 %v3764_v46, %v1713_v48 }
 0x312   : > { %v1741_v50 = vsub.f32 %v3764_v46, %v3771_v49  ;;  %2142 = vst.msk [vmem:[#allocation3 + $0x8] sm:$0xff] %vm883_vm4, %v3771_v49  ;;  %v1831_v46 = vld [vmem:[#allocation4 + $0x18] sm:$0xff] }
 0x31e   : > { %1771 = vperm.xlu1 %3002, %v3771_v49  }
 0x31f   : > { %1766 = vperm.xlu0 %3001, %v3760_v40  }
 0x323   : > { %3009 = vrot.lane.b32.xlu0 %v3008_v51, %s3394_s27 }
 0x382   : > { %v1716_v53 = vpop.xlane.xlu0 %1715 }
 0x383   : > { %v3785_v54 = vmax.f32 %v3782_v52, %v1716_v53 }
 0x385   : > { %v1742_v56 = vsub.f32 %v3782_v52, %v3785_v54  ;;  %2143 = vst.msk [vmem:[#allocation3 + $0x10] sm:$0xff] %vm883_vm4, %v3785_v54  ;;  %1776 = vperm.xlu1 %3002, %v3785_v54   ;;  %v1748_v52 = vmul.f32 1.442695, %v1740_v47  ;;  %v1834_v54 = vld [vmem:[#allocation4 + $0x30] sm:$0xff] }
 0x386   : > { %v1719_v57 = vpop.xlane.xlu0 %1718 }
 0x387   : > { %v3795_v58 = vmax.f32 %v3787_v55, %v1719_v57 }
 0x389   : > { %v1743_v60 = vsub.f32 %v3787_v55, %v3795_v58  ;;  %2144 = vst.msk [vmem:[#allocation3 + $0x18] sm:$0xff] %vm883_vm4, %v3795_v58  ;;  %1781 = vperm.xlu1 %3002, %v3795_v58  }
 0x38a   : > { %v1722_v1 = vpop.xlane.xlu0 %1721 }
 0x38b   : > { %v3805_v61 = vmax.f32 %v3797_v59, %v1722_v1 }
 0x38d   : > { %v1744_v63 = vsub.f32 %v3797_v59, %v3805_v61  ;;  %2145 = vst.msk [vmem:[#allocation3 + $0x20] sm:$0xff] %vm883_vm4, %v3805_v61  ;;  %1786 = vperm.xlu1 %3002, %v3805_v61  }
 0x38e   : > { %v1725_v3 = vpop.xlane.xlu1 %1724 }
 0x38f   : > { %v3815_v5 = vmax.f32 %v3807_v62, %v1725_v3 }
 0x391   : > { %v1745_v9 = vsub.f32 %v3807_v62, %v3815_v5  ;;  %2146 = vst.msk [vmem:[#allocation3 + $0x28] sm:$0xff] %vm883_vm4, %v3815_v5  ;;  %1791 = vperm.xlu1 %3002, %v3815_v5  }
 0x392   : > { %v1728_v10 = vpop.xlane.xlu0 %1727 }
 0x393   : > { %v3825_v11 = vmax.f32 %v3817_v4, %v1728_v10 }
 0x395   : > { %v1746_v14 = vsub.f32 %v3817_v4, %v3825_v11  ;;  %2147 = vst.msk [vmem:[#allocation3 + $0x30] sm:$0xff] %vm883_vm4, %v3825_v11  ;;  %1796 = vperm.xlu1 %3002, %v3825_v11  }
 0x396   : > { %v1731_v15 = vpop.xlane.xlu1 %1730 }
 0x397   : > { %v3835_v7 = vmax.f32 %v3827_v2, %v1731_v15 }
 0x399   : > { %v1747_v12 = vsub.f32 %v3827_v2, %v3835_v7  ;;  %2148 = vst.msk [vmem:[#allocation3 + $0x38] sm:$0xff] %vm883_vm4, %v3835_v7  ;;  %1801 = vperm.xlu1 %3002, %v3835_v7   ;;  %v1752_v2 = vmul.f32 1.442695, %v1742_v56  ;;  %v1758_v7 = vmul.f32 1.442695, %v1745_v9  ;;  %v1830_v9 = vld [vmem:[#allocation4 + $0x10] sm:$0xff] }
 0x39a   : > { %v1767_v16 = vpop.permute.xlu0 %1766  ;;  %v1772_v17 = vpop.permute.xlu1 %1771 }
 0x39b   : > { %v1804_v18 = vsub.f32 %v3700_v0, %v1767_v16  ;;  %v1805_v20 = vsub.f32 %v3707_v6, %v1772_v17  ;;  %v1762_v4 = vmul.f32 1.442695, %v1747_v12  ;;  %v1750_v12 = vmul.f32 1.442695, %v1741_v50 }
 0x39d   : > { %v1812_v21 = vmul.f32 1.442695, %v1804_v18  ;;  %v1814_v22 = vmul.f32 1.442695, %v1805_v20  ;;  %3004 = vrot.lane.b32.xlu1 %v3003_v31, %s3394_s27 }
 0x39f   : > { %3227 = vpow2.f32 %v1812_v21 }
 0x3a0   : > { %3229 = vpow2.f32 %v1814_v22 }
 0x3ac   : > { %v3848_v24 = vpop.eup %3227 }
 0x3ad   : > { %v3850_v25 = vpop.eup %3229 }
 0x3ae   : > { %v1941_v26 = vpack.c.bf16 %v3850_v25, %v3848_v24 }
 0x3b0   : > { %2896 = vmatmul.mubr.msk.bf16.vlgmr.msra.gmra.mxu1 %vm1707_vm3, %v1941_v26 }
 0x3b1   : > { %2901 = vmatprep.mubr.msk.bf16.mxu1 %vm3393_vm1, %v3392_v43 }
 0x400   : > { %v1777_v0 = vpop.permute.xlu1 %1776 }
 0x401   : > { %v1806_v27 = vsub.f32 %v3735_v8, %v1777_v0 }
 0x403   : > { %v1816_v34 = vmul.f32 1.442695, %v1806_v27 }
 0x404   : > { %v1782_v6 = vpop.permute.xlu1 %1781 }
 0x405   : > { %v1807_v33 = vsub.f32 %v3739_v13, %v1782_v6 }
 0x407   : > { %v1818_v31 = vmul.f32 1.442695, %v1807_v33 }
 0x408   : > { %v1787_v28 = vpop.permute.xlu1 %1786 }
 0x409   : > { %3231 = vpow2.f32 %v1818_v31  ;;  %v1808_v39 = vsub.f32 %v3743_v19, %v1787_v28  ;;  %v1760_v28 = vmul.f32 1.442695, %v1746_v14  ;;  %v1847_v31 = vsel %vm1707_vm3, %v3850_v25, 0.0 }
 0x40a   : > { %3233 = vpow2.f32 %v1816_v34 }
 0x40b   : > { %v1820_v57 = vmul.f32 1.442695, %v1808_v39 }
 0x40c   : > { %v1792_v35 = vpop.permute.xlu1 %1791 }
 0x40d   : > { %v1809_v38 = vsub.f32 %v3747_v23, %v1792_v35 }
 0x40f   : > { %v1822_v51 = vmul.f32 1.442695, %v1809_v38 }
 0x410   : > { %v1797_v41 = vpop.permute.xlu1 %1796 }
 0x411   : > { %v1810_v48 = vsub.f32 %v3751_v29, %v1797_v41  ;;  %v3010_v29 = vpop.permute.xlu0 %3009 }
 0x412   : > { %v3012_v21 = vunpack.i.h.bf16 %v3010_v29  ;;  %v3011_v22 = vunpack.i.l.bf16 %v3010_v29 }
 0x413   : > { %v1824_v53 = vmul.f32 1.442695, %v1810_v48  ;;  %v1756_v48 = vmul.f32 1.442695, %v1744_v63 }
 0x414   : > { %v1802_v1 = vpop.permute.xlu1 %1801  ;;  %v1948_v32 = vpack.c.bf16 %v3012_v21, %v3011_v22 }
 0x415   : > { %3235 = vpow2.f32 %v1824_v53  ;;  %v1811_v8 = vsub.f32 %v3757_v37, %v1802_v1 }
 0x416   : > { %3237 = vpow2.f32 %v1822_v51  ;;  %v3232_v15 = vpop.eup %3231 }
 0x417   : > { %v1826_v13 = vmul.f32 1.442695, %v1811_v8  ;;  %3239 = vpow2.f32 %v1820_v57  ;;  %v3234_v19 = vpop.eup %3233  ;;  %v1853_v6 = vsel %vm1707_vm3, %v3232_v15, 0.0 }
 0x418   : > { %v3005_v3 = vpop.permute.xlu1 %3004  ;;  %v1942_v17 = vpack.c.bf16 %v3232_v15, %v3234_v19  ;;  %v1850_v27 = vsel %vm1707_vm3, %v3234_v19, 0.0 }
 0x419   : > { %3241 = vpow2.f32 %v1826_v13  ;;  %v3007_v10 = vunpack.i.h.bf16 %v3005_v3  ;;  %v3006_v23 = vunpack.i.l.bf16 %v3005_v3  ;;  %v1832_v3 = vld [vmem:[#allocation4 + $0x20] sm:$0xff] }
 0x41a   : > { %3243 = vpow2.f32 %v1760_v28 }
 0x41b   : > { %v1946_v16 = vpack.c.bf16 %v3007_v10, %v3006_v23  ;;  %3245 = vpow2.f32 %v1762_v4  ;;  %v1829_v10 = vld [vmem:[#allocation4 + $0x8] sm:$0xff] }
 0x41c   : > { %v3174_v4 = vld [vmem:[#allocation10 + $0x60] ss:$8 sps:$4 sm:$0xff]  }
 0x41d   : > { %2900 = vmatpush3.bf16.msra.mxu1 %v1946_v16 }
 0x41e   : > { %2905 = vmatprep.subr.bf16.mxu1 %v3392_v43 }
 0x420   : > { %2902 = vmatmul.mubr.msk.bf16.vlgmr.msra.gmra.mxu1 %vm1707_vm3, %v1942_v17 }
 0x421   : > { %2906 = vmatpush3.bf16.msra.mxu1 %v1947_v42  ;;  %2907 = vmatprep.mubr.msk.bf16.mxu1 %vm3393_vm1, %v3392_v43 }
 0x422   : > { %v3236_v37 = vpop.eup %3235  ;;  %2911 = vmatprep.subr.bf16.mxu1 %v3392_v43 }
 0x423   : > { %v1862_v18 = vsel %vm1707_vm3, %v3236_v37, 0.0  ;;  %v3238_v20 = vpop.eup %3237 }
 0x424   : > { %1863 = vadd.xlane.f32.xlu1 %v1862_v18  ;;  %v3240_v26 = vpop.eup %3239  ;;  %v1859_v42 = vsel %vm1707_vm3, %v3238_v20, 0.0  ;;  %v1828_v18 = vld [vmem:[#allocation4] sm:$0xff] }
 0x425   : > { %v1943_v30 = vpack.c.bf16 %v3238_v20, %v3240_v26  ;;  %v1856_v34 = vsel %vm1707_vm3, %v3240_v26, 0.0 }
 0x426   : > { %v3242_v0 = vpop.eup %3241 }
 0x427   : > { %v1865_v33 = vsel %vm1707_vm3, %v3242_v0, 0.0  ;;  %v1944_v35 = vpack.c.bf16 %v3242_v0, %v3236_v37  ;;  %v3244_v11 = vpop.eup %3243 }
 0x428   : > { %1854 = vadd.xlane.f32.xlu1 %v1853_v6  ;;  %1866 = vadd.xlane.f32.xlu0 %v1865_v33  ;;  %v3246_v14 = vpop.eup %3245  ;;  %v1842_v55 = vmul.f32 %v3244_v11, %v1834_v54  ;;  %v3188_v54 = vld [vmem:[#allocation10 + $0x24] ss:$8 sps:$4 sm:$0xff]  }
 0x429   : > { %2908 = vmatmul.mubr.msk.bf16.vlgmr.msra.gmra.mxu1 %vm1707_vm3, %v1943_v30 }
 0x42a   : > { %2912 = vmatpush3.bf16.msra.mxu1 %v1948_v32  ;;  %2913 = vmatprep.mubr.msk.bf16.mxu1 %vm3393_vm1, %v3392_v43  ;;  %v1844_v43 = vsel %vm1707_vm3, %v3848_v24, 0.0  ;;  %v1754_v24 = vmul.f32 1.442695, %v1743_v60  ;;  %v1835_v60 = vld [vmem:[#allocation4 + $0x38] sm:$0xff] }
 0x42b   : > { %v1843_v59 = vmul.f32 %v3246_v14, %v1835_v60  ;;  %v3191_v60 = vld [vmem:[#allocation10 + $0x14] ss:$8 sps:$4 sm:$0xff]  }
 0x42c   : > { %1860 = vadd.xlane.f32.xlu1 %v1859_v42  ;;  %1851 = vadd.xlane.f32.xlu0 %v1850_v27  ;;  %3247 = vpow2.f32 %v1754_v24 }
 0x42d   : > { %3249 = vpow2.f32 %v1752_v2  ;;  %v3180_v2 = vld [vmem:[#allocation10 + $0x40] ss:$8 sps:$4 sm:$0xff]  }
 0x42e   : > { %3251 = vpow2.f32 %v1758_v7 }
 0x42f   : > { %3253 = vpow2.f32 %v1750_v12  ;;  %v3185_v12 = vld [vmem:[#allocation10 + $0x34] ss:$8 sps:$4 sm:$0xff]  }
 0x430   : > { %1848 = vadd.xlane.f32.xlu1 %v1847_v31  ;;  %1857 = vadd.xlane.f32.xlu0 %v1856_v34  ;;  %3255 = vpow2.f32 %v1756_v48  ;;  %v3171_v34 = vld [vmem:[#allocation10 + $0x70] ss:$8 sps:$4 sm:$0xff]  }
 0x431   : > { %2914 = vmatmul.mubr.msk.bf16.vlgmr.msra.gmra.mxu1 %vm1707_vm3, %v1944_v35  ;;  %3257 = vpow2.f32 %v1748_v52  ;;  %v3173_v35 = vld [vmem:[#allocation10 + $0x74] ss:$8 sps:$4 sm:$0xff]   ;;  %v3183_v52 = vld [vmem:[#allocation10 + $0x30] ss:$8 sps:$4 sm:$0xff]  }
 0x432   : > { %2450 = vmatprep.subr.bf16.mxu0 %v3173_v35 }
 0x433   : > { %2451 = vmatpush1.bf16.msra.mxu0 %v3171_v34 }
 0x434   : > { %1845 = vadd.xlane.f32.xlu0 %v1844_v43  ;;  %v3176_v43 = vld [vmem:[#allocation10 + $0x64] ss:$8 sps:$4 sm:$0xff]  }
 0x435   : > { %2452 = vmatprep.subr.bf16.mxu0 %v3176_v43 }
 0x437   : > { %2453 = vmatpush1.bf16.msra.mxu0 %v3174_v4 }
 0x439   : > { %v3248_v56 = vpop.eup %3247 }
 0x43a   : > { %v3250_v50 = vpop.eup %3249  ;;  %v1839_v61 = vmul.f32 %v3248_v56, %v1831_v46  ;;  %v1891_v46 = vld [vmem:[#allocation5 + $0x30] sm:$0xff] }
 0x43b   : > { %v3252_v62 = vpop.eup %3251  ;;  %v1838_v53 = vmul.f32 %v3250_v50, %v1830_v9 }
 0x43c   : > { %v3254_v51 = vpop.eup %3253  ;;  %v1841_v57 = vmul.f32 %v3252_v62, %v1833_v36 }
 0x43d   : > { %v3256_v1 = vpop.eup %3255  ;;  %v1837_v19 = vmul.f32 %v3254_v51, %v1829_v10  ;;  %v3200_v10 = vld [vmem:[#allocation10 + $0xe4] ss:$8 sps:$4 sm:$0xff]  }
 0x43e   : > { %v1840_v16 = vmul.f32 %v3256_v1, %v1832_v3  ;;  %v3258_v17 = vpop.eup %3257  ;;  %v3195_v3 = vld [vmem:[#allocation10 + $0xf0] ss:$8 sps:$4 sm:$0xff]  }
 0x43f   : > { %v1836_v26 = vmul.f32 %v3258_v17, %v1828_v18  ;;  %v3212_v18 = vld [vmem:[#allocation10 + $0xa4] ss:$8 sps:$4 sm:$0xff]  }
 0x441   : > { %1925 = vperm.xlu1 %3002, %v3244_v11   ;;  %v3179_v11 = vld [vmem:[#allocation10 + $0x54] ss:$8 sps:$4 sm:$0xff]  }
 0x442   : > { %2454 = vmatprep.subr.bf16.mxu0 %v3179_v11 }
 0x44a   : > { %1930 = vperm.xlu0 %3001, %v3246_v14   ;;  %v3177_v14 = vld [vmem:[#allocation10 + $0x50] ss:$8 sps:$4 sm:$0xff]  }
 0x44b   : > { %2455 = vmatpush1.bf16.msra.mxu0 %v3177_v14  ;;  %v3218_v14 = vld [vmem:[#allocation10 + $0x84] ss:$8 sps:$4 sm:$0xff]  }
 0x470   : > { %v3891_v25 = vpop.f32.mrf.mxu1 }
 0x472   : > { %v2897_v38 = vpop.f32.mrf.mxu1 }
 0x474   : > { %v3893_v39 = vpop.f32.mrf.mxu1 }
 0x476   : > { %v2898_v41 = vpop.f32.mrf.mxu1 }
 0x477   : > { %v3182_v41 = vld [vmem:[#allocation10 + $0x44] ss:$8 sps:$4 sm:$0xff]  }
 0x478   : > { %2456 = vmatprep.subr.bf16.mxu0 %v3182_v41  ;;  %v1890_v41 = vld [vmem:[#allocation5 + $0x28] sm:$0xff] }
 0x479   : > { %2457 = vmatpush1.bf16.msra.mxu0 %v3180_v2 }
 0x47a   : > { %2458 = vmatprep.subr.bf16.mxu0 %v3185_v12 }
 0x47d   : > { %2459 = vmatpush1.bf16.msra.mxu0 %v3183_v52  ;;  %v1886_v52 = vld [vmem:[#allocation5 + $0x8] sm:$0xff] }
 0x47e   : > { %2460 = vmatprep.subr.bf16.mxu0 %v3188_v54 }
 0x4ad   : > { %v1864_v58 = vpop.xlane.xlu1 %1863 }
 0x4ae   : > { %v1874_v49 = vadd.f32 %v1864_v58, %v1842_v55  ;;  %v3186_v58 = vld [vmem:[#allocation10 + $0x20] ss:$8 sps:$4 sm:$0xff]  }
 0x4af   : > { %2461 = vmatpush1.bf16.msra.mxu0 %v3186_v58  ;;  %v1889_v58 = vld [vmem:[#allocation5 + $0x20] sm:$0xff] }
 0x4b0   : > { %1883 = vst.msk [vmem:[#allocation4 + $0x30] sm:$0xff] %vm883_vm4, %v1874_v49  ;;  %2462 = vmatprep.subr.bf16.mxu0 %v3191_v60 }
 0x4b1   : > { %v1867_v63 = vpop.xlane.xlu0 %1866  ;;  %v1855_v5 = vpop.xlane.xlu1 %1854 }
 0x4b2   : > { %v1875_v40 = vadd.f32 %v1867_v63, %v1843_v59  ;;  %v1871_v47 = vadd.f32 %v1855_v5, %v1839_v61  ;;  %v3189_v61 = vld [vmem:[#allocation10 + $0x10] ss:$8 sps:$4 sm:$0xff]   ;;  %v3194_v63 = vld [vmem:[#allocation10 + $0x4] ss:$8 sps:$4 sm:$0xff]  }
 0x4b3   : > { %v1892_v5 = vld [vmem:[#allocation5 + $0x38] sm:$0xff]  ;;  %2463 = vmatpush1.bf16.msra.mxu0 %v3189_v61 }
 0x4b4   : > { %1884 = vst.msk [vmem:[#allocation4 + $0x38] sm:$0xff] %vm883_vm4, %v1875_v40  ;;  %1880 = vst.msk [vmem:[#allocation4 + $0x18] sm:$0xff] %vm883_vm4, %v1871_v47  ;;  %2464 = vmatprep.subr.bf16.mxu0 %v3194_v63 }
 0x4b5   : > { %v1852_v8 = vpop.xlane.xlu0 %1851  ;;  %v1861_v13 = vpop.xlane.xlu1 %1860 }
 0x4b6   : > { %v1870_v23 = vadd.f32 %v1852_v8, %v1838_v53  ;;  %v1873_v15 = vadd.f32 %v1861_v13, %v1841_v57  ;;  %v3197_v57 = vld [vmem:[#allocation10 + $0xf4] ss:$8 sps:$4 sm:$0xff]  }
 0x4b7   : > { %v2166_v30 = vld [vmem:[#allocation4 + $0x30] sm:$0xff] }
 0x4b8   : > { %1879 = vst.msk [vmem:[#allocation4 + $0x10] sm:$0xff] %vm883_vm4, %v1870_v23  ;;  %1882 = vst.msk [vmem:[#allocation4 + $0x28] sm:$0xff] %vm883_vm4, %v1873_v15  ;;  %v3198_v23 = vld [vmem:[#allocation10 + $0xe0] ss:$8 sps:$4 sm:$0xff]   ;;  %v3203_v15 = vld [vmem:[#allocation10 + $0xd4] ss:$8 sps:$4 sm:$0xff]  }
 0x4b9   : > { %v1858_v29 = vpop.xlane.xlu0 %1857  ;;  %v1849_v37 = vpop.xlane.xlu1 %1848 }
 0x4ba   : > { %v1872_v20 = vadd.f32 %v1858_v29, %v1840_v16  ;;  %v1869_v21 = vadd.f32 %v1849_v37, %v1837_v19  ;;  %v3201_v16 = vld [vmem:[#allocation10 + $0xd0] ss:$8 sps:$4 sm:$0xff]   ;;  %v3206_v19 = vld [vmem:[#allocation10 + $0xc4] ss:$8 sps:$4 sm:$0xff]   ;;  %v3209_v29 = vld [vmem:[#allocation10 + $0xb4] ss:$8 sps:$4 sm:$0xff]  }
 0x4bb   : > { %v2163_v22 = vld [vmem:[#allocation4 + $0x18] sm:$0xff] }
 0x4bc   : > { %1881 = vst.msk [vmem:[#allocation4 + $0x20] sm:$0xff] %vm883_vm4, %v1872_v20  ;;  %1878 = vst.msk [vmem:[#allocation4 + $0x8] sm:$0xff] %vm883_vm4, %v1869_v21  ;;  %2185 = vperm.xlu0 %3001, %v2163_v22   ;;  %v2167_v32 = vld [vmem:[#allocation4 + $0x38] sm:$0xff]  ;;  %v3210_v20 = vld [vmem:[#allocation10 + $0xa0] ss:$8 sps:$4 sm:$0xff]  }
 0x4bd   : > { %v1846_v0 = vpop.xlane.xlu0 %1845  ;;  %v1926_v49 = vpop.permute.xlu1 %1925  ;;  %v3207_v37 = vld [vmem:[#allocation10 + $0xb0] ss:$8 sps:$4 sm:$0xff]   ;;  %v3215_v21 = vld [vmem:[#allocation10 + $0x94] ss:$8 sps:$4 sm:$0xff]  }
 0x4be   : > { %v1868_v6 = vadd.f32 %v1846_v0, %v1836_v26  ;;  %v3213_v22 = vld [vmem:[#allocation10 + $0x90] ss:$8 sps:$4 sm:$0xff]  }
 0x4bf   : > { %v2162_v33 = vld [vmem:[#allocation4 + $0x10] sm:$0xff]  ;;  %v2165_v42 = vld [vmem:[#allocation4 + $0x28] sm:$0xff] }
 0x4c0   : > { %1877 = vst.msk [vmem:[#allocation4] sm:$0xff] %vm883_vm4, %v1868_v6  ;;  %2180 = vperm.xlu1 %3002, %v2162_v33   ;;  %2200 = vperm.xlu0 %3001, %v2166_v30   ;;  %v1888_v33 = vld [vmem:[#allocation5 + $0x18] sm:$0xff] }
 0x4c3   : > { %v2164_v27 = vld [vmem:[#allocation4 + $0x20] sm:$0xff]  ;;  %v2161_v28 = vld [vmem:[#allocation4 + $0x8] sm:$0xff] }
 0x4c4   : > { %2205 = vperm.xlu1 %3002, %v2167_v32   ;;  %1910 = vperm.xlu0 %3001, %v3248_v56  }
 0x4c5   : > { %v1931_v9 = vpop.permute.xlu0 %1930 }
 0x4c6   : > { %v1940_v53 = vmul.f32 %v1931_v9, %v1892_v5 }
 0x4c7   : > { %v2160_v31 = vld [vmem:[#allocation4] sm:$0xff] }
 0x4c8   : > { %1905 = vperm.xlu1 %3002, %v3250_v50   ;;  %2195 = vperm.xlu0 %3001, %v2165_v42  }
 0x4cc   : > { %2190 = vperm.xlu1 %3002, %v2164_v27   ;;  %2175 = vperm.xlu0 %3001, %v2161_v28   ;;  %v1887_v27 = vld [vmem:[#allocation5 + $0x10] sm:$0xff] }
 0x4d0   : > { %2170 = vperm.xlu1 %3002, %v2160_v31   ;;  %1920 = vperm.xlu0 %3001, %v3252_v62   ;;  %v1939_v62 = vmul.f32 %v1926_v49, %v1891_v46 }
 0x4d4   : > { %1915 = vperm.xlu1 %3002, %v3256_v1   ;;  %1900 = vperm.xlu0 %3001, %v3254_v51   ;;  %v3192_v51 = vld [vmem:[#allocation10] ss:$8 sps:$4 sm:$0xff]  }
 0x4d5   : > { %2465 = vmatpush1.bf16.msra.mxu0 %v3192_v51 }
 0x4d6   : > { %2466 = vmatprep.subr.bf16.mxu0 %v3197_v57  ;;  %v1885_v57 = vld [vmem:[#allocation5] sm:$0xff] }
 0x4d8   : > { %1895 = vperm.xlu1 %3002, %v3258_v17   ;;  %v3204_v17 = vld [vmem:[#allocation10 + $0xc0] ss:$8 sps:$4 sm:$0xff]  }
 0x4d9   : > { %2467 = vmatpush2.bf16.msra.mxu0 %v3195_v3 }
 0x4da   : > { %2468 = vmatprep.subr.bf16.mxu0 %v3200_v10 }
 0x4dd   : > { %2469 = vmatpush2.bf16.msra.mxu0 %v3198_v23 }
 0x4de   : > { %2470 = vmatprep.subr.bf16.mxu0 %v3203_v15 }
 0x4e0   : > { %v3921_v38 = vpop.f32.mrf.mxu1 }
 0x4e1   : > { %2471 = vmatpush2.bf16.msra.mxu0 %v3201_v16 }
 0x4e2   : > { %v2903_v24 = vpop.f32.mrf.mxu1  ;;  %2472 = vmatprep.subr.bf16.mxu0 %v3206_v19 }
 0x4e3   : > { %v3216_v24 = vld [vmem:[#allocation10 + $0x80] ss:$8 sps:$4 sm:$0xff]  }
 0x4e4   : > { %v3923_v7 = vpop.f32.mrf.mxu1 }
 0x4e5   : > { %2473 = vmatpush2.bf16.msra.mxu0 %v3204_v17 }
 0x4e6   : > { %v2904_v48 = vpop.f32.mrf.mxu1  ;;  %2474 = vmatprep.subr.bf16.mxu0 %v3209_v29 }
 0x4e9   : > { %v3925_v55 = vpop.f32.mrf.mxu1  ;;  %2475 = vmatpush2.bf16.msra.mxu0 %v3207_v37 }
 0x4ea   : > { %2476 = vmatprep.subr.bf16.mxu0 %v3212_v18 }
 0x4eb   : > { %v2909_v56 = vpop.f32.mrf.mxu1 }
 0x4ed   : > { %v3927_v50 = vpop.f32.mrf.mxu1  ;;  %2477 = vmatpush2.bf16.msra.mxu0 %v3210_v20 }
 0x4ee   : > { %2478 = vmatprep.subr.bf16.mxu0 %v3215_v21 }
 0x4ef   : > { %v2910_v59 = vpop.f32.mrf.mxu1 }
 0x4f1   : > { %v2118_v36 = vpop.f32.mrf.mxu1  ;;  %2479 = vmatpush2.bf16.msra.mxu0 %v3213_v22 }
 0x4f2   : > { %v2131_v40 = vadd.f32 %v2118_v36, %v1939_v62  ;;  %2480 = vmatprep.subr.bf16.mxu0 %v3218_v14 }
 0x4f3   : > { %v2915_v47 = vpop.f32.mrf.mxu1 }
 0x4f4   : > { %2139 = vst.msk [vmem:[#allocation5 + $0x30] sm:$0xff] %vm900_vm0, %v2131_v40 }
 0x4f5   : > { %v2121_v1 = vpop.f32.mrf.mxu1  ;;  %2481 = vmatpush2.bf16.msra.mxu0 %v3216_v24  ;;  %v2494_v24 = vld [vmem:[%s3539_s29 + $0x8] sm:$0xff] }
 0x4f6   : > { %v2132_v8 = vadd.f32 %v2121_v1, %v1940_v53 }
 0x4f7   : > { %v2916_v13 = vpop.f32.mrf.mxu1 }
 0x4f8   : > { %2140 = vst.msk [vmem:[#allocation5 + $0x38] sm:$0xff] %vm900_vm0, %v2132_v8 }
 0x4fb   : > { %v2158_v60 = vld [vmem:[#allocation5 + $0x30] sm:$0xff] }
 0x4ff   : > { %v2159_v46 = vld [vmem:[#allocation5 + $0x38] sm:$0xff] }
 0x537   : > { %v2186_v26 = vpop.permute.xlu0 %2185 }
 0x53b   : > { %v2201_v0 = vpop.permute.xlu0 %2200  ;;  %v2181_v6 = vpop.permute.xlu1 %2180 }
 0x53c   : > { %3259 = vrcp.f32 %v2201_v0 }
 0x53f   : > { %v1911_v30 = vpop.permute.xlu0 %1910  ;;  %v2206_v32 = vpop.permute.xlu1 %2205 }
 0x540   : > { %v1936_v42 = vmul.f32 %v1911_v30, %v1888_v33  ;;  %3261 = vrcp.f32 %v2206_v32 }
 0x541   : > { %3263 = vrcp.f32 %v2186_v26 }
 0x542   : > { %3265 = vrcp.f32 %v2181_v6  ;;  %v2128_v28 = vadd.f32 %v3923_v7, %v1936_v42 }
 0x543   : > { %v2196_v31 = vpop.permute.xlu0 %2195  ;;  %v1906_v34 = vpop.permute.xlu1 %1905 }
 0x544   : > { %2136 = vst.msk [vmem:[#allocation5 + $0x18] sm:$0xff] %vm900_vm0, %v2128_v28  ;;  %v1935_v35 = vmul.f32 %v1906_v34, %v1887_v27  ;;  %3267 = vrcp.f32 %v2196_v31  ;;  %v2278_v34 = vld [vmem:[%s3980_s9] sm:$0x3] }
 0x546   : > { %v2127_v43 = vadd.f32 %v3921_v38, %v1935_v35  ;;  %v2283_v35 = vrot.slane %v2278_v34, %v3587_v44 }
 0x547   : > { %v2176_v4 = vpop.permute.xlu0 %2175  ;;  %v2191_v11 = vpop.permute.xlu1 %2190 }
 0x548   : > { %2135 = vst.msk [vmem:[#allocation5 + $0x10] sm:$0xff] %vm900_vm0, %v2127_v43  ;;  %3269 = vrcp.f32 %v2176_v4  ;;  %v2287_v43 = vrot.slane %v2278_v34, %v3590_v45 }
 0x549   : > { %v3260_v2 = vpop.eup %3259  ;;  %3271 = vrcp.f32 %v2191_v11  ;;  %v2493_v11 = vld [vmem:[%s3539_s29] sm:$0xff] }
 0x54a   : > { %v2221_v59 = vmul.f32 %v3260_v2, %v2158_v60 }
 0x54b   : > { %v1921_v12 = vpop.permute.xlu0 %1920  ;;  %v2171_v48 = vpop.permute.xlu1 %2170  ;;  %v2155_v54 = vld [vmem:[#allocation5 + $0x18] sm:$0xff] }
 0x54c   : > { %v1938_v7 = vmul.f32 %v1921_v12, %v1890_v41  ;;  %3273 = vrcp.f32 %v2171_v48 }
 0x54d   : > { %v3262_v56 = vpop.eup %3261 }
 0x54e   : > { %v3264_v38 = vpop.eup %3263  ;;  %v2130_v49 = vadd.f32 %v3927_v50, %v1938_v7  ;;  %v2223_v61 = vmul.f32 %v3262_v56, %v2159_v46  ;;  %v2495_v7 = vld [vmem:[%s3539_s29 + $0x10] sm:$0xff]  ;;  %v2496_v56 = vld [vmem:[%s3539_s29 + $0x18] sm:$0xff] }
 0x54f   : > { %v3266_v62 = vpop.eup %3265  ;;  %v1901_v63 = vpop.permute.xlu0 %1900  ;;  %v2154_v9 = vld [vmem:[#allocation5 + $0x10] sm:$0xff]  ;;  %v2215_v36 = vmul.f32 %v3264_v38, %v2155_v54 }
 0x550   : > { %v1916_v5 = vpop.permute.xlu1 %1915  ;;  %2138 = vst.msk [vmem:[#allocation5 + $0x28] sm:$0xff] %vm900_vm0, %v2130_v49  ;;  %v1934_v40 = vmul.f32 %v1901_v63, %v1886_v52  ;;  %v3013_v51 = vpack.i.bf16 %v2223_v61, %v2221_v59  ;;  %v2213_v53 = vmul.f32 %v3266_v62, %v2154_v9 }
 0x551   : > { %v1937_v47 = vmul.f32 %v1916_v5, %v1889_v58 }
 0x552   : > { %v2126_v1 = vadd.f32 %v3893_v39, %v1934_v40  ;;  %3014 = vrot.lane.b32.xlu1 %v3013_v51, %s3394_s27  ;;  %v3018_v50 = vpack.i.bf16 %v2215_v36, %v2213_v53  ;;  %v3268_v39 = vpop.eup %3267 }
 0x553   : > { %v2129_v8 = vadd.f32 %v3925_v55, %v1937_v47 }
 0x554   : > { %v1896_v13 = vpop.permute.xlu1 %1895  ;;  %2134 = vst.msk [vmem:[#allocation5 + $0x8] sm:$0xff] %vm900_vm0, %v2126_v1  ;;  %3019 = vrot.lane.b32.xlu0 %v3018_v50, %s3394_s27 }
 0x555   : > { %2137 = vst.msk [vmem:[#allocation5 + $0x20] sm:$0xff] %vm900_vm0, %v2129_v8  ;;  %v1933_v3 = vmul.f32 %v1896_v13, %v1885_v57  ;;  %v3270_v15 = vpop.eup %3269 }
 0x556   : > { %v3272_v17 = vpop.eup %3271 }
 0x557   : > { %v2125_v10 = vadd.f32 %v3891_v25, %v1933_v3  ;;  %v2157_v23 = vld [vmem:[#allocation5 + $0x28] sm:$0xff] }
 0x558   : > { %v2219_v22 = vmul.f32 %v3268_v39, %v2157_v23 }
 0x559   : > { %2133 = vst.msk [vmem:[#allocation5] sm:$0xff] %vm900_vm0, %v2125_v10  ;;  %v3274_v37 = vpop.eup %3273 }
 0x55b   : > { %v2153_v19 = vld [vmem:[#allocation5 + $0x8] sm:$0xff] }
 0x55c   : > { %v2156_v55 = vld [vmem:[#allocation5 + $0x20] sm:$0xff]  ;;  %v2211_v26 = vmul.f32 %v3270_v15, %v2153_v19 }
 0x55d   : > { %v2217_v21 = vmul.f32 %v3272_v17, %v2156_v55 }
 0x560   : > { %v2152_v16 = vld [vmem:[#allocation5] sm:$0xff] }
 0x561   : > { %v2209_v25 = vmul.f32 %v3274_v37, %v2152_v16 }
 0x5c4   : > { %v3015_v29 = vpop.permute.xlu1 %3014 }
 0x5c5   : > { %v3017_v18 = vunpack.i.h.bf16 %v3015_v29  ;;  %v3016_v20 = vunpack.i.l.bf16 %v3015_v29 }
 0x5c6   : > { %v3020_v0 = vpop.permute.xlu0 %3019 }
 0x5c7   : > { %v3022_v6 = vunpack.i.h.bf16 %v3020_v0  ;;  %v3021_v33 = vunpack.i.l.bf16 %v3020_v0  ;;  %v2242_v30 = vsel %vm900_vm0, %v2217_v21, %v3016_v20  ;;  %v2243_v32 = vsel %vm900_vm0, %v2219_v22, %v3017_v18 }
 0x5c8   : > { %v2245_v42 = vpack.c.bf16 %v2243_v32, %v2242_v30 }
 0x5c9   : > { %v2241_v27 = vsel %vm900_vm0, %v2211_v26, %v3022_v6  ;;  %v2240_v28 = vsel %vm900_vm0, %v2209_v25, %v3021_v33 }
 0x5ca   : > { %v2244_v31 = vpack.c.bf16 %v2241_v27, %v2240_v28  ;;  %2482 = vmatprep.mubr.bf16.mxu0 %v2245_v42 }
 0x5cc   : > { %2483 = vmatmul.mubr.bf16.vlgmr.msra.gmra.mxu0 %v2244_v31 }
 0x68c   : > { %v2484_v4 = vpop.f32.mrf.mxu0 }
 0x68d   : > { %v2485_v14 = vadd.f32 %v2484_v4, %v2283_v35 }
 0x68e   : > { %v2486_v41 = vpop.f32.mrf.mxu0 }
 0x68f   : > { %v2497_v2 = vadd.f32 %v2493_v11, %v2485_v14  ;;  %v2487_v12 = vadd.f32 %v2486_v41, %v2287_v43 }
 0x690   : > { %v2488_v48 = vpop.f32.mrf.mxu0 }
 0x691   : > { %2501 = vst [vmem:[%s525_s16] sm:$0xff] %v2497_v2  ;;  %v2498_v52 = vadd.f32 %v2494_v24, %v2487_v12  ;;  %v2489_v54 = vadd.f32 %v2488_v48, %v2283_v35 }
 0x692   : > { %v2490_v44 = vpop.f32.mrf.mxu0 }
 0x693   : > { %2502 = vst [vmem:[%s525_s16 + $0x8] sm:$0xff] %v2498_v52  ;;  %v2499_v45 = vadd.f32 %v2495_v7, %v2489_v54  ;;  %v2491_v58 = vadd.f32 %v2490_v44, %v2287_v43 }
 0x695   : > { %2503 = vst [vmem:[%s525_s16 + $0x10] sm:$0xff] %v2499_v45  ;;  %v2500_v60 = vadd.f32 %v2496_v56, %v2491_v58 }
 0x697   : > { %2504 = vst [vmem:[%s525_s16 + $0x18] sm:$0xff] %v2500_v60 }
 0x698 PF: > { %s22_s15 = sadd.s32 1, %s3383_s15   ;;  %s3986_s13 = smov %s3379_s14 }
 0x699   : > { %p19_p2 = scmp.ge.s32.totalorder %s22_s15, 4   ;;  %s3987_s14 = smov %s3989_s22 }
 0x69b   :  { %21 = sbr.rel (!%p19_p2) target bundleno = 3 (0x3), region = 117 }
 0x6a0   :  { %2537 = vsyncpa [#allocation7], 1 }
 0x6a1   :  { %2539 = vsyncpa [#allocation7 + $0x1], 1 }
 0x6a2   :  { %2540 = vsyncpa [#allocation9], 1 }

// kernel: decoder_layer.5
= control target key start
LH: loop header
LB: loop body
LE: loop exit
PB: predicated region body
PF: predicated region fallthrough
CT: control target
= control target key end

     0   :  { %s3238_s30 = smov 0   ;;  %s3240_s10 = smov 0   ;;  %s4111_s0 = inlined_call_operand.vmem [shape: f32[2,16,256], index: 0, kind: input, shape index: {}]   ;;  %s4112_s1 = inlined_call_operand.vmem [shape: f32[2,32,256], index: 1, kind: input, shape index: {}]   ;;  %s4113_s2 = inlined_call_operand.vmem [shape: f32[1,256], index: 2, kind: input, shape index: {}]   ;;  %s4114_s3 = inlined_call_operand.vmem [shape: bf16[256,256], index: 3, kind: input, shape index: {}]   ;;  %s4115_s4 = inlined_call_operand.vmem [shape: f32[1,256], index: 4, kind: input, shape index: {}]   ;;  %s4116_s5 = inlined_call_operand.vmem [shape: bf16[256,512], index: 5, kind: input, shape index: {}]   ;;  %s4117_s6 = inlined_call_operand.vmem [shape: f32[1,512], index: 6, kind: input, shape index: {}]   ;;  %s4118_s7 = inlined_call_operand.vmem [shape: bf16[256,256], index: 7, kind: input, shape index: {}]   ;;  %s4119_s8 = inlined_call_operand.vmem [shape: f32[1,256], index: 8, kind: input, shape index: {}]   ;;  %s4120_s9 = inlined_call_operand.vmem [shape: f32[2,16,256], index: 9, kind: output, shape index: {}]  }
   0x1   :  { %s3242_s11 = smov 0  }
   0x2 LB: > { %s38_s12 = sadd.s32 1, %s3177_s10  ;;  %p2564_p0 = scmp.ge.s32.totalorder %s3181_s11, 1  ;;  %s3181_s11 = sphi %s3242_s11, %s19_s11   ;;  %s3177_s10 = sphi %s3240_s10, %s4122_s10   ;;  %s3173_s30 = sphi %s3238_s30, %s4121_s30  }
   0x3   : > { %p40_p1 = scmp.ge.s32.totalorder %s38_s12, 2  ;;  %p334_p2 = scmp.lt.s32.totalorder %s3181_s11, 3 }
   0x5   : > { %s4124_s12 = smov (%p40_p1, %s38_s12), 0  ;;  %p335_p3 = pnand %p2564_p0, %p334_p2 }
   0x6   : > { %p391_p4 = scmp.lt.s32.totalorder (!%p335_p3), %s3173_s30, 1  ;;  %s3185_s25 = smov (!%p335_p3), 64  }
   0x7   : > { %338 = sbr.rel (%p335_p3) target bundleno = 1634 (0x662), region = 56 }
   0xc   : > { %v2911_v0 = vld [vmem:[%s4116_s5 + $0xe4] ss:$16 sps:$4 sm:$0xff]   ;;  %v2913_v1 = vld [vmem:[%s4116_s5 + $0xe0] ss:$16 sps:$4 sm:$0xff]   ;;  %s4126_s30 = smov (!%p391_p4, %s3173_s30), 1  ;;  %vm796_vm0 = vcmask 523264  }
   0xd   : > { %1223 = vmatprep.subr.bf16.mxu1 %v2911_v0  ;;  %v2914_v2 = vld [vmem:[%s4116_s5 + $0xc4] ss:$16 sps:$4 sm:$0xff]   ;;  %v2916_v3 = vld [vmem:[%s4116_s5 + $0xc0] ss:$16 sps:$4 sm:$0xff]   ;;  %s2721_s21 = sshll.u32 %s4126_s30, 5  ;;  %s2722_s23 = sshll.u32 %s4126_s30, 6 }
   0xe   : > { %1224 = vmatpush1.bf16.msra.mxu1 %v2913_v1  ;;  %v2917_v4 = vld [vmem:[%s4116_s5 + $0xa4] ss:$16 sps:$4 sm:$0xff]   ;;  %s3279_s26 = scalar_lea.vmem %s4111_s0, %s2721_s21  ;;  %v2919_v12 = vld [vmem:[%s4116_s5 + $0xa0] ss:$16 sps:$4 sm:$0xff]   ;;  %s3374_s14 = scalar_lea.vmem %s4112_s1, %s2722_s23  ;;  %vm3184_vm1 = vmmov 0   ;;  %vm770_vm2 = vcmask 519168  }
   0xf   : > { %1225 = vmatprep.subr.bf16.mxu1 %v2914_v2  ;;  %v3282_v5 = vld [vmem:[%s3279_s26] sm:$0xff]  ;;  %v3285_v6 = vld [vmem:[%s3279_s26 + $0x8] sm:$0xff]  ;;  %v3288_v7 = vld [vmem:[%s3279_s26 + $0x10] sm:$0xff]  ;;  %vm779_vm3 = vcmask 7168   ;;  %vm1638_vm4 = vcmask 261120   ;;  %s421_s24 = scalar_lea.vmem %s4120_s9, %s2721_s21 }
  0x10   : > { %v433_v8 = vmul.f32 %v3282_v5, %v3282_v5  ;;  %v434_v9 = vmul.f32 %v3285_v6, %v3285_v6  ;;  %v3295_v10 = vld [vmem:[%s3279_s26 + $0x18] sm:$0xff]  ;;  %v435_v11 = vmul.f32 %v3288_v7, %v3288_v7  ;;  %v2920_v14 = vld [vmem:[%s4116_s5 + $0x84] ss:$16 sps:$4 sm:$0xff]   ;;  %v2922_v17 = vld [vmem:[%s4116_s5 + $0x80] ss:$16 sps:$4 sm:$0xff]  }
  0x11   : > { %v436_v13 = vmul.f32 %v3295_v10, %v3295_v10  ;;  %v2923_v18 = vld [vmem:[%s4116_s5 + $0x64] ss:$16 sps:$4 sm:$0xff]   ;;  %v2925_v20 = vld [vmem:[%s4116_s5 + $0x60] ss:$16 sps:$4 sm:$0xff]   ;;  %v806_v42 = vld [vmem:[%s3374_s14 + $0x8] sm:$0xff] }
  0x12   : > { %1226 = vmatpush1.bf16.msra.mxu1 %v2916_v3  ;;  %v437_v15 = vadd.f32 %v434_v9, %v433_v8  ;;  %v2935_v19 = vld [vmem:[%s4114_s3 + $0x74] ss:$8 sps:$4 sm:$0xff]   ;;  %v2939_v21 = vld [vmem:[%s4114_s3 + $0x70] ss:$8 sps:$4 sm:$0xff]   ;;  %v2941_v22 = vld [vmem:[%s4114_s3 + $0x64] ss:$8 sps:$4 sm:$0xff]  }
  0x13   : > { %1227 = vmatprep.subr.bf16.mxu1 %v2917_v4  ;;  %v440_v16 = vadd.f32 %v436_v13, %v435_v11  ;;  %675 = vmatprep.subr.bf16.mxu0 %v2935_v19  ;;  %v2926_v23 = vld [vmem:[%s4116_s5 + $0x44] ss:$16 sps:$4 sm:$0xff]   ;;  %v2945_v24 = vld [vmem:[%s4114_s3 + $0x60] ss:$8 sps:$4 sm:$0xff]   ;;  %v2951_v28 = vld [vmem:[%s4114_s3 + $0x50] ss:$8 sps:$4 sm:$0xff]  }
  0x14   : > { %438 = vadd.xlane.f32.xlu0 %v437_v15  ;;  %676 = vmatpush1.bf16.msra.mxu0 %v2939_v21  ;;  %v2947_v25 = vld [vmem:[%s4114_s3 + $0x54] ss:$8 sps:$4 sm:$0xff]   ;;  %v2928_v26 = vld [vmem:[%s4116_s5 + $0x40] ss:$16 sps:$4 sm:$0xff]   ;;  %v2953_v29 = vld [vmem:[%s4114_s3 + $0x44] ss:$8 sps:$4 sm:$0xff]  }
  0x15   : > { %677 = vmatprep.subr.bf16.mxu0 %v2941_v22  ;;  %v2929_v27 = vld [vmem:[%s4116_s5 + $0x24] ss:$16 sps:$4 sm:$0xff]   ;;  %v2931_v30 = vld [vmem:[%s4116_s5 + $0x20] ss:$16 sps:$4 sm:$0xff]   ;;  %v808_v43 = vld [vmem:[%s3374_s14 + $0x18] sm:$0xff] }
  0x16   : > { %1228 = vmatpush1.bf16.msra.mxu1 %v2919_v12  ;;  %v2932_v31 = vld [vmem:[%s4116_s5 + $0x4] ss:$16 sps:$4 sm:$0xff]   ;;  %v2957_v32 = vld [vmem:[%s4114_s3 + $0x40] ss:$8 sps:$4 sm:$0xff]   ;;  %v2963_v36 = vld [vmem:[%s4114_s3 + $0x30] ss:$8 sps:$4 sm:$0xff]   ;;  %v3390_v44 = vpack.c.bf16 %v808_v43, %v806_v42 }
  0x17   : > { %1229 = vmatprep.subr.bf16.mxu1 %v2920_v14  ;;  %v2959_v33 = vld [vmem:[%s4114_s3 + $0x34] ss:$8 sps:$4 sm:$0xff]   ;;  %v2934_v34 = vld [vmem:[%s4116_s5] ss:$16 sps:$4 sm:$0xff]   ;;  %v2965_v37 = vld [vmem:[%s4114_s3 + $0x24] ss:$8 sps:$4 sm:$0xff]  }
  0x18   : > { %441 = vadd.xlane.f32.xlu0 %v440_v16  ;;  %678 = vmatpush1.bf16.msra.mxu0 %v2945_v24  ;;  %v2937_v35 = vld [vmem:[%s4116_s5 + $0x1e4] ss:$16 sps:$4 sm:$0xff]   ;;  %v2940_v38 = vld [vmem:[%s4116_s5 + $0x1e0] ss:$16 sps:$4 sm:$0xff]   ;;  %v810_v12 = vld [vmem:[%s3374_s14 + $0x28] sm:$0xff] }
  0x19   : > { %679 = vmatprep.subr.bf16.mxu0 %v2947_v25  ;;  %v2943_v39 = vld [vmem:[%s4116_s5 + $0x1c4] ss:$16 sps:$4 sm:$0xff]   ;;  %v2969_v40 = vld [vmem:[%s4114_s3 + $0x20] ss:$8 sps:$4 sm:$0xff]   ;;  %v2975_v47 = vld [vmem:[%s4114_s3 + $0x10] ss:$8 sps:$4 sm:$0xff]   ;;  %1255 = vmatprep.mubr.bf16.mxu1 %v3390_v44 }
  0x1a   : > { %1230 = vmatpush1.bf16.msra.mxu1 %v2922_v17  ;;  %v2971_v41 = vld [vmem:[%s4114_s3 + $0x14] ss:$8 sps:$4 sm:$0xff]   ;;  %v2946_v45 = vld [vmem:[%s4116_s5 + $0x1c0] ss:$16 sps:$4 sm:$0xff]   ;;  %v2977_v48 = vld [vmem:[%s4114_s3 + $0x4] ss:$8 sps:$4 sm:$0xff]  }
  0x1b   : > { %1231 = vmatprep.subr.bf16.mxu1 %v2923_v18  ;;  %v2949_v46 = vld [vmem:[%s4116_s5 + $0x1a4] ss:$16 sps:$4 sm:$0xff]   ;;  %v2952_v49 = vld [vmem:[%s4116_s5 + $0x1a0] ss:$16 sps:$4 sm:$0xff]   ;;  %v812_v13 = vld [vmem:[%s3374_s14 + $0x38] sm:$0xff] }
  0x1c   : > { %680 = vmatpush1.bf16.msra.mxu0 %v2951_v28  ;;  %v2955_v50 = vld [vmem:[%s4116_s5 + $0x184] ss:$16 sps:$4 sm:$0xff]   ;;  %v2981_v51 = vld [vmem:[%s4114_s3] ss:$8 sps:$4 sm:$0xff]   ;;  %v2985_v55 = vld [vmem:[%s4114_s3 + $0xf0] ss:$8 sps:$4 sm:$0xff]   ;;  %v3480_v17 = vpack.c.bf16 %v812_v13, %v810_v12 }
  0x1d   : > { %681 = vmatprep.subr.bf16.mxu0 %v2953_v29  ;;  %v2983_v52 = vld [vmem:[%s4114_s3 + $0xf4] ss:$8 sps:$4 sm:$0xff]   ;;  %v2958_v53 = vld [vmem:[%s4116_s5 + $0x180] ss:$16 sps:$4 sm:$0xff]   ;;  %v2986_v56 = vld [vmem:[%s4114_s3 + $0xe4] ss:$8 sps:$4 sm:$0xff]  }
  0x1e   : > { %1232 = vmatpush1.bf16.msra.mxu1 %v2925_v20  ;;  %v2961_v54 = vld [vmem:[%s4116_s5 + $0x164] ss:$16 sps:$4 sm:$0xff]   ;;  %v2964_v57 = vld [vmem:[%s4116_s5 + $0x160] ss:$16 sps:$4 sm:$0xff]   ;;  %v3183_v28 = vmov 0.0  }
  0x1f   : > { %1233 = vmatprep.subr.bf16.mxu1 %v2926_v23  ;;  %v2967_v58 = vld [vmem:[%s4116_s5 + $0x144] ss:$16 sps:$4 sm:$0xff]   ;;  %v2988_v59 = vld [vmem:[%s4114_s3 + $0xe0] ss:$8 sps:$4 sm:$0xff]   ;;  %v2991_v63 = vld [vmem:[%s4114_s3 + $0xd0] ss:$8 sps:$4 sm:$0xff]  }
  0x20   : > { %682 = vmatpush1.bf16.msra.mxu0 %v2957_v32  ;;  %v2989_v60 = vld [vmem:[%s4114_s3 + $0xd4] ss:$8 sps:$4 sm:$0xff]   ;;  %v2970_v61 = vld [vmem:[%s4116_s5 + $0x140] ss:$16 sps:$4 sm:$0xff]   ;;  %v2992_v0 = vld [vmem:[%s4114_s3 + $0xc4] ss:$8 sps:$4 sm:$0xff]  }
  0x21   : > { %683 = vmatprep.subr.bf16.mxu0 %v2959_v33  ;;  %v2973_v62 = vld [vmem:[%s4116_s5 + $0x124] ss:$16 sps:$4 sm:$0xff]   ;;  %v2976_v1 = vld [vmem:[%s4116_s5 + $0x120] ss:$16 sps:$4 sm:$0xff]   ;;  %797 = vst.msk [vmem:[#allocation5] sm:$0xff] %vm796_vm0, %v3183_v28  ;;  %798 = vst.msk [vmem:[#allocation5 + $0x8] sm:$0xff] %vm796_vm0, %v3183_v28 }
  0x22   : > { %1234 = vmatpush1.bf16.msra.mxu1 %v2928_v26  ;;  %v2979_v2 = vld [vmem:[%s4116_s5 + $0x104] ss:$16 sps:$4 sm:$0xff]   ;;  %v2994_v3 = vld [vmem:[%s4114_s3 + $0xc0] ss:$8 sps:$4 sm:$0xff]   ;;  %v2997_v14 = vld [vmem:[%s4114_s3 + $0xb0] ss:$8 sps:$4 sm:$0xff]  }
  0x23   : > { %1235 = vmatprep.subr.bf16.mxu1 %v2929_v27  ;;  %v2995_v4 = vld [vmem:[%s4114_s3 + $0xb4] ss:$8 sps:$4 sm:$0xff]   ;;  %v2982_v8 = vld [vmem:[%s4116_s5 + $0x100] ss:$16 sps:$4 sm:$0xff]   ;;  %v2998_v15 = vld [vmem:[%s4114_s3 + $0xa4] ss:$8 sps:$4 sm:$0xff]  }
  0x24   : > { %684 = vmatpush1.bf16.msra.mxu0 %v2963_v36  ;;  %v805_v9 = vld [vmem:[%s3374_s14] sm:$0xff]  ;;  %v807_v11 = vld [vmem:[%s3374_s14 + $0x10] sm:$0xff]  ;;  %v3009_v26 = vld [vmem:[%s4116_s5 + $0xec] ss:$16 sps:$4 sm:$0xff]   ;;  %799 = vst.msk [vmem:[#allocation5 + $0x10] sm:$0xff] %vm796_vm0, %v3183_v28 }
  0x25   : > { %685 = vmatprep.subr.bf16.mxu0 %v2965_v37  ;;  %v3478_v16 = vpack.c.bf16 %v807_v11, %v805_v9  ;;  %v3000_v18 = vld [vmem:[%s4114_s3 + $0xa0] ss:$8 sps:$4 sm:$0xff]   ;;  %v3001_v19 = vld [vmem:[%s4114_s3 + $0x94] ss:$8 sps:$4 sm:$0xff]   ;;  %v3003_v22 = vld [vmem:[%s4114_s3 + $0x90] ss:$8 sps:$4 sm:$0xff]  }
  0x26   : > { %1236 = vmatpush1.bf16.msra.mxu1 %v2931_v30  ;;  %v809_v20 = vld [vmem:[%s3374_s14 + $0x20] sm:$0xff]  ;;  %v811_v21 = vld [vmem:[%s3374_s14 + $0x30] sm:$0xff]  ;;  %800 = vst.msk [vmem:[#allocation5 + $0x18] sm:$0xff] %vm796_vm0, %v3183_v28  ;;  %801 = vst.msk [vmem:[#allocation5 + $0x20] sm:$0xff] %vm796_vm0, %v3183_v28 }
  0x27   : > { %1237 = vmatprep.subr.bf16.mxu1 %v2932_v31  ;;  %v3004_v23 = vld [vmem:[%s4114_s3 + $0x84] ss:$8 sps:$4 sm:$0xff]   ;;  %v3498_v24 = vpack.c.bf16 %v811_v21, %v809_v20  ;;  %v3006_v25 = vld [vmem:[%s4114_s3 + $0x80] ss:$8 sps:$4 sm:$0xff]   ;;  %802 = vst.msk [vmem:[#allocation5 + $0x28] sm:$0xff] %vm796_vm0, %v3183_v28  ;;  %803 = vst.msk [vmem:[#allocation5 + $0x30] sm:$0xff] %vm796_vm0, %v3183_v28 }
  0x28   : > { %686 = vmatpush1.bf16.msra.mxu0 %v2969_v40  ;;  %804 = vst.msk [vmem:[#allocation5 + $0x38] sm:$0xff] %vm796_vm0, %v3183_v28  ;;  %v3042_v9 = vld [vmem:[%s4116_s5 + $0x18c] ss:$16 sps:$4 sm:$0xff]   ;;  %v3040_v11 = vld [vmem:[%s4116_s5 + $0x188] ss:$16 sps:$4 sm:$0xff]  }
  0x29   : > { %687 = vmatprep.subr.bf16.mxu0 %v2971_v41  ;;  %v3045_v12 = vld [vmem:[%s4116_s5 + $0x16c] ss:$16 sps:$4 sm:$0xff]   ;;  %v3043_v13 = vld [vmem:[%s4116_s5 + $0x168] ss:$16 sps:$4 sm:$0xff]   ;;  %788 = vst.msk [vmem:[#allocation4] sm:$0xff] %vm779_vm3, %v3183_v28  ;;  %789 = vst.msk [vmem:[#allocation4 + $0x8] sm:$0xff] %vm779_vm3, %v3183_v28 }
  0x2a   : > { %1238 = vmatpush1.bf16.msra.mxu1 %v2934_v34  ;;  %v455_v34 = vlaneseq  ;;  %v3054_v20 = vld [vmem:[%s4116_s5 + $0x10c] ss:$16 sps:$4 sm:$0xff]   ;;  %v3052_v21 = vld [vmem:[%s4116_s5 + $0x108] ss:$16 sps:$4 sm:$0xff]   ;;  %790 = vst.msk [vmem:[#allocation4 + $0x10] sm:$0xff] %vm779_vm3, %v3183_v28  ;;  %791 = vst.msk [vmem:[#allocation4 + $0x18] sm:$0xff] %vm779_vm3, %v3183_v28 }
  0x2b   : > { %1239 = vmatprep.subr.bf16.mxu1 %v2937_v35  ;;  %792 = vst.msk [vmem:[#allocation4 + $0x20] sm:$0xff] %vm779_vm3, %v3183_v28  ;;  %793 = vst.msk [vmem:[#allocation4 + $0x28] sm:$0xff] %vm779_vm3, %v3183_v28 }
  0x2c   : > { %688 = vmatpush1.bf16.msra.mxu0 %v2975_v47  ;;  %v3524_v35 = vshrl.u32 %v455_v34, 7  ;;  %794 = vst.msk [vmem:[#allocation4 + $0x30] sm:$0xff] %vm779_vm3, %v3183_v28  ;;  %795 = vst.msk [vmem:[#allocation4 + $0x38] sm:$0xff] %vm779_vm3, %v3183_v28 }
  0x2d   : > { %689 = vmatprep.subr.bf16.mxu0 %v2977_v48 }
  0x2e   : > { %1240 = vmatpush2.bf16.msra.mxu1 %v2940_v38  ;;  %v3527_v36 = vsub.s32 0, %v3524_v35  ;;  %v3530_v37 = vsub.s32 1, %v3524_v35 }
  0x2f   : > { %1241 = vmatprep.subr.bf16.mxu1 %v2943_v39  ;;  %v432_v39 = vld [vmem:[%s4113_s2] sm:$0x3] }
  0x30   : > { %690 = vmatpush1.bf16.msra.mxu0 %v2981_v51  ;;  %v458_v41 = vrot.slane %v432_v39, %v3527_v36  ;;  %v462_v42 = vrot.slane %v432_v39, %v3530_v37 }
  0x31   : > { %691 = vmatprep.subr.bf16.mxu0 %v2983_v52 }
  0x32   : > { %1242 = vmatpush2.bf16.msra.mxu1 %v2946_v45 }
  0x33   : > { %1243 = vmatprep.subr.bf16.mxu1 %v2949_v46 }
  0x34   : > { %692 = vmatpush2.bf16.msra.mxu0 %v2985_v55  ;;  %v3018_v55 = vld [vmem:[%s4116_s5 + $0x8c] ss:$16 sps:$4 sm:$0xff]  }
  0x35   : > { %693 = vmatprep.subr.bf16.mxu0 %v2986_v56  ;;  %v3021_v56 = vld [vmem:[%s4116_s5 + $0x6c] ss:$16 sps:$4 sm:$0xff]  }
  0x36   : > { %1244 = vmatpush2.bf16.msra.mxu1 %v2952_v49 }
  0x37   : > { %1245 = vmatprep.subr.bf16.mxu1 %v2955_v50 }
  0x38   : > { %694 = vmatpush2.bf16.msra.mxu0 %v2988_v59  ;;  %v3022_v59 = vld [vmem:[%s4116_s5 + $0x48] ss:$16 sps:$4 sm:$0xff]  }
  0x39   : > { %695 = vmatprep.subr.bf16.mxu0 %v2989_v60  ;;  %v3027_v60 = vld [vmem:[%s4116_s5 + $0x2c] ss:$16 sps:$4 sm:$0xff]  }
  0x3a   : > { %1246 = vmatpush2.bf16.msra.mxu1 %v2958_v53 }
  0x3b   : > { %1247 = vmatprep.subr.bf16.mxu1 %v2961_v54  ;;  %v3012_v54 = vld [vmem:[%s4116_s5 + $0xcc] ss:$16 sps:$4 sm:$0xff]  }
  0x3c   : > { %696 = vmatpush2.bf16.msra.mxu0 %v2991_v63  ;;  %v3028_v63 = vld [vmem:[%s4116_s5 + $0x8] ss:$16 sps:$4 sm:$0xff]  }
  0x3d   : > { %697 = vmatprep.subr.bf16.mxu0 %v2992_v0  ;;  %v3033_v0 = vld [vmem:[%s4116_s5 + $0x1ec] ss:$16 sps:$4 sm:$0xff]  }
  0x3e   : > { %1248 = vmatpush2.bf16.msra.mxu1 %v2964_v57  ;;  %v3019_v57 = vld [vmem:[%s4116_s5 + $0x68] ss:$16 sps:$4 sm:$0xff]  }
  0x3f   : > { %1249 = vmatprep.subr.bf16.mxu1 %v2967_v58  ;;  %v3024_v58 = vld [vmem:[%s4116_s5 + $0x4c] ss:$16 sps:$4 sm:$0xff]  }
  0x40   : > { %698 = vmatpush2.bf16.msra.mxu0 %v2994_v3  ;;  %v3034_v3 = vld [vmem:[%s4116_s5 + $0x1c8] ss:$16 sps:$4 sm:$0xff]  }
  0x41   : > { %699 = vmatprep.subr.bf16.mxu0 %v2995_v4  ;;  %v3039_v4 = vld [vmem:[%s4116_s5 + $0x1ac] ss:$16 sps:$4 sm:$0xff]  }
  0x42   : > { %1250 = vmatpush2.bf16.msra.mxu1 %v2970_v61  ;;  %v3025_v61 = vld [vmem:[%s4116_s5 + $0x28] ss:$16 sps:$4 sm:$0xff]  }
  0x43   : > { %1251 = vmatprep.subr.bf16.mxu1 %v2973_v62  ;;  %v3030_v62 = vld [vmem:[%s4116_s5 + $0xc] ss:$16 sps:$4 sm:$0xff]  }
  0x44   : > { %700 = vmatpush2.bf16.msra.mxu0 %v2997_v14  ;;  %v3048_v14 = vld [vmem:[%s4116_s5 + $0x14c] ss:$16 sps:$4 sm:$0xff]  }
  0x45   : > { %701 = vmatprep.subr.bf16.mxu0 %v2998_v15  ;;  %v3046_v15 = vld [vmem:[%s4116_s5 + $0x148] ss:$16 sps:$4 sm:$0xff]  }
  0x46   : > { %1252 = vmatpush2.bf16.msra.mxu1 %v2976_v1  ;;  %v3031_v1 = vld [vmem:[%s4116_s5 + $0x1e8] ss:$16 sps:$4 sm:$0xff]  }
  0x47   : > { %1253 = vmatprep.subr.bf16.mxu1 %v2979_v2  ;;  %v3036_v2 = vld [vmem:[%s4116_s5 + $0x1cc] ss:$16 sps:$4 sm:$0xff]  }
  0x48   : > { %702 = vmatpush2.bf16.msra.mxu0 %v3000_v18  ;;  %v3051_v18 = vld [vmem:[%s4116_s5 + $0x12c] ss:$16 sps:$4 sm:$0xff]  }
  0x49   : > { %703 = vmatprep.subr.bf16.mxu0 %v3001_v19  ;;  %v3049_v19 = vld [vmem:[%s4116_s5 + $0x128] ss:$16 sps:$4 sm:$0xff]  }
  0x4a   : > { %1254 = vmatpush2.bf16.msra.mxu1 %v2982_v8  ;;  %v3037_v8 = vld [vmem:[%s4116_s5 + $0x1a8] ss:$16 sps:$4 sm:$0xff]  }
  0x4b   : > { %2772 = vmatprep.subr.bf16.mxu1 %v3183_v28 }
  0x4c   : > { %704 = vmatpush2.bf16.msra.mxu0 %v3003_v22  ;;  %v3642_v22 = vld [vmem:[%s4117_s6] sm:$0xf] }
  0x4d   : > { %1256 = vmatmul.mubr.bf16.vlgmr.msra.gmra.mxu1 %v3478_v16  ;;  %705 = vmatprep.subr.bf16.mxu0 %v3004_v23 }
  0x4e   : > { %1265 = vmatprep.mubr.bf16.mxu1 %v3480_v17 }
  0x50   : > { %706 = vmatpush2.bf16.msra.mxu0 %v3006_v25  ;;  %v886_v25 = vrot.slane %v3642_v22, %v3527_v36 }
  0x51   : > { %1276 = vmatprep.subr.bf16.mxu0 %v3009_v26 }
  0x55   : > { %1266 = vmatmul.mubr.bf16.gmra.mxu1 %v3498_v24 }
  0x56   : > { %2776 = vmatprep.mubr.msk.bf16.mxu1 %vm3184_vm1, %v3183_v28 }
  0x9d   : > { %v439_v27 = vpop.xlane.xlu0 %438 }
  0x9e   : > { %v444_v29 = vmul.f32 0.00390625, %v439_v27 }
  0xa0   : > { %v446_v30 = vadd.f32 1e-08, %v444_v29  ;;  %v890_v29 = vrot.slane %v3642_v22, %v3530_v37 }
  0xa1   : > { %v442_v31 = vpop.xlane.xlu0 %441 }
  0xa2   : > { %3107 = vrsqrt.f32 %v446_v30  ;;  %v445_v32 = vmul.f32 0.00390625, %v442_v31 }
  0xa4   : > { %v447_v33 = vadd.f32 1e-08, %v445_v32 }
  0xa6   : > { %3109 = vrsqrt.f32 %v447_v33 }
  0xaf   : > { %v3108_v38 = vpop.eup %3107 }
  0xb0   : > { %v451_v40 = vmul.f32 %v3108_v38, %v3285_v6  ;;  %v450_v43 = vmul.f32 %v3108_v38, %v3282_v5  ;;  %v3007_v6 = vld [vmem:[%s4116_s5 + $0xe8] ss:$16 sps:$4 sm:$0xff]  }
  0xb1   : > { %v3010_v5 = vld [vmem:[%s4116_s5 + $0xc8] ss:$16 sps:$4 sm:$0xff]  }
  0xb2   : > { %v466_v48 = vmul.f32 %v462_v42, %v451_v40  ;;  %v465_v50 = vmul.f32 %v458_v41, %v450_v43 }
  0xb3   : > { %v3110_v45 = vpop.eup %3109 }
  0xb4   : > { %v453_v46 = vmul.f32 %v3110_v45, %v3295_v10  ;;  %v452_v47 = vmul.f32 %v3110_v45, %v3288_v7  ;;  %v3015_v7 = vld [vmem:[%s4116_s5 + $0xac] ss:$16 sps:$4 sm:$0xff]   ;;  %v3013_v10 = vld [vmem:[%s4116_s5 + $0xa8] ss:$16 sps:$4 sm:$0xff]  }
  0xb6   : > { %v468_v49 = vmul.f32 %v462_v42, %v453_v46  ;;  %v467_v51 = vmul.f32 %v458_v41, %v452_v47 }
  0xb8   : > { %v470_v52 = vpack.c.bf16 %v468_v49, %v466_v48  ;;  %v469_v53 = vpack.c.bf16 %v467_v51, %v465_v50 }
  0xba   : > { %707 = vmatprep.mubr.bf16.mxu0 %v470_v52 }
  0xbb   : > { %708 = vmatmul.mubr.bf16.vlgmr.msra.gmra.mxu0 %v469_v53 }
  0xbc   : > { %1277 = vmatpush1.bf16.msra.mxu0 %v3007_v6  ;;  %1308 = vmatprep.mubr.bf16.mxu0 %v3390_v44  ;;  %v3016_v44 = vld [vmem:[%s4116_s5 + $0x88] ss:$16 sps:$4 sm:$0xff]  }
  0xbd   : > { %1278 = vmatprep.subr.bf16.mxu0 %v3012_v54 }
  0xc0   : > { %1279 = vmatpush1.bf16.msra.mxu0 %v3010_v5  ;;  %v503_v5 = vld [vmem:[%s4115_s4] sm:$0x3] }
  0xc1   : > { %1280 = vmatprep.subr.bf16.mxu0 %v3015_v7  ;;  %v508_v7 = vrot.slane %v503_v5, %v3527_v36 }
  0xc4   : > { %1281 = vmatpush1.bf16.msra.mxu0 %v3013_v10  ;;  %v512_v10 = vrot.slane %v503_v5, %v3530_v37 }
  0xc5   : > { %1282 = vmatprep.subr.bf16.mxu0 %v3018_v55 }
  0xc8   : > { %1283 = vmatpush1.bf16.msra.mxu0 %v3016_v44 }
  0xc9   : > { %1284 = vmatprep.subr.bf16.mxu0 %v3021_v56 }
  0xcc   : > { %1285 = vmatpush1.bf16.msra.mxu0 %v3019_v57 }
  0xcd   : > { %1286 = vmatprep.subr.bf16.mxu0 %v3024_v58 }
  0xd0   : > { %1287 = vmatpush1.bf16.msra.mxu0 %v3022_v59 }
  0xd1   : > { %1288 = vmatprep.subr.bf16.mxu0 %v3027_v60 }
  0xd4   : > { %1289 = vmatpush1.bf16.msra.mxu0 %v3025_v61 }
  0xd5   : > { %1290 = vmatprep.subr.bf16.mxu0 %v3030_v62 }
  0xd8   : > { %1291 = vmatpush1.bf16.msra.mxu0 %v3028_v63 }
  0xd9   : > { %1292 = vmatprep.subr.bf16.mxu0 %v3033_v0 }
  0xdc   : > { %1293 = vmatpush2.bf16.msra.mxu0 %v3031_v1 }
  0xdd   : > { %1294 = vmatprep.subr.bf16.mxu0 %v3036_v2 }
  0xe0   : > { %1295 = vmatpush2.bf16.msra.mxu0 %v3034_v3 }
  0xe1   : > { %1296 = vmatprep.subr.bf16.mxu0 %v3039_v4 }
  0xe4   : > { %1297 = vmatpush2.bf16.msra.mxu0 %v3037_v8 }
  0xe5   : > { %1298 = vmatprep.subr.bf16.mxu0 %v3042_v9 }
  0xe8   : > { %1299 = vmatpush2.bf16.msra.mxu0 %v3040_v11 }
  0xe9   : > { %1300 = vmatprep.subr.bf16.mxu0 %v3045_v12 }
  0xec   : > { %1301 = vmatpush2.bf16.msra.mxu0 %v3043_v13 }
  0xed   : > { %1302 = vmatprep.subr.bf16.mxu0 %v3048_v14 }
  0xf0   : > { %1303 = vmatpush2.bf16.msra.mxu0 %v3046_v15 }
  0xf1   : > { %1304 = vmatprep.subr.bf16.mxu0 %v3051_v18 }
  0xf4   : > { %1305 = vmatpush2.bf16.msra.mxu0 %v3049_v19 }
  0xf5   : > { %1306 = vmatprep.subr.bf16.mxu0 %v3054_v20 }
  0xf8   : > { %1307 = vmatpush2.bf16.msra.mxu0 %v3052_v21 }
  0xf9   : > { %2756 = vmatprep.subr.bf16.mxu0 %v3183_v28 }
  0xfb   : > { %1309 = vmatmul.mubr.bf16.vlgmr.msra.gmra.mxu0 %v3478_v16 }
  0xfc   : > { %1318 = vmatprep.mubr.bf16.mxu0 %v3480_v17 }
 0x103   : > { %1319 = vmatmul.mubr.bf16.gmra.mxu0 %v3498_v24 }
 0x104   : > { %2760 = vmatprep.mubr.msk.bf16.mxu0 %vm3184_vm1, %v3183_v28 }
 0x10d   : > { %v1257_v23 = vpop.f32.mrf.mxu1 }
 0x10e   : > { %v1258_v27 = vadd.f32 %v1257_v23, %v886_v25 }
 0x10f   : > { %v1259_v26 = vpop.f32.mrf.mxu1 }
 0x110   : > { %v3652_v17 = vadd.f32 %v1259_v26, %v890_v29 }
 0x111   : > { %v1261_v16 = vpop.f32.mrf.mxu1 }
 0x112   : > { %v1262_v24 = vadd.f32 %v1261_v16, %v886_v25  ;;  %v897_v16 = vsub.s32 3, %v3524_v35 }
 0x113   : > { %v1263_v30 = vpop.f32.mrf.mxu1 }
 0x114   : > { %v2849_v31 = vpack.i.bf16 %v1262_v24, %v1258_v27  ;;  %v3654_v32 = vadd.f32 %v1263_v30, %v890_v29  ;;  %v1401_v51 = vpack.c.bf16 %v1262_v24, %v1258_v27  ;;  %v898_v30 = vrot.slane %v3642_v22, %v897_v16 }
 0x115   : > { %v1267_v33 = vpop.f32.mrf.mxu1 }
 0x116   : > { %v2874_v34 = vpack.i.bf16 %v3654_v32, %v3652_v17  ;;  %2850 = vrot.lane.b32.xlu0 %v2849_v31, %s3185_s25  ;;  %v1268_v39 = vadd.f32 %v1267_v33, %v886_v25  ;;  %v1405_v53 = vpack.c.bf16 %v3654_v32, %v3652_v17  ;;  %v1419_v6 = vsel %vm796_vm0, %v1401_v51, 0 }
 0x117   : > { %v1269_v38 = vpop.f32.mrf.mxu1 }
 0x118   : > { %v1270_v41 = vadd.f32 %v1269_v38, %v890_v29  ;;  %v1529_v54 = vsel %vm796_vm0, %v1405_v53, 0 }
 0x119   : > { %v1271_v40 = vpop.f32.mrf.mxu1 }
 0x11a   : > { %v1272_v42 = vadd.f32 %v1271_v40, %v886_v25 }
 0x11b   : > { %v1273_v43 = vpop.f32.mrf.mxu1 }
 0x11c   : > { %v1402_v45 = vpack.c.bf16 %v1272_v42, %v1268_v39  ;;  %v1274_v46 = vadd.f32 %v1273_v43, %v890_v29  ;;  %v2854_v47 = vpack.i.bf16 %v1272_v42, %v1268_v39  ;;  %v893_v29 = vsub.s32 2, %v3524_v35 }
 0x11e   : > { %v2864_v48 = vpack.i.bf16 %v1274_v46, %v1270_v41  ;;  %v1406_v49 = vpack.c.bf16 %v1274_v46, %v1270_v41  ;;  %2855 = vrot.lane.b32.xlu1 %v2854_v47, %s3185_s25  ;;  %v1422_v50 = vsel %vm796_vm0, %v1402_v45, 0  ;;  %v894_v24 = vrot.slane %v3642_v22, %v893_v29 }
 0x11f   : > { %2757 = vmatpush3.bf16.xpose.msra.mxu0 %v1422_v50 }
 0x120   : > { %v1532_v52 = vsel %vm796_vm0, %v1406_v49, 0  ;;  %2758 = vmatprep.subr.bf16.mxu0 %v3183_v28 }
 0x121   : > { %2773 = vmatpush3.bf16.xpose.msra.mxu1 %v1532_v52 }
 0x122   : > { %2774 = vmatprep.subr.bf16.mxu1 %v3183_v28 }
 0x127   : > { %2759 = vmatpush3.bf16.xpose.msra.mxu0 %v1419_v6 }
 0x128   : > { %2764 = vmatprep.subr.bf16.mxu0 %v3183_v28 }
 0x129   : > { %2775 = vmatpush3.bf16.xpose.msra.mxu1 %v1529_v54 }
 0x12a   : > { %2780 = vmatprep.subr.bf16.mxu1 %v3183_v28 }
 0x17b   : > { %v709_v55 = vpop.f32.mrf.mxu0 }
 0x17c   : > { %v710_v44 = vadd.f32 %v709_v55, %v508_v7 }
 0x17d   : > { %v711_v56 = vpop.f32.mrf.mxu0 }
 0x17e   : > { %v718_v57 = vmul.f32 0.125, %v710_v44  ;;  %v712_v58 = vadd.f32 %v711_v56, %v512_v10 }
 0x17f   : > { %v713_v59 = vpop.f32.mrf.mxu0 }
 0x180   : > { %v2724_v60 = vpack.c.bf16 %v718_v57, %v718_v57  ;;  %v719_v61 = vmul.f32 0.125, %v712_v58  ;;  %v714_v62 = vadd.f32 %v713_v59, %v508_v7 }
 0x181   : > { %v715_v63 = vpop.f32.mrf.mxu0 }
 0x182   : > { %771 = vst.msk [vmem:[#allocation2] sm:$0xf] %vm770_vm2, %v2724_v60  ;;  %v2728_v0 = vpack.c.bf16 %v719_v61, %v719_v61  ;;  %v720_v1 = vmul.f32 0.125, %v714_v62  ;;  %v716_v2 = vadd.f32 %v715_v63, %v512_v10 }
 0x184   : > { %775 = vst.msk [vmem:[#allocation2 + $0x10] sm:$0xf] %vm770_vm2, %v2728_v0  ;;  %v2725_v3 = vpack.c.bf16 %v720_v1, %v720_v1  ;;  %v2859_v4 = vpack.i.bf16 %v720_v1, %v718_v57  ;;  %v721_v8 = vmul.f32 0.125, %v716_v2 }
 0x186   : > { %772 = vst.msk [vmem:[#allocation2 + $0x4] sm:$0xf] %vm770_vm2, %v2725_v3  ;;  %v2729_v9 = vpack.c.bf16 %v721_v8, %v721_v8  ;;  %2860 = vrot.lane.b32.xlu1 %v2859_v4, %s3185_s25  ;;  %v2869_v11 = vpack.i.bf16 %v721_v8, %v719_v61 }
 0x188   : > { %776 = vst.msk [vmem:[#allocation2 + $0x14] sm:$0xf] %vm770_vm2, %v2729_v9  ;;  %v2851_v14 = vpop.permute.xlu0 %2850 }
 0x189   : > { %v2853_v21 = vunpack.i.h.bf16 %v2851_v14  ;;  %v2852_v23 = vunpack.i.l.bf16 %v2851_v14 }
 0x18a   : > { %2865 = vrot.lane.b32.xlu1 %v2864_v48, %s3185_s25 }
 0x18b   : > { %v1403_v26 = vpack.c.bf16 %v2853_v21, %v2852_v23  ;;  %v3186_v23 = vmov -1e+30  }
 0x18c   : > { %782 = vst.msk [vmem:[#allocation3 + $0x10] sm:$0xff] %vm779_vm3, %v3186_v23  ;;  %780 = vst.msk [vmem:[#allocation3] sm:$0xff] %vm779_vm3, %v3186_v23 }
 0x18d   : > { %v3055_v12 = vld [vmem:[#allocation2] sm:$0xff]   ;;  %v1474_v27 = vsel %vm796_vm0, %v1403_v26, 0  ;;  %781 = vst.msk [vmem:[#allocation3 + $0x8] sm:$0xff] %vm779_vm3, %v3186_v23  ;;  %783 = vst.msk [vmem:[#allocation3 + $0x18] sm:$0xff] %vm779_vm3, %v3186_v23 }
 0x18e   : > { %2870 = vrot.lane.b32.xlu1 %v2869_v11, %s3185_s25  ;;  %2761 = vmatmul.mubr.msk.bf16.vlgmr.msra.gmra.mxu0 %vm796_vm0, %v3055_v12  ;;  %784 = vst.msk [vmem:[#allocation3 + $0x20] sm:$0xff] %vm779_vm3, %v3186_v23  ;;  %785 = vst.msk [vmem:[#allocation3 + $0x28] sm:$0xff] %vm779_vm3, %v3186_v23 }
 0x18f   : > { %v3056_v15 = vld [vmem:[#allocation2 + $0x10] sm:$0xff]   ;;  %2768 = vmatprep.mubr.msk.bf16.mxu0 %vm3184_vm1, %v3183_v28  ;;  %786 = vst.msk [vmem:[#allocation3 + $0x30] sm:$0xff] %vm779_vm3, %v3186_v23  ;;  %787 = vst.msk [vmem:[#allocation3 + $0x38] sm:$0xff] %vm779_vm3, %v3186_v23 }
 0x190   : > { %v2856_v13 = vpop.permute.xlu1 %2855  ;;  %2777 = vmatmul.mubr.msk.bf16.vlgmr.msra.gmra.mxu1 %vm796_vm0, %v3056_v15 }
 0x191   : > { %v2858_v18 = vunpack.i.h.bf16 %v2856_v13  ;;  %v2857_v19 = vunpack.i.l.bf16 %v2856_v13  ;;  %2784 = vmatprep.mubr.msk.bf16.mxu1 %vm3184_vm1, %v3183_v28 }
 0x192   : > { %2875 = vrot.lane.b32.xlu1 %v2874_v34, %s3185_s25 }
 0x193   : > { %v1404_v20 = vpack.c.bf16 %v2858_v18, %v2857_v19 }
 0x195   : > { %v1477_v25 = vsel %vm796_vm0, %v1404_v20, 0 }
 0x196   : > { %2765 = vmatpush3.bf16.xpose.msra.mxu0 %v1477_v25 }
 0x197   : > { %2766 = vmatprep.subr.bf16.mxu0 %v3183_v28 }
 0x19e   : > { %2767 = vmatpush3.bf16.xpose.msra.mxu0 %v1474_v27 }
 0x19f   : > { %2796 = vmatprep.subr.bf16.mxu0 %v3183_v28 }
 0x1bb   : > { %v1310_v17 = vpop.f32.mrf.mxu0 }
 0x1bc   : > { %v3700_v32 = vadd.f32 %v1310_v17, %v894_v24 }
 0x1bd   : > { %v1312_v31 = vpop.f32.mrf.mxu0 }
 0x1be   : > { %v3702_v34 = vadd.f32 %v1312_v31, %v898_v30 }
 0x1bf   : > { %v1314_v33 = vpop.f32.mrf.mxu0 }
 0x1c0   : > { %v3704_v38 = vadd.f32 %v1314_v33, %v894_v24 }
 0x1c1   : > { %v1316_v39 = vpop.f32.mrf.mxu0 }
 0x1c2   : > { %v2886_v40 = vpack.i.bf16 %v3704_v38, %v3700_v32  ;;  %v3708_v41 = vadd.f32 %v1316_v39, %v898_v30  ;;  %v1876_v11 = vpack.c.bf16 %v3704_v38, %v3700_v32 }
 0x1c3   : > { %v1320_v35 = vpop.f32.mrf.mxu0 }
 0x1c4   : > { %v2896_v42 = vpack.i.bf16 %v3708_v41, %v3702_v34  ;;  %v1880_v22 = vpack.c.bf16 %v3708_v41, %v3702_v34  ;;  %v3714_v46 = vadd.f32 %v1320_v35, %v894_v24  ;;  %v3187_v35 = vmov 0  }
 0x1c5   : > { %v1322_v43 = vpop.f32.mrf.mxu0  ;;  %2879 = vset.pattern.permute.xlu0 %v3187_v35  ;;  %2880 = vset.pattern.permute.xlu1 %v3187_v35 }
 0x1c6   : > { %v3716_v47 = vadd.f32 %v1322_v43, %v898_v30 }
 0x1c7   : > { %v1324_v45 = vpop.f32.mrf.mxu0 }
 0x1c8   : > { %v3718_v48 = vadd.f32 %v1324_v45, %v894_v24 }
 0x1c9   : > { %v1326_v49 = vpop.f32.mrf.mxu0 }
 0x1ca   : > { %v2881_v50 = vpack.i.bf16 %v3718_v48, %v3714_v46  ;;  %v3722_v51 = vadd.f32 %v1326_v49, %v898_v30  ;;  %v1877_v8 = vpack.c.bf16 %v3718_v48, %v3714_v46 }
 0x1cc   : > { %v1881_v52 = vpack.c.bf16 %v3722_v51, %v3716_v47 }
 0x1f8   : > { %v2861_v53 = vpop.permute.xlu1 %2860 }
 0x1f9   : > { %v2863_v6 = vunpack.i.h.bf16 %v2861_v53  ;;  %v2862_v54 = vunpack.i.l.bf16 %v2861_v53 }
 0x1fb   : > { %v2727_v5 = vpack.c.bf16 %v2863_v6, %v2863_v6  ;;  %v2726_v7 = vpack.c.bf16 %v2862_v54, %v2862_v54  ;;  %v3802_v54 = vld [vmem:[#allocation3 + $0x10] sm:$0xff] }
 0x1fc   : > { %v2866_v10 = vpop.permute.xlu1 %2865 }
 0x1fd   : > { %774 = vst.msk [vmem:[#allocation2 + $0xc] sm:$0xf] %vm770_vm2, %v2727_v5  ;;  %773 = vst.msk [vmem:[#allocation2 + $0x8] sm:$0xf] %vm770_vm2, %v2726_v7  ;;  %v2868_v55 = vunpack.i.h.bf16 %v2866_v10  ;;  %v2867_v44 = vunpack.i.l.bf16 %v2866_v10  ;;  %v3807_v10 = vld [vmem:[#allocation3 + $0x18] sm:$0xff] }
 0x1ff   : > { %v1408_v56 = vpack.c.bf16 %v2868_v55, %v2867_v44 }
 0x200   : > { %v2871_v57 = vpop.permute.xlu1 %2870 }
 0x201   : > { %v2873_v58 = vunpack.i.h.bf16 %v2871_v57  ;;  %v2872_v59 = vunpack.i.l.bf16 %v2871_v57  ;;  %v1587_v60 = vsel %vm796_vm0, %v1408_v56, 0  ;;  %v3817_v57 = vld [vmem:[#allocation3] sm:$0xff] }
 0x202   : > { %2781 = vmatpush3.bf16.xpose.msra.mxu1 %v1587_v60 }
 0x203   : > { %v2731_v61 = vpack.c.bf16 %v2873_v58, %v2873_v58  ;;  %v2730_v62 = vpack.c.bf16 %v2872_v59, %v2872_v59  ;;  %2782 = vmatprep.subr.bf16.mxu1 %v3183_v28 }
 0x204   : > { %v2876_v63 = vpop.permute.xlu1 %2875  ;;  %v3057_v0 = vld [vmem:[#allocation2 + $0x8] sm:$0xff]  }
 0x205   : > { %778 = vst.msk [vmem:[#allocation2 + $0x1c] sm:$0xf] %vm770_vm2, %v2731_v61  ;;  %777 = vst.msk [vmem:[#allocation2 + $0x18] sm:$0xf] %vm770_vm2, %v2730_v62  ;;  %v2878_v1 = vunpack.i.h.bf16 %v2876_v63  ;;  %v2877_v2 = vunpack.i.l.bf16 %v2876_v63  ;;  %2769 = vmatmul.mubr.msk.bf16.vlgmr.msra.gmra.mxu0 %vm796_vm0, %v3057_v0  ;;  %v3827_v61 = vld [vmem:[#allocation3 + $0x30] sm:$0xff]  ;;  %v3829_v62 = vld [vmem:[#allocation3 + $0x20] sm:$0xff] }
 0x206   : > { %2800 = vmatprep.mubr.msk.bf16.mxu0 %vm3184_vm1, %v3183_v28 }
 0x207   : > { %v1407_v3 = vpack.c.bf16 %v2878_v1, %v2877_v2 }
 0x209   : > { %v1584_v4 = vsel %vm796_vm0, %v1407_v3, 0 }
 0x20a   : > { %2783 = vmatpush3.bf16.xpose.msra.mxu1 %v1584_v4  ;;  %v3842_v4 = vld [vmem:[#allocation3 + $0x38] sm:$0xff] }
 0x20b   : > { %2788 = vmatprep.subr.bf16.mxu1 %v3183_v28 }
 0x20c   : > { %v3058_v9 = vld [vmem:[#allocation2 + $0x18] sm:$0xff]  }
 0x211   : > { %2785 = vmatmul.mubr.msk.bf16.vlgmr.msra.gmra.mxu1 %vm796_vm0, %v3058_v9 }
 0x212   : > { %2789 = vmatpush3.bf16.msra.mxu1 %v1877_v8  ;;  %2792 = vmatprep.mubr.msk.bf16.mxu1 %vm3184_vm1, %v3183_v28 }
 0x213   : > { %2790 = vmatprep.subr.bf16.mxu1 %v3183_v28 }
 0x216   : > { %2791 = vmatpush3.bf16.msra.mxu1 %v1876_v11 }
 0x217   : > { %2804 = vmatprep.subr.bf16.mxu1 %v3183_v28 }
 0x24e   : > { %v3746_v12 = vpop.f32.mrf.mxu0 }
 0x24f   : > { %v1639_v24 = vsel %vm1638_vm4, %v3746_v12, -inf }
 0x250   : > { %v2762_v13 = vpop.f32.mrf.mxu0  ;;  %v3748_v14 = vpop.f32.mrf.mxu1 }
 0x251   : > { %v1651_v39 = vsel %vm1638_vm4, %v3748_v14, -inf }
 0x252   : > { %v3750_v15 = vpop.f32.mrf.mxu0  ;;  %v2778_v18 = vpop.f32.mrf.mxu1 }
 0x253   : > { %v1642_v53 = vsel %vm1638_vm4, %v3750_v15, -inf  ;;  %v3857_v18 = vld [vmem:[#allocation3 + $0x8] sm:$0xff] }
 0x254   : > { %v2763_v19 = vpop.f32.mrf.mxu0  ;;  %v3752_v20 = vpop.f32.mrf.mxu1 }
 0x255   : > { %v1654_v6 = vsel %vm1638_vm4, %v3752_v20, -inf }
 0x256   : > { %v2779_v21 = vpop.f32.mrf.mxu1 }
 0x2c5   : > { %v3778_v25 = vpop.f32.mrf.mxu0 }
 0x2c6   : > { %v1645_v26 = vsel %vm1638_vm4, %v3778_v25, -inf }
 0x2c7   : > { %1646 = vmax.xlane.f32.xlu1 %v1645_v26  ;;  %v2770_v27 = vpop.f32.mrf.mxu0  ;;  %v3867_v26 = vld [vmem:[#allocation3 + $0x28] sm:$0xff] }
 0x2c9   : > { %v3782_v29 = vpop.f32.mrf.mxu0 }
 0x2ca   : > { %v1648_v16 = vsel %vm1638_vm4, %v3782_v29, -inf }
 0x2cb   : > { %1649 = vmax.xlane.f32.xlu0 %v1648_v16  ;;  %v2771_v17 = vpop.f32.mrf.mxu0 }
 0x2cf   : > { %1640 = vmax.xlane.f32.xlu0 %v1639_v24 }
 0x2d1   : > { %v3788_v30 = vpop.f32.mrf.mxu1 }
 0x2d2   : > { %v1657_v31 = vsel %vm1638_vm4, %v3788_v30, -inf }
 0x2d3   : > { %v2786_v33 = vpop.f32.mrf.mxu1  ;;  %1658 = vmax.xlane.f32.xlu1 %v1657_v31  ;;  %1652 = vmax.xlane.f32.xlu0 %v1651_v39  ;;  %v2891_v31 = vpack.i.bf16 %v3722_v51, %v3716_v47 }
 0x2d5   : > { %v3794_v43 = vpop.f32.mrf.mxu1 }
 0x2d6   : > { %v1660_v45 = vsel %vm1638_vm4, %v3794_v43, -inf }
 0x2d7   : > { %v2787_v49 = vpop.f32.mrf.mxu1  ;;  %1661 = vmax.xlane.f32.xlu1 %v1660_v45 }
 0x2db   : > { %1643 = vmax.xlane.f32.xlu1 %v1642_v53 }
 0x2df   : > { %1655 = vmax.xlane.f32.xlu1 %v1654_v6 }
 0x350   : > { %v1647_v5 = vpop.xlane.xlu1 %1646 }
 0x351   : > { %v3805_v7 = vmax.f32 %v3802_v54, %v1647_v5 }
 0x353   : > { %v1673_v55 = vsub.f32 %v3802_v54, %v3805_v7  ;;  %2078 = vst.msk [vmem:[#allocation3 + $0x10] sm:$0xff] %vm779_vm3, %v3805_v7  ;;  %1707 = vperm.xlu0 %2879, %v3805_v7  }
 0x354   : > { %v1650_v44 = vpop.xlane.xlu0 %1649 }
 0x355   : > { %v3815_v56 = vmax.f32 %v3807_v10, %v1650_v44 }
 0x357   : > { %v1674_v58 = vsub.f32 %v3807_v10, %v3815_v56  ;;  %2079 = vst.msk [vmem:[#allocation3 + $0x18] sm:$0xff] %vm779_vm3, %v3815_v56  ;;  %1712 = vperm.xlu1 %2880, %v3815_v56  }
 0x358   : > { %v1641_v59 = vpop.xlane.xlu0 %1640 }
 0x359   : > { %v3825_v60 = vmax.f32 %v3817_v57, %v1641_v59  ;;  %v1685_v34 = vmul.f32 1.442695, %v1674_v58 }
 0x35b   : > { %v1671_v63 = vsub.f32 %v3817_v57, %v3825_v60  ;;  %2076 = vst.msk [vmem:[#allocation3] sm:$0xff] %vm779_vm3, %v3825_v60  ;;  %1697 = vperm.xlu0 %2879, %v3825_v60  }
 0x35c   : > { %v1659_v0 = vpop.xlane.xlu1 %1658  ;;  %v1653_v2 = vpop.xlane.xlu0 %1652 }
 0x35d   : > { %v3837_v1 = vmax.f32 %v3827_v61, %v1659_v0  ;;  %v3840_v3 = vmax.f32 %v3829_v62, %v1653_v2 }
 0x35f   : > { %v1677_v8 = vsub.f32 %v3827_v61, %v3837_v1  ;;  %2082 = vst.msk [vmem:[#allocation3 + $0x30] sm:$0xff] %vm779_vm3, %v3837_v1  ;;  %1727 = vperm.xlu1 %2880, %v3837_v1   ;;  %v1675_v9 = vsub.f32 %v3829_v62, %v3840_v3  ;;  %2080 = vst.msk [vmem:[#allocation3 + $0x20] sm:$0xff] %vm779_vm3, %v3840_v3  ;;  %1717 = vperm.xlu0 %2879, %v3840_v3   ;;  %v1761_v1 = vld [vmem:[#allocation4 + $0x10] sm:$0xff] }
 0x360   : > { %v1662_v11 = vpop.xlane.xlu1 %1661 }
 0x361   : > { %v3855_v13 = vmax.f32 %v3842_v4, %v1662_v11  ;;  %v1691_v47 = vmul.f32 1.442695, %v1677_v8  ;;  %v1687_v41 = vmul.f32 1.442695, %v1675_v9  ;;  %v1762_v9 = vld [vmem:[#allocation4 + $0x18] sm:$0xff] }
 0x363   : > { %v1678_v19 = vsub.f32 %v3842_v4, %v3855_v13  ;;  %2083 = vst.msk [vmem:[#allocation3 + $0x38] sm:$0xff] %vm779_vm3, %v3855_v13  ;;  %1732 = vperm.xlu1 %2880, %v3855_v13  }
 0x364   : > { %v1644_v21 = vpop.xlane.xlu1 %1643 }
 0x365   : > { %v3865_v23 = vmax.f32 %v3857_v18, %v1644_v21 }
 0x367   : > { %v1672_v27 = vsub.f32 %v3857_v18, %v3865_v23  ;;  %2077 = vst.msk [vmem:[#allocation3 + $0x8] sm:$0xff] %vm779_vm3, %v3865_v23  ;;  %2882 = vrot.lane.b32.xlu1 %v2881_v50, %s3185_s25 }
 0x368   : > { %v1656_v16 = vpop.xlane.xlu1 %1655 }
 0x369   : > { %v3878_v17 = vmax.f32 %v3867_v26, %v1656_v16 }
 0x36b   : > { %v1676_v24 = vsub.f32 %v3867_v26, %v3878_v17  ;;  %2081 = vst.msk [vmem:[#allocation3 + $0x28] sm:$0xff] %vm779_vm3, %v3878_v17  ;;  %2887 = vrot.lane.b32.xlu1 %v2886_v40, %s3185_s25 }
 0x36f   : > { %2892 = vrot.lane.b32.xlu1 %v2891_v31, %s3185_s25 }
 0x373   : > { %2897 = vrot.lane.b32.xlu1 %v2896_v42, %s3185_s25 }
 0x377   : > { %1702 = vperm.xlu1 %2880, %v3865_v23  }
 0x37b   : > { %1722 = vperm.xlu1 %2880, %v3878_v17  }
 0x3ce   : > { %v1708_v46 = vpop.permute.xlu0 %1707 }
 0x3cf   : > { %v1737_v32 = vsub.f32 %v3778_v25, %v1708_v46 }
 0x3d1   : > { %v1747_v33 = vmul.f32 1.442695, %v1737_v32 }
 0x3d2   : > { %v1713_v48 = vpop.permute.xlu1 %1712 }
 0x3d3   : > { %v1738_v50 = vsub.f32 %v3782_v29, %v1713_v48 }
 0x3d5   : > { %v1749_v40 = vmul.f32 1.442695, %v1738_v50 }
 0x3d6   : > { %v1698_v38 = vpop.permute.xlu0 %1697 }
 0x3d7   : > { %3111 = vpow2.f32 %v1749_v40  ;;  %v1735_v29 = vsub.f32 %v3746_v12, %v1698_v38 }
 0x3d8   : > { %3113 = vpow2.f32 %v1747_v33 }
 0x3da   : > { %v1728_v39 = vpop.permute.xlu1 %1727  ;;  %v1718_v45 = vpop.permute.xlu0 %1717 }
 0x3db   : > { %v1741_v35 = vsub.f32 %v3788_v30, %v1728_v39  ;;  %v1739_v42 = vsub.f32 %v3748_v14, %v1718_v45  ;;  %v1743_v30 = vmul.f32 1.442695, %v1735_v29 }
 0x3dd   : > { %v1755_v49 = vmul.f32 1.442695, %v1741_v35  ;;  %v1751_v25 = vmul.f32 1.442695, %v1739_v42 }
 0x3de   : > { %v1733_v53 = vpop.permute.xlu1 %1732 }
 0x3df   : > { %3115 = vpow2.f32 %v1755_v49  ;;  %v1742_v6 = vsub.f32 %v3794_v43, %v1733_v53 }
 0x3e1   : > { %v1757_v5 = vmul.f32 1.442695, %v1742_v6 }
 0x3e2   : > { %v2883_v44 = vpop.permute.xlu1 %2882 }
 0x3e3   : > { %3117 = vpow2.f32 %v1757_v5  ;;  %v2885_v59 = vunpack.i.h.bf16 %v2883_v44  ;;  %v2884_v0 = vunpack.i.l.bf16 %v2883_v44 }
 0x3e4   : > { %3119 = vpow2.f32 %v1751_v25  ;;  %v3112_v14 = vpop.eup %3111 }
 0x3e5   : > { %v1879_v2 = vpack.c.bf16 %v2885_v59, %v2884_v0  ;;  %3121 = vpow2.f32 %v1743_v30  ;;  %v3114_v46 = vpop.eup %3113  ;;  %v1784_v59 = vsel %vm1638_vm4, %v3112_v14, 0.0 }
 0x3e6   : > { %v2888_v11 = vpop.permute.xlu1 %2887  ;;  %v1873_v32 = vpack.c.bf16 %v3112_v14, %v3114_v46  ;;  %v1781_v53 = vsel %vm1638_vm4, %v3114_v46, 0.0 }
 0x3e7   : > { %v2890_v21 = vunpack.i.h.bf16 %v2888_v11  ;;  %v2889_v16 = vunpack.i.l.bf16 %v2888_v11  ;;  %2797 = vmatpush3.bf16.msra.mxu0 %v1879_v2 }
 0x3e8   : > { %2798 = vmatprep.subr.bf16.mxu0 %v3183_v28 }
 0x3e9   : > { %v1878_v31 = vpack.c.bf16 %v2890_v21, %v2889_v16 }
 0x3ea   : > { %v2893_v43 = vpop.permute.xlu1 %2892 }
 0x3eb   : > { %v2895_v12 = vunpack.i.h.bf16 %v2893_v43  ;;  %v2894_v48 = vunpack.i.l.bf16 %v2893_v43  ;;  %2799 = vmatpush3.bf16.msra.mxu0 %v1878_v31 }
 0x3ec   : > { %v3116_v50 = vpop.eup %3115  ;;  %2812 = vmatprep.subr.bf16.mxu0 %v3183_v28 }
 0x3ed   : > { %v1883_v38 = vpack.c.bf16 %v2895_v12, %v2894_v48  ;;  %v1793_v40 = vsel %vm1638_vm4, %v3116_v50, 0.0  ;;  %v1689_v12 = vmul.f32 1.442695, %v1676_v24 }
 0x3ee   : > { %v2898_v33 = vpop.permute.xlu1 %2897  ;;  %1794 = vadd.xlane.f32.xlu0 %v1793_v40  ;;  %2801 = vmatmul.mubr.msk.bf16.vlgmr.msra.gmra.mxu0 %vm1638_vm4, %v1873_v32 }
 0x3ef   : > { %v2900_v39 = vunpack.i.h.bf16 %v2898_v33  ;;  %v2899_v35 = vunpack.i.l.bf16 %v2898_v33  ;;  %2813 = vmatpush3.bf16.msra.mxu0 %v1883_v38  ;;  %2816 = vmatprep.mubr.msk.bf16.mxu0 %vm3184_vm1, %v3183_v28 }
 0x3f0   : > { %v3118_v45 = vpop.eup %3117  ;;  %2814 = vmatprep.subr.bf16.mxu0 %v3183_v28 }
 0x3f1   : > { %v1882_v49 = vpack.c.bf16 %v2900_v39, %v2899_v35  ;;  %v1796_v42 = vsel %vm1638_vm4, %v3118_v45, 0.0  ;;  %v3120_v5 = vpop.eup %3119  ;;  %v1875_v25 = vpack.c.bf16 %v3118_v45, %v3116_v50  ;;  %v1759_v39 = vld [vmem:[#allocation4] sm:$0xff]  ;;  %v1681_v45 = vmul.f32 1.442695, %v1672_v27 }
 0x3f2   : > { %1797 = vadd.xlane.f32.xlu1 %v1796_v42  ;;  %v1703_v6 = vpop.permute.xlu1 %1702  ;;  %1782 = vadd.xlane.f32.xlu0 %v1781_v53  ;;  %v1787_v2 = vsel %vm1638_vm4, %v3120_v5, 0.0  ;;  %v3122_v30 = vpop.eup %3121 }
 0x3f3   : > { %v1736_v29 = vsub.f32 %v3750_v15, %v1703_v6  ;;  %2815 = vmatpush3.bf16.msra.mxu0 %v1882_v49  ;;  %v1693_v15 = vmul.f32 1.442695, %v1678_v19  ;;  %v1775_v16 = vsel %vm1638_vm4, %v3122_v30, 0.0  ;;  %v1764_v6 = vld [vmem:[#allocation4 + $0x28] sm:$0xff] }
 0x3f5   : > { %v1745_v44 = vmul.f32 1.442695, %v1736_v29 }
 0x3f6   : > { %v1723_v0 = vpop.permute.xlu1 %1722  ;;  %2817 = vmatmul.mubr.msk.bf16.vlgmr.msra.gmra.mxu0 %vm1638_vm4, %v1875_v25  ;;  %1785 = vadd.xlane.f32.xlu0 %v1784_v59  ;;  %v1760_v59 = vld [vmem:[#allocation4 + $0x8] sm:$0xff] }
 0x3f7   : > { %3123 = vpow2.f32 %v1745_v44  ;;  %v1740_v11 = vsub.f32 %v3752_v20, %v1723_v0  ;;  %1788 = vadd.xlane.f32.xlu1 %v1787_v2 }
 0x3f9   : > { %v1753_v21 = vmul.f32 1.442695, %v1740_v11 }
 0x3fb   : > { %3125 = vpow2.f32 %v1753_v21  ;;  %1776 = vadd.xlane.f32.xlu1 %v1775_v16  ;;  %v3059_v16 = vld [vmem:[%s4118_s7 + $0x70] ss:$8 sps:$4 sm:$0xff]  }
 0x3fc   : > { %3127 = vpow2.f32 %v1693_v15 }
 0x3fd   : > { %3129 = vpow2.f32 %v1691_v47  ;;  %v1822_v47 = vld [vmem:[#allocation5 + $0x30] sm:$0xff] }
 0x404   : > { %v3124_v14 = vpop.eup %3123 }
 0x405   : > { %v1872_v31 = vpack.c.bf16 %v3124_v14, %v3122_v30  ;;  %v1778_v13 = vsel %vm1638_vm4, %v3124_v14, 0.0  ;;  %v3061_v14 = vld [vmem:[%s4118_s7 + $0x74] ss:$8 sps:$4 sm:$0xff]  }
 0x407   : > { %2793 = vmatmul.mubr.msk.bf16.vlgmr.msra.gmra.mxu1 %vm1638_vm4, %v1872_v31  ;;  %v3064_v31 = vld [vmem:[%s4118_s7 + $0x64] ss:$8 sps:$4 sm:$0xff]  }
 0x408   : > { %v3126_v43 = vpop.eup %3125  ;;  %2805 = vmatpush3.bf16.msra.mxu1 %v1881_v52  ;;  %2808 = vmatprep.mubr.msk.bf16.mxu1 %vm3184_vm1, %v3183_v28  ;;  %v1765_v52 = vld [vmem:[#allocation4 + $0x30] sm:$0xff] }
 0x409   : > { %v1790_v20 = vsel %vm1638_vm4, %v3126_v43, 0.0  ;;  %2806 = vmatprep.subr.bf16.mxu1 %v3183_v28  ;;  %v3128_v4 = vpop.eup %3127  ;;  %v1874_v19 = vpack.c.bf16 %v3126_v43, %v3120_v5  ;;  %v1683_v28 = vmul.f32 1.442695, %v1673_v55  ;;  %v1766_v55 = vld [vmem:[#allocation4 + $0x38] sm:$0xff]  ;;  %v3062_v43 = vld [vmem:[%s4118_s7 + $0x60] ss:$8 sps:$4 sm:$0xff]  }
 0x40a   : > { %1791 = vadd.xlane.f32.xlu0 %v1790_v20  ;;  %v3130_v51 = vpop.eup %3129  ;;  %v1774_v10 = vmul.f32 %v3128_v4, %v1766_v55  ;;  %v3073_v55 = vld [vmem:[%s4118_s7 + $0x34] ss:$8 sps:$4 sm:$0xff]  }
 0x40b   : > { %3131 = vpow2.f32 %v1683_v28  ;;  %v1773_v61 = vmul.f32 %v3130_v51, %v1765_v52  ;;  %v3068_v52 = vld [vmem:[%s4118_s7 + $0x40] ss:$8 sps:$4 sm:$0xff]  }
 0x40c   : > { %2807 = vmatpush3.bf16.msra.mxu1 %v1880_v22  ;;  %1861 = vperm.xlu1 %2880, %v3128_v4   ;;  %3133 = vpow2.f32 %v1685_v34  ;;  %v1679_v22 = vmul.f32 1.442695, %v1671_v63  ;;  %v1763_v63 = vld [vmem:[#allocation4 + $0x20] sm:$0xff]  ;;  %v3067_v4 = vld [vmem:[%s4118_s7 + $0x54] ss:$8 sps:$4 sm:$0xff]  }
 0x40d   : > { %3135 = vpow2.f32 %v1687_v41  ;;  %2385 = vmatprep.subr.bf16.mxu1 %v3061_v14  ;;  %v3070_v34 = vld [vmem:[%s4118_s7 + $0x44] ss:$8 sps:$4 sm:$0xff]   ;;  %v3103_v14 = vld [vmem:[%s4118_s7 + $0x94] ss:$8 sps:$4 sm:$0xff]  }
 0x40e   : > { %1779 = vadd.xlane.f32.xlu0 %v1778_v13  ;;  %3137 = vpow2.f32 %v1679_v22 }
 0x40f   : > { %2809 = vmatmul.mubr.msk.bf16.vlgmr.msra.gmra.mxu1 %vm1638_vm4, %v1874_v19  ;;  %3139 = vpow2.f32 %v1689_v12  ;;  %v3065_v19 = vld [vmem:[%s4118_s7 + $0x50] ss:$8 sps:$4 sm:$0xff]   ;;  %v3080_v12 = vld [vmem:[%s4118_s7] ss:$8 sps:$4 sm:$0xff]  }
 0x410   : > { %3141 = vpow2.f32 %v1681_v45  ;;  %2386 = vmatpush1.bf16.msra.mxu1 %v3059_v16  ;;  %v3091_v45 = vld [vmem:[%s4118_s7 + $0xd4] ss:$8 sps:$4 sm:$0xff]   ;;  %v3101_v16 = vld [vmem:[%s4118_s7 + $0x90] ss:$8 sps:$4 sm:$0xff]  }
 0x411   : > { %2387 = vmatprep.subr.bf16.mxu1 %v3064_v31 }
 0x414   : > { %2388 = vmatpush1.bf16.msra.mxu1 %v3062_v43 }
 0x415   : > { %2389 = vmatprep.subr.bf16.mxu1 %v3067_v4 }
 0x418   : > { %v3132_v54 = vpop.eup %3131  ;;  %2390 = vmatpush1.bf16.msra.mxu1 %v3065_v19 }
 0x419   : > { %v1769_v56 = vmul.f32 %v3132_v54, %v1761_v1  ;;  %v3134_v58 = vpop.eup %3133  ;;  %2391 = vmatprep.subr.bf16.mxu1 %v3070_v34 }
 0x41a   : > { %v3136_v46 = vpop.eup %3135  ;;  %v1770_v48 = vmul.f32 %v3134_v58, %v1762_v9 }
 0x41b   : > { %v1771_v50 = vmul.f32 %v3136_v46, %v1763_v63  ;;  %v3138_v38 = vpop.eup %3137  ;;  %v3082_v63 = vld [vmem:[%s4118_s7 + $0x4] ss:$8 sps:$4 sm:$0xff]  }
 0x41c   : > { %v1767_v26 = vmul.f32 %v3138_v38, %v1759_v39  ;;  %v3140_v27 = vpop.eup %3139  ;;  %2392 = vmatpush1.bf16.msra.mxu1 %v3068_v52  ;;  %v1816_v52 = vld [vmem:[#allocation5] sm:$0xff] }
 0x41d   : > { %v1772_v29 = vmul.f32 %v3140_v27, %v1764_v6  ;;  %v3142_v25 = vpop.eup %3141  ;;  %2393 = vmatprep.subr.bf16.mxu1 %v3073_v55  ;;  %v3100_v6 = vld [vmem:[%s4118_s7 + $0xa4] ss:$8 sps:$4 sm:$0xff]  }
 0x41e   : > { %v1768_v2 = vmul.f32 %v3142_v25, %v1760_v59 }
 0x424   : > { %1856 = vperm.xlu0 %2879, %v3130_v51  }
 0x477   : > { %v1795_v7 = vpop.xlane.xlu0 %1794 }
 0x478   : > { %v1805_v8 = vadd.f32 %v1795_v7, %v1773_v61  ;;  %v1823_v61 = vld [vmem:[#allocation5 + $0x38] sm:$0xff] }
 0x47a   : > { %1814 = vst.msk [vmem:[#allocation4 + $0x30] sm:$0xff] %vm779_vm3, %v1805_v8 }
 0x47b   : > { %v1798_v62 = vpop.xlane.xlu1 %1797  ;;  %v1783_v3 = vpop.xlane.xlu0 %1782 }
 0x47c   : > { %v1806_v57 = vadd.f32 %v1798_v62, %v1774_v10  ;;  %v1801_v60 = vadd.f32 %v1783_v3, %v1769_v56  ;;  %v3071_v56 = vld [vmem:[%s4118_s7 + $0x30] ss:$8 sps:$4 sm:$0xff]   ;;  %v3076_v62 = vld [vmem:[%s4118_s7 + $0x24] ss:$8 sps:$4 sm:$0xff]  }
 0x47d   : > { %2394 = vmatpush1.bf16.msra.mxu1 %v3071_v56 }
 0x47e   : > { %1815 = vst.msk [vmem:[#allocation4 + $0x38] sm:$0xff] %vm779_vm3, %v1806_v57  ;;  %1810 = vst.msk [vmem:[#allocation4 + $0x10] sm:$0xff] %vm779_vm3, %v1801_v60  ;;  %2395 = vmatprep.subr.bf16.mxu1 %v3076_v62  ;;  %v3079_v57 = vld [vmem:[%s4118_s7 + $0x14] ss:$8 sps:$4 sm:$0xff]   ;;  %v3077_v60 = vld [vmem:[%s4118_s7 + $0x10] ss:$8 sps:$4 sm:$0xff]  }
 0x47f   : > { %v1786_v32 = vpop.xlane.xlu0 %1785 }
 0x480   : > { %v1789_v40 = vpop.xlane.xlu1 %1788  ;;  %v1802_v33 = vadd.f32 %v1786_v32, %v1770_v48  ;;  %v3085_v48 = vld [vmem:[%s4118_s7 + $0xf4] ss:$8 sps:$4 sm:$0xff]  }
 0x481   : > { %v1803_v35 = vadd.f32 %v1789_v40, %v1771_v50  ;;  %v2101_v53 = vld [vmem:[#allocation4 + $0x30] sm:$0xff]  ;;  %v3088_v40 = vld [vmem:[%s4118_s7 + $0xe4] ss:$8 sps:$4 sm:$0xff]  }
 0x482   : > { %1811 = vst.msk [vmem:[#allocation4 + $0x18] sm:$0xff] %vm779_vm3, %v1802_v33 }
 0x483   : > { %1812 = vst.msk [vmem:[#allocation4 + $0x20] sm:$0xff] %vm779_vm3, %v1803_v35  ;;  %v3086_v35 = vld [vmem:[%s4118_s7 + $0xe0] ss:$8 sps:$4 sm:$0xff]  }
 0x484   : > { %v1777_v17 = vpop.xlane.xlu1 %1776 }
 0x485   : > { %v1799_v24 = vadd.f32 %v1777_v17, %v1767_v26  ;;  %v2102_v49 = vld [vmem:[#allocation4 + $0x38] sm:$0xff]  ;;  %v2097_v42 = vld [vmem:[#allocation4 + $0x10] sm:$0xff] }
 0x486   : > { %2140 = vperm.xlu0 %2879, %v2102_v49   ;;  %2115 = vperm.xlu1 %2880, %v2097_v42   ;;  %v3094_v49 = vld [vmem:[%s4118_s7 + $0xc4] ss:$8 sps:$4 sm:$0xff]  }
 0x487   : > { %1808 = vst.msk [vmem:[#allocation4] sm:$0xff] %vm779_vm3, %v1799_v24  ;;  %v3089_v24 = vld [vmem:[%s4118_s7 + $0xd0] ss:$8 sps:$4 sm:$0xff]  }
 0x489   : > { %v2098_v23 = vld [vmem:[#allocation4 + $0x18] sm:$0xff] }
 0x48a   : > { %1836 = vperm.xlu0 %2879, %v3132_v54   ;;  %2135 = vperm.xlu1 %2880, %v2101_v53   ;;  %v2099_v18 = vld [vmem:[#allocation4 + $0x20] sm:$0xff]  ;;  %v1862_v54 = vpop.permute.xlu1 %1861 }
 0x48b   : > { %v1871_v10 = vmul.f32 %v1862_v54, %v1823_v61 }
 0x48e   : > { %2125 = vperm.xlu0 %2879, %v2099_v18   ;;  %2120 = vperm.xlu1 %2880, %v2098_v23   ;;  %v2095_v5 = vld [vmem:[#allocation4] sm:$0xff]  ;;  %v3097_v23 = vld [vmem:[%s4118_s7 + $0xb4] ss:$8 sps:$4 sm:$0xff]  }
 0x48f   : > { %v3092_v18 = vld [vmem:[%s4118_s7 + $0xc0] ss:$8 sps:$4 sm:$0xff]  }
 0x492   : > { %2105 = vperm.xlu0 %2879, %v2095_v5   ;;  %1841 = vperm.xlu1 %2880, %v3134_v58   ;;  %v3098_v5 = vld [vmem:[%s4118_s7 + $0xa0] ss:$8 sps:$4 sm:$0xff]  }
 0x493   : > { %v1792_v44 = vpop.xlane.xlu0 %1791 }
 0x494   : > { %v1804_v0 = vadd.f32 %v1792_v44, %v1772_v29  ;;  %v1818_v44 = vld [vmem:[#allocation5 + $0x10] sm:$0xff] }
 0x496   : > { %1813 = vst.msk [vmem:[#allocation4 + $0x28] sm:$0xff] %vm779_vm3, %v1804_v0  ;;  %1846 = vperm.xlu0 %2879, %v3136_v46   ;;  %v3074_v46 = vld [vmem:[%s4118_s7 + $0x20] ss:$8 sps:$4 sm:$0xff]  }
 0x497   : > { %v1780_v30 = vpop.xlane.xlu0 %1779  ;;  %2396 = vmatpush1.bf16.msra.mxu1 %v3074_v46 }
 0x498   : > { %v1800_v11 = vadd.f32 %v1780_v30, %v1768_v2  ;;  %2397 = vmatprep.subr.bf16.mxu1 %v3079_v57 }
 0x49a   : > { %1809 = vst.msk [vmem:[#allocation4 + $0x8] sm:$0xff] %vm779_vm3, %v1800_v11  ;;  %1826 = vperm.xlu0 %2879, %v3138_v38   ;;  %v3083_v38 = vld [vmem:[%s4118_s7 + $0xf0] ss:$8 sps:$4 sm:$0xff]  }
 0x49b   : > { %2398 = vmatpush1.bf16.msra.mxu1 %v3077_v60 }
 0x49c   : > { %2399 = vmatprep.subr.bf16.mxu1 %v3082_v63 }
 0x49d   : > { %v2100_v21 = vld [vmem:[#allocation4 + $0x28] sm:$0xff] }
 0x49e   : > { %2130 = vperm.xlu1 %2880, %v2100_v21  }
 0x49f   : > { %v1857_v51 = vpop.permute.xlu0 %1856  ;;  %2400 = vmatpush1.bf16.msra.mxu1 %v3080_v12 }
 0x4a0   : > { %v1870_v22 = vmul.f32 %v1857_v51, %v1822_v47  ;;  %2401 = vmatprep.subr.bf16.mxu1 %v3085_v48  ;;  %v3106_v51 = vld [vmem:[%s4118_s7 + $0x84] ss:$8 sps:$4 sm:$0xff]  }
 0x4a1   : > { %v2096_v15 = vld [vmem:[#allocation4 + $0x8] sm:$0xff] }
 0x4a2   : > { %2110 = vperm.xlu1 %2880, %v2096_v15   ;;  %v1819_v15 = vld [vmem:[#allocation5 + $0x18] sm:$0xff]  ;;  %v1821_v48 = vld [vmem:[#allocation5 + $0x28] sm:$0xff] }
 0x4a3   : > { %2402 = vmatpush2.bf16.msra.mxu1 %v3083_v38 }
 0x4a4   : > { %2403 = vmatprep.subr.bf16.mxu1 %v3088_v40  ;;  %v1817_v40 = vld [vmem:[#allocation5 + $0x8] sm:$0xff] }
 0x4a6   : > { %1851 = vperm.xlu1 %2880, %v3140_v27   ;;  %v3095_v27 = vld [vmem:[%s4118_s7 + $0xb0] ss:$8 sps:$4 sm:$0xff]  }
 0x4a7   : > { %2404 = vmatpush2.bf16.msra.mxu1 %v3086_v35 }
 0x4a8   : > { %2405 = vmatprep.subr.bf16.mxu1 %v3091_v45 }
 0x4aa   : > { %1831 = vperm.xlu1 %2880, %v3142_v25  }
 0x4ab   : > { %2406 = vmatpush2.bf16.msra.mxu1 %v3089_v24 }
 0x4ac   : > { %2407 = vmatprep.subr.bf16.mxu1 %v3094_v49 }
 0x4ae   : > { %v3975_v20 = vpop.f32.mrf.mxu0 }
 0x4af   : > { %2408 = vmatpush2.bf16.msra.mxu1 %v3092_v18 }
 0x4b0   : > { %v2802_v13 = vpop.f32.mrf.mxu0  ;;  %2409 = vmatprep.subr.bf16.mxu1 %v3097_v23 }
 0x4b2   : > { %v3983_v28 = vpop.f32.mrf.mxu0 }
 0x4b3   : > { %2410 = vmatpush2.bf16.msra.mxu1 %v3095_v27 }
 0x4b4   : > { %v2803_v41 = vpop.f32.mrf.mxu0  ;;  %2411 = vmatprep.subr.bf16.mxu1 %v3100_v6 }
 0x4b5   : > { %v3104_v41 = vld [vmem:[%s4118_s7 + $0x80] ss:$8 sps:$4 sm:$0xff]  }
 0x4b6   : > { %v2053_v7 = vpop.f32.mrf.mxu0 }
 0x4b7   : > { %v2066_v1 = vadd.f32 %v2053_v7, %v1870_v22  ;;  %2412 = vmatpush2.bf16.msra.mxu1 %v3098_v5 }
 0x4b8   : > { %v2818_v8 = vpop.f32.mrf.mxu0  ;;  %2413 = vmatprep.subr.bf16.mxu1 %v3103_v14 }
 0x4b9   : > { %2074 = vst.msk [vmem:[#allocation5 + $0x30] sm:$0xff] %vm796_vm0, %v2066_v1 }
 0x4ba   : > { %v2056_v58 = vpop.f32.mrf.mxu0 }
 0x4bb   : > { %v2067_v3 = vadd.f32 %v2056_v58, %v1871_v10  ;;  %2414 = vmatpush2.bf16.msra.mxu1 %v3101_v16 }
 0x4bc   : > { %v2819_v9 = vpop.f32.mrf.mxu0  ;;  %2415 = vmatprep.subr.bf16.mxu1 %v3106_v51  ;;  %v2429_v51 = vld [vmem:[%s3279_s26 + $0x8] sm:$0xff] }
 0x4bd   : > { %2075 = vst.msk [vmem:[#allocation5 + $0x38] sm:$0xff] %vm796_vm0, %v2067_v3 }
 0x4bf   : > { %2416 = vmatpush2.bf16.msra.mxu1 %v3104_v41 }
 0x4c0   : > { %v2093_v61 = vld [vmem:[#allocation5 + $0x30] sm:$0xff] }
 0x4c4   : > { %v2094_v54 = vld [vmem:[#allocation5 + $0x38] sm:$0xff] }
 0x4c7   : > { %v4020_v50 = vpop.f32.mrf.mxu1 }
 0x4c9   : > { %v2794_v32 = vpop.f32.mrf.mxu1 }
 0x4cb   : > { %v4028_v33 = vpop.f32.mrf.mxu1 }
 0x4cd   : > { %v2795_v39 = vpop.f32.mrf.mxu1 }
 0x4cf   : > { %v2009_v26 = vpop.f32.mrf.mxu1 }
 0x4d1   : > { %v2810_v17 = vpop.f32.mrf.mxu1 }
 0x4d3   : > { %v4042_v42 = vpop.f32.mrf.mxu1 }
 0x4d5   : > { %v2811_v53 = vpop.f32.mrf.mxu1 }
 0x501   : > { %v2116_v29 = vpop.permute.xlu1 %2115  ;;  %v2141_v25 = vpop.permute.xlu0 %2140 }
 0x502   : > { %3143 = vrcp.f32 %v2141_v25 }
 0x505   : > { %v2136_v59 = vpop.permute.xlu1 %2135  ;;  %v1837_v0 = vpop.permute.xlu0 %1836 }
 0x506   : > { %3145 = vrcp.f32 %v2136_v59  ;;  %v1866_v2 = vmul.f32 %v1837_v0, %v1818_v44 }
 0x507   : > { %3147 = vrcp.f32 %v2116_v29 }
 0x508   : > { %v2062_v30 = vadd.f32 %v3975_v20, %v1866_v2  ;;  %v1820_v20 = vld [vmem:[#allocation5 + $0x20] sm:$0xff] }
 0x509   : > { %v2121_v11 = vpop.permute.xlu1 %2120  ;;  %v2126_v21 = vpop.permute.xlu0 %2125 }
 0x50a   : > { %2070 = vst.msk [vmem:[#allocation5 + $0x10] sm:$0xff] %vm796_vm0, %v2062_v30  ;;  %3149 = vrcp.f32 %v2121_v11 }
 0x50b   : > { %3151 = vrcp.f32 %v2126_v21 }
 0x50d   : > { %v1842_v31 = vpop.permute.xlu1 %1841  ;;  %v2106_v43 = vpop.permute.xlu0 %2105 }
 0x50e   : > { %v1867_v4 = vmul.f32 %v1842_v31, %v1819_v15  ;;  %v2213_v31 = vld [vmem:[%s4119_s8] sm:$0x3] }
 0x50f   : > { %v3144_v19 = vpop.eup %3143 }
 0x510   : > { %v2063_v13 = vadd.f32 %v3983_v28, %v1867_v4  ;;  %v2158_v55 = vmul.f32 %v3144_v19, %v2094_v54  ;;  %v2222_v4 = vrot.slane %v2213_v31, %v3530_v37 }
 0x511   : > { %v1847_v47 = vpop.permute.xlu0 %1846  ;;  %v2089_v56 = vld [vmem:[#allocation5 + $0x10] sm:$0xff] }
 0x512   : > { %2071 = vst.msk [vmem:[#allocation5 + $0x18] sm:$0xff] %vm796_vm0, %v2063_v13  ;;  %v1868_v34 = vmul.f32 %v1847_v47, %v1820_v20  ;;  %v2428_v13 = vld [vmem:[%s3279_s26] sm:$0xff] }
 0x513   : > { %v3146_v22 = vpop.eup %3145 }
 0x514   : > { %v2064_v7 = vadd.f32 %v2009_v26, %v1868_v34  ;;  %v2156_v28 = vmul.f32 %v3146_v22, %v2093_v61  ;;  %v3148_v58 = vpop.eup %3147 }
 0x515   : > { %v1827_v1 = vpop.permute.xlu0 %1826  ;;  %v2148_v57 = vmul.f32 %v3148_v58, %v2089_v56 }
 0x516   : > { %2072 = vst.msk [vmem:[#allocation5 + $0x20] sm:$0xff] %vm796_vm0, %v2064_v7  ;;  %v1864_v8 = vmul.f32 %v1827_v1, %v1816_v52  ;;  %v2901_v10 = vpack.i.bf16 %v2158_v55, %v2156_v28  ;;  %v2430_v52 = vld [vmem:[%s3279_s26 + $0x10] sm:$0xff]  ;;  %v2431_v7 = vld [vmem:[%s3279_s26 + $0x18] sm:$0xff] }
 0x517   : > { %v3150_v3 = vpop.eup %3149 }
 0x518   : > { %v2060_v62 = vadd.f32 %v4020_v50, %v1864_v8  ;;  %2902 = vrot.lane.b32.xlu0 %v2901_v10, %s3185_s25  ;;  %v3152_v24 = vpop.eup %3151 }
 0x519   : > { %v2131_v9 = vpop.permute.xlu1 %2130  ;;  %v2090_v46 = vld [vmem:[#allocation5 + $0x18] sm:$0xff] }
 0x51a   : > { %2068 = vst.msk [vmem:[#allocation5] sm:$0xff] %vm796_vm0, %v2060_v62  ;;  %v2150_v60 = vmul.f32 %v3150_v3, %v2090_v46  ;;  %3153 = vrcp.f32 %v2131_v9 }
 0x51b   : > { %3155 = vrcp.f32 %v2106_v43  ;;  %v2218_v43 = vrot.slane %v2213_v31, %v3527_v36 }
 0x51c   : > { %v2906_v63 = vpack.i.bf16 %v2150_v60, %v2148_v57 }
 0x51d   : > { %v2111_v12 = vpop.permute.xlu1 %2110  ;;  %v2091_v26 = vld [vmem:[#allocation5 + $0x20] sm:$0xff] }
 0x51e   : > { %2907 = vrot.lane.b32.xlu1 %v2906_v63, %s3185_s25  ;;  %3157 = vrcp.f32 %v2111_v12 }
 0x521   : > { %v1852_v32 = vpop.permute.xlu1 %1851 }
 0x522   : > { %v1869_v38 = vmul.f32 %v1852_v32, %v1821_v48 }
 0x524   : > { %v2065_v39 = vadd.f32 %v4042_v42, %v1869_v38  ;;  %v2152_v42 = vmul.f32 %v3152_v24, %v2091_v26 }
 0x525   : > { %v1832_v50 = vpop.permute.xlu1 %1831 }
 0x526   : > { %2073 = vst.msk [vmem:[#allocation5 + $0x28] sm:$0xff] %vm796_vm0, %v2065_v39  ;;  %v1865_v35 = vmul.f32 %v1832_v50, %v1817_v40 }
 0x527   : > { %v3154_v49 = vpop.eup %3153 }
 0x528   : > { %v2061_v45 = vadd.f32 %v4028_v33, %v1865_v35  ;;  %v2087_v33 = vld [vmem:[#allocation5] sm:$0xff]  ;;  %v3156_v44 = vpop.eup %3155 }
 0x529   : > { %v2144_v2 = vmul.f32 %v3156_v44, %v2087_v33 }
 0x52a   : > { %2069 = vst.msk [vmem:[#allocation5 + $0x8] sm:$0xff] %vm796_vm0, %v2061_v45 }
 0x52b   : > { %v3158_v59 = vpop.eup %3157 }
 0x52d   : > { %v2092_v17 = vld [vmem:[#allocation5 + $0x28] sm:$0xff] }
 0x52e   : > { %v2154_v27 = vmul.f32 %v3154_v49, %v2092_v17 }
 0x531   : > { %v2088_v29 = vld [vmem:[#allocation5 + $0x8] sm:$0xff] }
 0x532   : > { %v2146_v30 = vmul.f32 %v3158_v59, %v2088_v29 }
 0x58a   : > { %v2903_v53 = vpop.permute.xlu0 %2902 }
 0x58b   : > { %v2905_v18 = vunpack.i.h.bf16 %v2903_v53  ;;  %v2904_v23 = vunpack.i.l.bf16 %v2903_v53 }
 0x58d   : > { %v2177_v6 = vsel %vm796_vm0, %v2152_v42, %v2904_v23  ;;  %v2178_v5 = vsel %vm796_vm0, %v2154_v27, %v2905_v18 }
 0x58e   : > { %v2180_v25 = vpack.c.bf16 %v2178_v5, %v2177_v6 }
 0x590   : > { %v2908_v0 = vpop.permute.xlu1 %2907  ;;  %2417 = vmatprep.mubr.bf16.mxu1 %v2180_v25 }
 0x591   : > { %v2910_v11 = vunpack.i.h.bf16 %v2908_v0  ;;  %v2909_v21 = vunpack.i.l.bf16 %v2908_v0 }
 0x593   : > { %v2176_v15 = vsel %vm796_vm0, %v2146_v30, %v2910_v11  ;;  %v2175_v16 = vsel %vm796_vm0, %v2144_v2, %v2909_v21 }
 0x594   : > { %v2179_v14 = vpack.c.bf16 %v2176_v15, %v2175_v16 }
 0x596   : > { %2418 = vmatmul.mubr.bf16.vlgmr.msra.gmra.mxu1 %v2179_v14 }
 0x656   : > { %v2419_v20 = vpop.f32.mrf.mxu1 }
 0x657   : > { %v2420_v19 = vadd.f32 %v2419_v20, %v2218_v43 }
 0x658   : > { %v2421_v47 = vpop.f32.mrf.mxu1 }
 0x659   : > { %v2432_v34 = vadd.f32 %v2428_v13, %v2420_v19  ;;  %v2422_v41 = vadd.f32 %v2421_v47, %v2222_v4 }
 0x65a   : > { %v2423_v22 = vpop.f32.mrf.mxu1 }
 0x65b   : > { %2436 = vst [vmem:[%s421_s24] sm:$0xff] %v2432_v34  ;;  %v2433_v61 = vadd.f32 %v2429_v51, %v2422_v41  ;;  %v2424_v36 = vadd.f32 %v2423_v22, %v2218_v43 }
 0x65c   : > { %v2425_v54 = vpop.f32.mrf.mxu1 }
 0x65d   : > { %2437 = vst [vmem:[%s421_s24 + $0x8] sm:$0xff] %v2433_v61  ;;  %v2434_v37 = vadd.f32 %v2430_v52, %v2424_v36  ;;  %v2426_v28 = vadd.f32 %v2425_v54, %v2222_v4 }
 0x65f   : > { %2438 = vst [vmem:[%s421_s24 + $0x10] sm:$0xff] %v2434_v37  ;;  %v2435_v55 = vadd.f32 %v2431_v7, %v2426_v28 }
 0x661   : > { %2439 = vst [vmem:[%s421_s24 + $0x18] sm:$0xff] %v2435_v55 }
 0x662 PF: > { %s19_s11 = sadd.s32 1, %s3181_s11   ;;  %s4121_s30 = smov %s3177_s10 }
 0x663   : > { %p16_p5 = scmp.ge.s32.totalorder %s19_s11, 4   ;;  %s4122_s10 = smov %s4124_s12 }
 0x665   :  { %18 = sbr.rel (!%p16_p5) target bundleno = 2 (0x2), region = 97 }

// kernel: decoder_layer.7
= control target key start
LH: loop header
LB: loop body
LE: loop exit
PB: predicated region body
PF: predicated region fallthrough
CT: control target
= control target key end

     0   :  { %s3300_s0 = inlined_call_operand.vmem [shape: f32[32,256], index: 0, kind: input, shape index: {}]   ;;  %s3301_s2 = inlined_call_operand.vmem [shape: bf16[256,512], index: 2, kind: input, shape index: {}]   ;;  %s3302_s4 = inlined_call_operand.vmem [shape: bf16[256,512], index: 4, kind: input, shape index: {}]   ;;  %s3303_s1 = inlined_call_operand.vmem [shape: f32[1,256], index: 1, kind: input, shape index: {}]   ;;  %s3304_s6 = inlined_call_operand.vmem [shape: bf16[512,256], index: 6, kind: input, shape index: {}]   ;;  %s3305_s5 = inlined_call_operand.vmem [shape: f32[1,512], index: 5, kind: input, shape index: {}]   ;;  %s3306_s3 = inlined_call_operand.vmem [shape: f32[1,512], index: 3, kind: input, shape index: {}]   ;;  %s3307_s7 = inlined_call_operand.vmem [shape: f32[1,256], index: 7, kind: input, shape index: {}]   ;;  %s3308_s8 = inlined_call_operand.vmem [shape: f32[32,256], index: 8, kind: output, shape index: {}]  }
   0x1   :  { %v2511_v0 = vld [vmem:[%s3300_s0] sm:$0xff]  ;;  %v2516_v1 = vld [vmem:[%s3300_s0 + $0x8] sm:$0xff]  ;;  %v2521_v2 = vld [vmem:[%s3300_s0 + $0x10] sm:$0xff] }
   0x2   :  { %v42_v3 = vmul.f32 %v2511_v0, %v2511_v0  ;;  %v43_v4 = vmul.f32 %v2516_v1, %v2516_v1  ;;  %v2530_v5 = vld [vmem:[%s3300_s0 + $0x18] sm:$0xff]  ;;  %v44_v6 = vmul.f32 %v2521_v2, %v2521_v2  ;;  %v2537_v7 = vld [vmem:[%s3300_s0 + $0x20] sm:$0xff]  ;;  %v2542_v8 = vld [vmem:[%s3300_s0 + $0x28] sm:$0xff] }
   0x3   :  { %v45_v9 = vmul.f32 %v2530_v5, %v2530_v5  ;;  %v46_v10 = vmul.f32 %v2537_v7, %v2537_v7  ;;  %v47_v11 = vmul.f32 %v2542_v8, %v2542_v8  ;;  %v2553_v12 = vld [vmem:[%s3300_s0 + $0x30] sm:$0xff]  ;;  %v2558_v13 = vld [vmem:[%s3300_s0 + $0x38] sm:$0xff] }
   0x4   :  { %v50_v14 = vadd.f32 %v43_v4, %v42_v3  ;;  %v48_v15 = vmul.f32 %v2553_v12, %v2553_v12  ;;  %v49_v16 = vmul.f32 %v2558_v13, %v2558_v13  ;;  %v2103_v17 = vld [vmem:[%s3301_s2 + $0xe4] ss:$16 sps:$4 sm:$0xff]   ;;  %v2105_v19 = vld [vmem:[%s3301_s2 + $0xec] ss:$16 sps:$4 sm:$0xff]   ;;  %v2107_v20 = vld [vmem:[%s3301_s2 + $0xe0] ss:$16 sps:$4 sm:$0xff]  }
   0x5   :  { %v56_v18 = vadd.f32 %v47_v11, %v46_v10  ;;  %v53_v21 = vadd.f32 %v45_v9, %v44_v6  ;;  %568 = vmatprep.subr.bf16.mxu0 %v2103_v17  ;;  %v2108_v22 = vld [vmem:[%s3301_s2 + $0xe8] ss:$16 sps:$4 sm:$0xff]   ;;  %621 = vmatprep.subr.bf16.mxu1 %v2105_v19  ;;  %v2109_v24 = vld [vmem:[%s3301_s2 + $0xc4] ss:$16 sps:$4 sm:$0xff]   ;;  %v2111_v25 = vld [vmem:[%s3301_s2 + $0xcc] ss:$16 sps:$4 sm:$0xff]  }
   0x6   :  { %51 = vadd.xlane.f32.xlu0 %v50_v14  ;;  %v59_v23 = vadd.f32 %v49_v16, %v48_v15  ;;  %569 = vmatpush1.bf16.msra.mxu0 %v2107_v20  ;;  %v2113_v26 = vld [vmem:[%s3301_s2 + $0xc0] ss:$16 sps:$4 sm:$0xff]   ;;  %v2114_v27 = vld [vmem:[%s3301_s2 + $0xc8] ss:$16 sps:$4 sm:$0xff]   ;;  %v2115_v28 = vld [vmem:[%s3301_s2 + $0xa4] ss:$16 sps:$4 sm:$0xff]  }
   0x7   :  { %57 = vadd.xlane.f32.xlu1 %v56_v18  ;;  %622 = vmatpush1.bf16.msra.mxu1 %v2108_v22  ;;  %v2117_v29 = vld [vmem:[%s3301_s2 + $0xac] ss:$16 sps:$4 sm:$0xff]   ;;  %v2119_v30 = vld [vmem:[%s3301_s2 + $0xa0] ss:$16 sps:$4 sm:$0xff]   ;;  %v2120_v31 = vld [vmem:[%s3301_s2 + $0xa8] ss:$16 sps:$4 sm:$0xff]  }
   0x8   :  { %570 = vmatprep.subr.bf16.mxu0 %v2109_v24  ;;  %623 = vmatprep.subr.bf16.mxu1 %v2111_v25  ;;  %v2121_v32 = vld [vmem:[%s3301_s2 + $0x84] ss:$16 sps:$4 sm:$0xff]   ;;  %v2123_v33 = vld [vmem:[%s3301_s2 + $0x8c] ss:$16 sps:$4 sm:$0xff]   ;;  %v2125_v34 = vld [vmem:[%s3301_s2 + $0x80] ss:$16 sps:$4 sm:$0xff]  }
   0x9   :  { %v2126_v35 = vld [vmem:[%s3301_s2 + $0x88] ss:$16 sps:$4 sm:$0xff]   ;;  %v2127_v36 = vld [vmem:[%s3301_s2 + $0x64] ss:$16 sps:$4 sm:$0xff]   ;;  %v2129_v37 = vld [vmem:[%s3301_s2 + $0x6c] ss:$16 sps:$4 sm:$0xff]  }
   0xa   :  { %54 = vadd.xlane.f32.xlu0 %v53_v21  ;;  %571 = vmatpush1.bf16.msra.mxu0 %v2113_v26  ;;  %v2131_v38 = vld [vmem:[%s3301_s2 + $0x60] ss:$16 sps:$4 sm:$0xff]   ;;  %v2132_v39 = vld [vmem:[%s3301_s2 + $0x68] ss:$16 sps:$4 sm:$0xff]   ;;  %v2133_v40 = vld [vmem:[%s3301_s2 + $0x44] ss:$16 sps:$4 sm:$0xff]  }
   0xb   :  { %60 = vadd.xlane.f32.xlu1 %v59_v23  ;;  %624 = vmatpush1.bf16.msra.mxu1 %v2114_v27  ;;  %v2135_v41 = vld [vmem:[%s3301_s2 + $0x4c] ss:$16 sps:$4 sm:$0xff]   ;;  %v2137_v42 = vld [vmem:[%s3301_s2 + $0x40] ss:$16 sps:$4 sm:$0xff]   ;;  %v2138_v43 = vld [vmem:[%s3301_s2 + $0x48] ss:$16 sps:$4 sm:$0xff]  }
   0xc   :  { %572 = vmatprep.subr.bf16.mxu0 %v2115_v28  ;;  %625 = vmatprep.subr.bf16.mxu1 %v2117_v29  ;;  %v2139_v44 = vld [vmem:[%s3301_s2 + $0x24] ss:$16 sps:$4 sm:$0xff]   ;;  %v2141_v45 = vld [vmem:[%s3301_s2 + $0x2c] ss:$16 sps:$4 sm:$0xff]   ;;  %v2143_v46 = vld [vmem:[%s3301_s2 + $0x20] ss:$16 sps:$4 sm:$0xff]  }
   0xd   :  { %v2144_v47 = vld [vmem:[%s3301_s2 + $0x28] ss:$16 sps:$4 sm:$0xff]   ;;  %v2145_v48 = vld [vmem:[%s3301_s2 + $0x4] ss:$16 sps:$4 sm:$0xff]   ;;  %v2147_v49 = vld [vmem:[%s3301_s2 + $0xc] ss:$16 sps:$4 sm:$0xff]  }
   0xe   :  { %573 = vmatpush1.bf16.msra.mxu0 %v2119_v30  ;;  %v2149_v50 = vld [vmem:[%s3301_s2] ss:$16 sps:$4 sm:$0xff]   ;;  %v2150_v51 = vld [vmem:[%s3301_s2 + $0x8] ss:$16 sps:$4 sm:$0xff]   ;;  %v2151_v52 = vld [vmem:[%s3301_s2 + $0x1e4] ss:$16 sps:$4 sm:$0xff]  }
   0xf   :  { %626 = vmatpush1.bf16.msra.mxu1 %v2120_v31  ;;  %574 = vmatprep.subr.bf16.mxu0 %v2121_v32  ;;  %v2153_v53 = vld [vmem:[%s3301_s2 + $0x1ec] ss:$16 sps:$4 sm:$0xff]   ;;  %v2155_v54 = vld [vmem:[%s3301_s2 + $0x1e0] ss:$16 sps:$4 sm:$0xff]   ;;  %v2156_v55 = vld [vmem:[%s3301_s2 + $0x1e8] ss:$16 sps:$4 sm:$0xff]  }
  0x10   :  { %627 = vmatprep.subr.bf16.mxu1 %v2123_v33  ;;  %v2157_v56 = vld [vmem:[%s3301_s2 + $0x1c4] ss:$16 sps:$4 sm:$0xff]   ;;  %v2159_v57 = vld [vmem:[%s3301_s2 + $0x1cc] ss:$16 sps:$4 sm:$0xff]   ;;  %v2161_v58 = vld [vmem:[%s3301_s2 + $0x1c0] ss:$16 sps:$4 sm:$0xff]  }
  0x11   :  { %v2162_v59 = vld [vmem:[%s3301_s2 + $0x1c8] ss:$16 sps:$4 sm:$0xff]   ;;  %v2163_v60 = vld [vmem:[%s3301_s2 + $0x1a4] ss:$16 sps:$4 sm:$0xff]   ;;  %v2165_v61 = vld [vmem:[%s3301_s2 + $0x1ac] ss:$16 sps:$4 sm:$0xff]  }
  0x12   :  { %575 = vmatpush1.bf16.msra.mxu0 %v2125_v34  ;;  %v2167_v62 = vld [vmem:[%s3301_s2 + $0x1a0] ss:$16 sps:$4 sm:$0xff]   ;;  %v2168_v63 = vld [vmem:[%s3301_s2 + $0x1a8] ss:$16 sps:$4 sm:$0xff]   ;;  %v2169_v3 = vld [vmem:[%s3301_s2 + $0x184] ss:$16 sps:$4 sm:$0xff]  }
  0x13   :  { %628 = vmatpush1.bf16.msra.mxu1 %v2126_v35  ;;  %576 = vmatprep.subr.bf16.mxu0 %v2127_v36  ;;  %v2171_v4 = vld [vmem:[%s3301_s2 + $0x18c] ss:$16 sps:$4 sm:$0xff]   ;;  %v2173_v6 = vld [vmem:[%s3301_s2 + $0x180] ss:$16 sps:$4 sm:$0xff]   ;;  %v2174_v9 = vld [vmem:[%s3301_s2 + $0x188] ss:$16 sps:$4 sm:$0xff]  }
  0x14   :  { %629 = vmatprep.subr.bf16.mxu1 %v2129_v37  ;;  %v2175_v10 = vld [vmem:[%s3301_s2 + $0x164] ss:$16 sps:$4 sm:$0xff]   ;;  %v2177_v11 = vld [vmem:[%s3301_s2 + $0x16c] ss:$16 sps:$4 sm:$0xff]   ;;  %v2179_v14 = vld [vmem:[%s3301_s2 + $0x160] ss:$16 sps:$4 sm:$0xff]  }
  0x15   :  { %v2180_v15 = vld [vmem:[%s3301_s2 + $0x168] ss:$16 sps:$4 sm:$0xff]   ;;  %v2181_v16 = vld [vmem:[%s3301_s2 + $0x144] ss:$16 sps:$4 sm:$0xff]   ;;  %v2183_v17 = vld [vmem:[%s3301_s2 + $0x14c] ss:$16 sps:$4 sm:$0xff]  }
  0x16   :  { %577 = vmatpush1.bf16.msra.mxu0 %v2131_v38  ;;  %v2185_v18 = vld [vmem:[%s3301_s2 + $0x140] ss:$16 sps:$4 sm:$0xff]   ;;  %v2186_v19 = vld [vmem:[%s3301_s2 + $0x148] ss:$16 sps:$4 sm:$0xff]   ;;  %v2187_v20 = vld [vmem:[%s3301_s2 + $0x124] ss:$16 sps:$4 sm:$0xff]  }
  0x17   :  { %630 = vmatpush1.bf16.msra.mxu1 %v2132_v39  ;;  %578 = vmatprep.subr.bf16.mxu0 %v2133_v40  ;;  %v2189_v21 = vld [vmem:[%s3301_s2 + $0x12c] ss:$16 sps:$4 sm:$0xff]   ;;  %v2191_v22 = vld [vmem:[%s3301_s2 + $0x120] ss:$16 sps:$4 sm:$0xff]   ;;  %v2192_v23 = vld [vmem:[%s3301_s2 + $0x128] ss:$16 sps:$4 sm:$0xff]  }
  0x18   :  { %631 = vmatprep.subr.bf16.mxu1 %v2135_v41  ;;  %v2193_v24 = vld [vmem:[%s3301_s2 + $0x104] ss:$16 sps:$4 sm:$0xff]   ;;  %v2195_v25 = vld [vmem:[%s3301_s2 + $0x10c] ss:$16 sps:$4 sm:$0xff]   ;;  %v2197_v26 = vld [vmem:[%s3301_s2 + $0x100] ss:$16 sps:$4 sm:$0xff]  }
  0x19   :  { %v2198_v27 = vld [vmem:[%s3301_s2 + $0x108] ss:$16 sps:$4 sm:$0xff]   ;;  %v2201_v28 = vld [vmem:[%s3302_s4 + $0xe4] ss:$16 sps:$4 sm:$0xff]   ;;  %v2204_v29 = vld [vmem:[%s3302_s4 + $0xec] ss:$16 sps:$4 sm:$0xff]  }
  0x1a   :  { %579 = vmatpush1.bf16.msra.mxu0 %v2137_v42  ;;  %v84_v42 = vlaneseq }
  0x1b   :  { %632 = vmatpush1.bf16.msra.mxu1 %v2138_v43  ;;  %580 = vmatprep.subr.bf16.mxu0 %v2139_v44 }
  0x1c   :  { %633 = vmatprep.subr.bf16.mxu1 %v2141_v45  ;;  %v2762_v43 = vshrl.u32 %v84_v42, 7  ;;  %v41_v45 = vld [vmem:[%s3303_s1] sm:$0x3]  ;;  %v2250_v42 = vld [vmem:[%s3302_s4 + $0x1e8] ss:$16 sps:$4 sm:$0xff]  }
  0x1e   :  { %581 = vmatpush1.bf16.msra.mxu0 %v2143_v46  ;;  %v2765_v44 = vsub.s32 1, %v2762_v43  ;;  %v2771_v46 = vsub.s32 0, %v2762_v43 }
  0x1f   :  { %634 = vmatpush1.bf16.msra.mxu1 %v2144_v47  ;;  %582 = vmatprep.subr.bf16.mxu0 %v2145_v48 }
  0x20   :  { %635 = vmatprep.subr.bf16.mxu1 %v2147_v49 }
  0x22   :  { %583 = vmatpush1.bf16.msra.mxu0 %v2149_v50  ;;  %v91_v50 = vrot.slane %v41_v45, %v2765_v44 }
  0x23   :  { %636 = vmatpush1.bf16.msra.mxu1 %v2150_v51  ;;  %584 = vmatprep.subr.bf16.mxu0 %v2151_v52  ;;  %v87_v52 = vrot.slane %v41_v45, %v2771_v46  ;;  %v2255_v45 = vld [vmem:[%s3302_s4 + $0x1c4] ss:$16 sps:$4 sm:$0xff]  }
  0x24   :  { %637 = vmatprep.subr.bf16.mxu1 %v2153_v53 }
  0x26   :  { %585 = vmatpush2.bf16.msra.mxu0 %v2155_v54 }
  0x27   :  { %638 = vmatpush2.bf16.msra.mxu1 %v2156_v55  ;;  %586 = vmatprep.subr.bf16.mxu0 %v2157_v56 }
  0x28   :  { %639 = vmatprep.subr.bf16.mxu1 %v2159_v57 }
  0x2a   :  { %587 = vmatpush2.bf16.msra.mxu0 %v2161_v58 }
  0x2b   :  { %640 = vmatpush2.bf16.msra.mxu1 %v2162_v59  ;;  %588 = vmatprep.subr.bf16.mxu0 %v2163_v60 }
  0x2c   :  { %641 = vmatprep.subr.bf16.mxu1 %v2165_v61 }
  0x2e   :  { %589 = vmatpush2.bf16.msra.mxu0 %v2167_v62 }
  0x2f   :  { %642 = vmatpush2.bf16.msra.mxu1 %v2168_v63  ;;  %590 = vmatprep.subr.bf16.mxu0 %v2169_v3 }
  0x30   :  { %643 = vmatprep.subr.bf16.mxu1 %v2171_v4 }
  0x32   :  { %591 = vmatpush2.bf16.msra.mxu0 %v2173_v6 }
  0x33   :  { %644 = vmatpush2.bf16.msra.mxu1 %v2174_v9  ;;  %592 = vmatprep.subr.bf16.mxu0 %v2175_v10  ;;  %v2205_v10 = vld [vmem:[%s3302_s4 + $0xc0] ss:$16 sps:$4 sm:$0xff]  }
  0x34   :  { %645 = vmatprep.subr.bf16.mxu1 %v2177_v11  ;;  %v2208_v11 = vld [vmem:[%s3302_s4 + $0xc8] ss:$16 sps:$4 sm:$0xff]  }
  0x36   :  { %593 = vmatpush2.bf16.msra.mxu0 %v2179_v14  ;;  %v2213_v14 = vld [vmem:[%s3302_s4 + $0xa4] ss:$16 sps:$4 sm:$0xff]  }
  0x37   :  { %646 = vmatpush2.bf16.msra.mxu1 %v2180_v15  ;;  %594 = vmatprep.subr.bf16.mxu0 %v2181_v16  ;;  %v2216_v15 = vld [vmem:[%s3302_s4 + $0xac] ss:$16 sps:$4 sm:$0xff]  }
  0x38   :  { %647 = vmatprep.subr.bf16.mxu1 %v2183_v17  ;;  %v2211_v17 = vld [vmem:[%s3302_s4 + $0xa0] ss:$16 sps:$4 sm:$0xff]  }
  0x3a   :  { %595 = vmatpush2.bf16.msra.mxu0 %v2185_v18  ;;  %v2214_v18 = vld [vmem:[%s3302_s4 + $0xa8] ss:$16 sps:$4 sm:$0xff]  }
  0x3b   :  { %648 = vmatpush2.bf16.msra.mxu1 %v2186_v19  ;;  %596 = vmatprep.subr.bf16.mxu0 %v2187_v20  ;;  %v2219_v19 = vld [vmem:[%s3302_s4 + $0x84] ss:$16 sps:$4 sm:$0xff]   ;;  %v2222_v20 = vld [vmem:[%s3302_s4 + $0x8c] ss:$16 sps:$4 sm:$0xff]  }
  0x3c   :  { %649 = vmatprep.subr.bf16.mxu1 %v2189_v21  ;;  %v2217_v21 = vld [vmem:[%s3302_s4 + $0x80] ss:$16 sps:$4 sm:$0xff]  }
  0x3e   :  { %597 = vmatpush2.bf16.msra.mxu0 %v2191_v22  ;;  %v2220_v22 = vld [vmem:[%s3302_s4 + $0x88] ss:$16 sps:$4 sm:$0xff]  }
  0x3f   :  { %650 = vmatpush2.bf16.msra.mxu1 %v2192_v23  ;;  %598 = vmatprep.subr.bf16.mxu0 %v2193_v24  ;;  %v2225_v23 = vld [vmem:[%s3302_s4 + $0x64] ss:$16 sps:$4 sm:$0xff]   ;;  %v2228_v24 = vld [vmem:[%s3302_s4 + $0x6c] ss:$16 sps:$4 sm:$0xff]  }
  0x40   :  { %651 = vmatprep.subr.bf16.mxu1 %v2195_v25  ;;  %v2223_v25 = vld [vmem:[%s3302_s4 + $0x60] ss:$16 sps:$4 sm:$0xff]  }
  0x42   :  { %599 = vmatpush2.bf16.msra.mxu0 %v2197_v26  ;;  %v2226_v26 = vld [vmem:[%s3302_s4 + $0x68] ss:$16 sps:$4 sm:$0xff]  }
  0x43   :  { %652 = vmatpush2.bf16.msra.mxu1 %v2198_v27  ;;  %1080 = vmatprep.subr.bf16.mxu0 %v2201_v28  ;;  %v2231_v27 = vld [vmem:[%s3302_s4 + $0x44] ss:$16 sps:$4 sm:$0xff]   ;;  %v2234_v28 = vld [vmem:[%s3302_s4 + $0x4c] ss:$16 sps:$4 sm:$0xff]  }
  0x44   :  { %1133 = vmatprep.subr.bf16.mxu1 %v2204_v29  ;;  %v2229_v29 = vld [vmem:[%s3302_s4 + $0x40] ss:$16 sps:$4 sm:$0xff]  }
  0x8f   :  { %v52_v30 = vpop.xlane.xlu0 %51 }
  0x90   :  { %v63_v31 = vmul.f32 0.00390625, %v52_v30  ;;  %v58_v32 = vpop.xlane.xlu1 %57  ;;  %v2232_v30 = vld [vmem:[%s3302_s4 + $0x48] ss:$16 sps:$4 sm:$0xff]  }
  0x91   :  { %v65_v33 = vmul.f32 0.00390625, %v58_v32  ;;  %v2240_v32 = vld [vmem:[%s3302_s4 + $0x2c] ss:$16 sps:$4 sm:$0xff]  }
  0x92   :  { %v67_v34 = vadd.f32 1e-08, %v63_v31  ;;  %v2237_v31 = vld [vmem:[%s3302_s4 + $0x24] ss:$16 sps:$4 sm:$0xff]  }
  0x93   :  { %v55_v35 = vpop.xlane.xlu0 %54  ;;  %v69_v36 = vadd.f32 1e-08, %v65_v33  ;;  %v2235_v33 = vld [vmem:[%s3302_s4 + $0x20] ss:$16 sps:$4 sm:$0xff]  }
  0x94   :  { %2391 = vrsqrt.f32 %v67_v34  ;;  %v64_v37 = vmul.f32 0.00390625, %v55_v35  ;;  %v61_v38 = vpop.xlane.xlu1 %60  ;;  %v2238_v34 = vld [vmem:[%s3302_s4 + $0x28] ss:$16 sps:$4 sm:$0xff]   ;;  %v2243_v35 = vld [vmem:[%s3302_s4 + $0x4] ss:$16 sps:$4 sm:$0xff]  }
  0x95   :  { %2393 = vrsqrt.f32 %v69_v36  ;;  %v66_v39 = vmul.f32 0.00390625, %v61_v38  ;;  %v2246_v36 = vld [vmem:[%s3302_s4 + $0xc] ss:$16 sps:$4 sm:$0xff]   ;;  %v2244_v38 = vld [vmem:[%s3302_s4 + $0x8] ss:$16 sps:$4 sm:$0xff]  }
  0x96   :  { %v68_v40 = vadd.f32 1e-08, %v64_v37  ;;  %v2241_v37 = vld [vmem:[%s3302_s4] ss:$16 sps:$4 sm:$0xff]  }
  0x97   :  { %v70_v41 = vadd.f32 1e-08, %v66_v39  ;;  %v2249_v39 = vld [vmem:[%s3302_s4 + $0x1e4] ss:$16 sps:$4 sm:$0xff]  }
  0x98   :  { %2395 = vrsqrt.f32 %v68_v40  ;;  %v2252_v40 = vld [vmem:[%s3302_s4 + $0x1ec] ss:$16 sps:$4 sm:$0xff]  }
  0x99   :  { %2397 = vrsqrt.f32 %v70_v41  ;;  %v2247_v41 = vld [vmem:[%s3302_s4 + $0x1e0] ss:$16 sps:$4 sm:$0xff]  }
  0xa1   :  { %v2392_v47 = vpop.eup %2391 }
  0xa2   :  { %v2394_v48 = vpop.eup %2393  ;;  %v76_v49 = vmul.f32 %v2392_v47, %v2516_v1  ;;  %v75_v51 = vmul.f32 %v2392_v47, %v2511_v0  ;;  %v2258_v47 = vld [vmem:[%s3302_s4 + $0x1cc] ss:$16 sps:$4 sm:$0xff]  }
  0xa3   :  { %v80_v53 = vmul.f32 %v2394_v48, %v2542_v8  ;;  %v79_v0 = vmul.f32 %v2394_v48, %v2537_v7  ;;  %v2199_v8 = vld [vmem:[%s3302_s4 + $0xe0] ss:$16 sps:$4 sm:$0xff]   ;;  %v2210_v7 = vld [vmem:[%s3302_s4 + $0xcc] ss:$16 sps:$4 sm:$0xff]  }
  0xa4   :  { %v95_v58 = vmul.f32 %v91_v50, %v76_v49  ;;  %v94_v61 = vmul.f32 %v87_v52, %v75_v51  ;;  %v2253_v48 = vld [vmem:[%s3302_s4 + $0x1c0] ss:$16 sps:$4 sm:$0xff]   ;;  %v2256_v49 = vld [vmem:[%s3302_s4 + $0x1c8] ss:$16 sps:$4 sm:$0xff]   ;;  %v2264_v51 = vld [vmem:[%s3302_s4 + $0x1ac] ss:$16 sps:$4 sm:$0xff]  }
  0xa5   :  { %v2396_v54 = vpop.eup %2395  ;;  %v99_v62 = vmul.f32 %v91_v50, %v80_v53  ;;  %v98_v6 = vmul.f32 %v87_v52, %v79_v0  ;;  %v2262_v53 = vld [vmem:[%s3302_s4 + $0x1a8] ss:$16 sps:$4 sm:$0xff]  }
  0xa6   :  { %v2398_v55 = vpop.eup %2397  ;;  %v78_v56 = vmul.f32 %v2396_v54, %v2530_v5  ;;  %v77_v57 = vmul.f32 %v2396_v54, %v2521_v2  ;;  %v2202_v2 = vld [vmem:[%s3302_s4 + $0xe8] ss:$16 sps:$4 sm:$0xff]   ;;  %v2267_v54 = vld [vmem:[%s3302_s4 + $0x184] ss:$16 sps:$4 sm:$0xff]  }
  0xa7   :  { %v82_v59 = vmul.f32 %v2398_v55, %v2558_v13  ;;  %v81_v3 = vmul.f32 %v2398_v55, %v2553_v12  ;;  %v2207_v13 = vld [vmem:[%s3302_s4 + $0xc4] ss:$16 sps:$4 sm:$0xff]   ;;  %v2270_v55 = vld [vmem:[%s3302_s4 + $0x18c] ss:$16 sps:$4 sm:$0xff]   ;;  %v2280_v0 = vld [vmem:[%s3302_s4 + $0x148] ss:$16 sps:$4 sm:$0xff]  }
  0xa8   :  { %v97_v60 = vmul.f32 %v91_v50, %v78_v56  ;;  %v96_v1 = vmul.f32 %v87_v52, %v77_v57  ;;  %v2265_v56 = vld [vmem:[%s3302_s4 + $0x180] ss:$16 sps:$4 sm:$0xff]   ;;  %v2268_v57 = vld [vmem:[%s3302_s4 + $0x188] ss:$16 sps:$4 sm:$0xff]  }
  0xa9   :  { %v101_v63 = vmul.f32 %v91_v50, %v82_v59  ;;  %v100_v9 = vmul.f32 %v87_v52, %v81_v3  ;;  %v2261_v50 = vld [vmem:[%s3302_s4 + $0x1a4] ss:$16 sps:$4 sm:$0xff]   ;;  %v2259_v52 = vld [vmem:[%s3302_s4 + $0x1a0] ss:$16 sps:$4 sm:$0xff]   ;;  %v2276_v59 = vld [vmem:[%s3302_s4 + $0x16c] ss:$16 sps:$4 sm:$0xff]  }
  0xaa   :  { %v2100_v4 = vpack.c.bf16 %v97_v60, %v95_v58  ;;  %v2789_v5 = vpack.c.bf16 %v96_v1, %v94_v61  ;;  %v2273_v58 = vld [vmem:[%s3302_s4 + $0x164] ss:$16 sps:$4 sm:$0xff]   ;;  %v2271_v60 = vld [vmem:[%s3302_s4 + $0x160] ss:$16 sps:$4 sm:$0xff]   ;;  %v2274_v61 = vld [vmem:[%s3302_s4 + $0x168] ss:$16 sps:$4 sm:$0xff]  }
  0xab   :  { %v2797_v12 = vpack.c.bf16 %v101_v63, %v99_v62  ;;  %v2815_v16 = vpack.c.bf16 %v100_v9, %v98_v6  ;;  %v2279_v1 = vld [vmem:[%s3302_s4 + $0x144] ss:$16 sps:$4 sm:$0xff]   ;;  %v2282_v62 = vld [vmem:[%s3302_s4 + $0x14c] ss:$16 sps:$4 sm:$0xff]   ;;  %v2277_v63 = vld [vmem:[%s3302_s4 + $0x140] ss:$16 sps:$4 sm:$0xff]  }
  0xac   :  { %600 = vmatprep.mubr.bf16.mxu0 %v2100_v4  ;;  %653 = vmatprep.mubr.bf16.mxu1 %v2100_v4  ;;  %v2285_v3 = vld [vmem:[%s3302_s4 + $0x124] ss:$16 sps:$4 sm:$0xff]   ;;  %v2289_v6 = vld [vmem:[%s3302_s4 + $0x100] ss:$16 sps:$4 sm:$0xff]   ;;  %v2292_v9 = vld [vmem:[%s3302_s4 + $0x108] ss:$16 sps:$4 sm:$0xff]  }
  0xad   :  { %601 = vmatmul.mubr.bf16.vlgmr.msra.gmra.mxu0 %v2789_v5  ;;  %654 = vmatmul.mubr.bf16.vlgmr.msra.gmra.mxu1 %v2789_v5 }
  0xae   :  { %1081 = vmatpush1.bf16.msra.mxu0 %v2199_v8  ;;  %1134 = vmatpush1.bf16.msra.mxu1 %v2202_v2  ;;  %v2283_v8 = vld [vmem:[%s3302_s4 + $0x120] ss:$16 sps:$4 sm:$0xff]   ;;  %v2286_v2 = vld [vmem:[%s3302_s4 + $0x128] ss:$16 sps:$4 sm:$0xff]  }
  0xaf   :  { %1082 = vmatprep.subr.bf16.mxu0 %v2207_v13  ;;  %1135 = vmatprep.subr.bf16.mxu1 %v2210_v7  ;;  %v2291_v13 = vld [vmem:[%s3302_s4 + $0x104] ss:$16 sps:$4 sm:$0xff]   ;;  %v2294_v7 = vld [vmem:[%s3302_s4 + $0x10c] ss:$16 sps:$4 sm:$0xff]  }
  0xb0   :  { %610 = vmatprep.mubr.bf16.mxu0 %v2797_v12  ;;  %663 = vmatprep.mubr.bf16.mxu1 %v2797_v12 }
  0xb2   :  { %1083 = vmatpush1.bf16.msra.mxu0 %v2205_v10  ;;  %1136 = vmatpush1.bf16.msra.mxu1 %v2208_v11  ;;  %v2295_v10 = vld [vmem:[%s3304_s6 + $0x70] ss:$8 sps:$4 sm:$0xff]   ;;  %v2297_v11 = vld [vmem:[%s3304_s6 + $0x74] ss:$8 sps:$4 sm:$0xff]  }
  0xb3   :  { %1084 = vmatprep.subr.bf16.mxu0 %v2213_v14  ;;  %1137 = vmatprep.subr.bf16.mxu1 %v2216_v15  ;;  %v2301_v14 = vld [vmem:[%s3304_s6 + $0x60] ss:$8 sps:$4 sm:$0xff]   ;;  %v2303_v15 = vld [vmem:[%s3304_s6 + $0x64] ss:$8 sps:$4 sm:$0xff]  }
  0xb5   :  { %611 = vmatmul.mubr.bf16.gmra.mxu0 %v2815_v16  ;;  %664 = vmatmul.mubr.bf16.gmra.mxu1 %v2815_v16 }
  0xb6   :  { %1085 = vmatpush1.bf16.msra.mxu0 %v2211_v17  ;;  %1138 = vmatpush1.bf16.msra.mxu1 %v2214_v18  ;;  %v2306_v17 = vld [vmem:[%s3304_s6 + $0x164] ss:$8 sps:$4 sm:$0xff]   ;;  %v2309_v18 = vld [vmem:[%s3304_s6 + $0x54] ss:$8 sps:$4 sm:$0xff]  }
  0xb7   :  { %1112 = vmatprep.mubr.bf16.mxu0 %v2100_v4  ;;  %1165 = vmatprep.mubr.bf16.mxu1 %v2100_v4  ;;  %v2288_v4 = vld [vmem:[%s3302_s4 + $0x12c] ss:$16 sps:$4 sm:$0xff]  }
  0xb8   :  { %1086 = vmatprep.subr.bf16.mxu0 %v2219_v19  ;;  %1139 = vmatprep.subr.bf16.mxu1 %v2222_v20  ;;  %v2307_v19 = vld [vmem:[%s3304_s6 + $0x50] ss:$8 sps:$4 sm:$0xff]   ;;  %v2312_v20 = vld [vmem:[%s3304_s6 + $0x154] ss:$8 sps:$4 sm:$0xff]  }
  0xba   :  { %1087 = vmatpush1.bf16.msra.mxu0 %v2217_v21  ;;  %1140 = vmatpush1.bf16.msra.mxu1 %v2220_v22  ;;  %v2310_v21 = vld [vmem:[%s3304_s6 + $0x150] ss:$8 sps:$4 sm:$0xff]   ;;  %v2315_v22 = vld [vmem:[%s3304_s6 + $0x44] ss:$8 sps:$4 sm:$0xff]  }
  0xbb   :  { %1088 = vmatprep.subr.bf16.mxu0 %v2225_v23  ;;  %1141 = vmatprep.subr.bf16.mxu1 %v2228_v24  ;;  %v2318_v23 = vld [vmem:[%s3304_s6 + $0x144] ss:$8 sps:$4 sm:$0xff]   ;;  %v2313_v24 = vld [vmem:[%s3304_s6 + $0x40] ss:$8 sps:$4 sm:$0xff]  }
  0xbe   :  { %1089 = vmatpush1.bf16.msra.mxu0 %v2223_v25  ;;  %1142 = vmatpush1.bf16.msra.mxu1 %v2226_v26  ;;  %v2316_v25 = vld [vmem:[%s3304_s6 + $0x140] ss:$8 sps:$4 sm:$0xff]   ;;  %v2321_v26 = vld [vmem:[%s3304_s6 + $0x34] ss:$8 sps:$4 sm:$0xff]  }
  0xbf   :  { %1090 = vmatprep.subr.bf16.mxu0 %v2231_v27  ;;  %1143 = vmatprep.subr.bf16.mxu1 %v2234_v28  ;;  %v2324_v27 = vld [vmem:[%s3304_s6 + $0x134] ss:$8 sps:$4 sm:$0xff]   ;;  %v2319_v28 = vld [vmem:[%s3304_s6 + $0x30] ss:$8 sps:$4 sm:$0xff]  }
  0xc2   :  { %1091 = vmatpush1.bf16.msra.mxu0 %v2229_v29  ;;  %1144 = vmatpush1.bf16.msra.mxu1 %v2232_v30  ;;  %v2322_v29 = vld [vmem:[%s3304_s6 + $0x130] ss:$8 sps:$4 sm:$0xff]   ;;  %v2327_v30 = vld [vmem:[%s3304_s6 + $0x24] ss:$8 sps:$4 sm:$0xff]  }
  0xc3   :  { %1092 = vmatprep.subr.bf16.mxu0 %v2237_v31  ;;  %1145 = vmatprep.subr.bf16.mxu1 %v2240_v32  ;;  %v2330_v31 = vld [vmem:[%s3304_s6 + $0x124] ss:$8 sps:$4 sm:$0xff]   ;;  %v2325_v32 = vld [vmem:[%s3304_s6 + $0x20] ss:$8 sps:$4 sm:$0xff]  }
  0xc6   :  { %1093 = vmatpush1.bf16.msra.mxu0 %v2235_v33  ;;  %1146 = vmatpush1.bf16.msra.mxu1 %v2238_v34  ;;  %v2328_v33 = vld [vmem:[%s3304_s6 + $0x120] ss:$8 sps:$4 sm:$0xff]   ;;  %v2333_v34 = vld [vmem:[%s3304_s6 + $0x14] ss:$8 sps:$4 sm:$0xff]  }
  0xc7   :  { %1094 = vmatprep.subr.bf16.mxu0 %v2243_v35  ;;  %1147 = vmatprep.subr.bf16.mxu1 %v2246_v36  ;;  %v2336_v35 = vld [vmem:[%s3304_s6 + $0x114] ss:$8 sps:$4 sm:$0xff]   ;;  %v2331_v36 = vld [vmem:[%s3304_s6 + $0x10] ss:$8 sps:$4 sm:$0xff]  }
  0xca   :  { %1095 = vmatpush1.bf16.msra.mxu0 %v2241_v37  ;;  %1148 = vmatpush1.bf16.msra.mxu1 %v2244_v38  ;;  %v2334_v37 = vld [vmem:[%s3304_s6 + $0x110] ss:$8 sps:$4 sm:$0xff]   ;;  %v2339_v38 = vld [vmem:[%s3304_s6 + $0x4] ss:$8 sps:$4 sm:$0xff]  }
  0xcb   :  { %1096 = vmatprep.subr.bf16.mxu0 %v2249_v39  ;;  %1149 = vmatprep.subr.bf16.mxu1 %v2252_v40  ;;  %v2342_v39 = vld [vmem:[%s3304_s6 + $0x104] ss:$8 sps:$4 sm:$0xff]   ;;  %v2337_v40 = vld [vmem:[%s3304_s6] ss:$8 sps:$4 sm:$0xff]  }
  0xce   :  { %1097 = vmatpush2.bf16.msra.mxu0 %v2247_v41  ;;  %1150 = vmatpush2.bf16.msra.mxu1 %v2250_v42  ;;  %v2340_v41 = vld [vmem:[%s3304_s6 + $0x100] ss:$8 sps:$4 sm:$0xff]   ;;  %v2345_v42 = vld [vmem:[%s3304_s6 + $0xf4] ss:$8 sps:$4 sm:$0xff]  }
  0xcf   :  { %1098 = vmatprep.subr.bf16.mxu0 %v2255_v45  ;;  %1151 = vmatprep.subr.bf16.mxu1 %v2258_v47  ;;  %v2348_v45 = vld [vmem:[%s3304_s6 + $0x1f4] ss:$8 sps:$4 sm:$0xff]   ;;  %v2343_v47 = vld [vmem:[%s3304_s6 + $0xf0] ss:$8 sps:$4 sm:$0xff]  }
  0xd2   :  { %1099 = vmatpush2.bf16.msra.mxu0 %v2253_v48  ;;  %1152 = vmatpush2.bf16.msra.mxu1 %v2256_v49  ;;  %v2346_v48 = vld [vmem:[%s3304_s6 + $0x1f0] ss:$8 sps:$4 sm:$0xff]   ;;  %v2351_v49 = vld [vmem:[%s3304_s6 + $0xe4] ss:$8 sps:$4 sm:$0xff]  }
  0xd3   :  { %1100 = vmatprep.subr.bf16.mxu0 %v2261_v50  ;;  %1153 = vmatprep.subr.bf16.mxu1 %v2264_v51  ;;  %v2354_v50 = vld [vmem:[%s3304_s6 + $0x1e4] ss:$8 sps:$4 sm:$0xff]   ;;  %v2349_v51 = vld [vmem:[%s3304_s6 + $0xe0] ss:$8 sps:$4 sm:$0xff]  }
  0xd6   :  { %1101 = vmatpush2.bf16.msra.mxu0 %v2259_v52  ;;  %1154 = vmatpush2.bf16.msra.mxu1 %v2262_v53  ;;  %v2352_v52 = vld [vmem:[%s3304_s6 + $0x1e0] ss:$8 sps:$4 sm:$0xff]   ;;  %v2357_v53 = vld [vmem:[%s3304_s6 + $0xd4] ss:$8 sps:$4 sm:$0xff]  }
  0xd7   :  { %1102 = vmatprep.subr.bf16.mxu0 %v2267_v54  ;;  %1155 = vmatprep.subr.bf16.mxu1 %v2270_v55  ;;  %v2360_v54 = vld [vmem:[%s3304_s6 + $0x1d4] ss:$8 sps:$4 sm:$0xff]   ;;  %v2355_v55 = vld [vmem:[%s3304_s6 + $0xd0] ss:$8 sps:$4 sm:$0xff]  }
  0xda   :  { %1103 = vmatpush2.bf16.msra.mxu0 %v2265_v56  ;;  %1156 = vmatpush2.bf16.msra.mxu1 %v2268_v57  ;;  %v2358_v56 = vld [vmem:[%s3304_s6 + $0x1d0] ss:$8 sps:$4 sm:$0xff]   ;;  %v2363_v57 = vld [vmem:[%s3304_s6 + $0xc4] ss:$8 sps:$4 sm:$0xff]  }
  0xdb   :  { %1104 = vmatprep.subr.bf16.mxu0 %v2273_v58  ;;  %1157 = vmatprep.subr.bf16.mxu1 %v2276_v59  ;;  %v2366_v58 = vld [vmem:[%s3304_s6 + $0x1c4] ss:$8 sps:$4 sm:$0xff]   ;;  %v2361_v59 = vld [vmem:[%s3304_s6 + $0xc0] ss:$8 sps:$4 sm:$0xff]  }
  0xde   :  { %1105 = vmatpush2.bf16.msra.mxu0 %v2271_v60  ;;  %1158 = vmatpush2.bf16.msra.mxu1 %v2274_v61  ;;  %v2364_v60 = vld [vmem:[%s3304_s6 + $0x1c0] ss:$8 sps:$4 sm:$0xff]   ;;  %v2369_v61 = vld [vmem:[%s3304_s6 + $0xb4] ss:$8 sps:$4 sm:$0xff]  }
  0xdf   :  { %1106 = vmatprep.subr.bf16.mxu0 %v2279_v1  ;;  %1159 = vmatprep.subr.bf16.mxu1 %v2282_v62  ;;  %v2372_v1 = vld [vmem:[%s3304_s6 + $0x1b4] ss:$8 sps:$4 sm:$0xff]   ;;  %v2367_v62 = vld [vmem:[%s3304_s6 + $0xb0] ss:$8 sps:$4 sm:$0xff]  }
  0xe2   :  { %1107 = vmatpush2.bf16.msra.mxu0 %v2277_v63  ;;  %1160 = vmatpush2.bf16.msra.mxu1 %v2280_v0  ;;  %v2370_v63 = vld [vmem:[%s3304_s6 + $0x1b0] ss:$8 sps:$4 sm:$0xff]   ;;  %v2375_v0 = vld [vmem:[%s3304_s6 + $0xa4] ss:$8 sps:$4 sm:$0xff]  }
  0xe3   :  { %1108 = vmatprep.subr.bf16.mxu0 %v2285_v3  ;;  %1161 = vmatprep.subr.bf16.mxu1 %v2288_v4  ;;  %v2378_v3 = vld [vmem:[%s3304_s6 + $0x1a4] ss:$8 sps:$4 sm:$0xff]   ;;  %v2373_v4 = vld [vmem:[%s3304_s6 + $0xa0] ss:$8 sps:$4 sm:$0xff]  }
  0xe6   :  { %1109 = vmatpush2.bf16.msra.mxu0 %v2283_v8  ;;  %1162 = vmatpush2.bf16.msra.mxu1 %v2286_v2  ;;  %v2376_v8 = vld [vmem:[%s3304_s6 + $0x1a0] ss:$8 sps:$4 sm:$0xff]   ;;  %v2379_v2 = vld [vmem:[%s3304_s6 + $0x90] ss:$8 sps:$4 sm:$0xff]  }
  0xe7   :  { %1110 = vmatprep.subr.bf16.mxu0 %v2291_v13  ;;  %1163 = vmatprep.subr.bf16.mxu1 %v2294_v7  ;;  %v2381_v13 = vld [vmem:[%s3304_s6 + $0x94] ss:$8 sps:$4 sm:$0xff]   ;;  %v2382_v7 = vld [vmem:[%s3304_s6 + $0x190] ss:$8 sps:$4 sm:$0xff]  }
  0xea   :  { %1111 = vmatpush2.bf16.msra.mxu0 %v2289_v6  ;;  %1164 = vmatpush2.bf16.msra.mxu1 %v2292_v9  ;;  %v2384_v6 = vld [vmem:[%s3304_s6 + $0x194] ss:$8 sps:$4 sm:$0xff]   ;;  %v2387_v9 = vld [vmem:[%s3304_s6 + $0x84] ss:$8 sps:$4 sm:$0xff]  }
  0xeb   :  { %1698 = vmatprep.subr.bf16.mxu0 %v2297_v11  ;;  %v2385_v11 = vld [vmem:[%s3304_s6 + $0x80] ss:$8 sps:$4 sm:$0xff]  }
  0xed   :  { %1113 = vmatmul.mubr.bf16.vlgmr.msra.gmra.mxu0 %v2789_v5  ;;  %1166 = vmatmul.mubr.bf16.vlgmr.msra.gmra.mxu1 %v2789_v5  ;;  %v2298_v5 = vld [vmem:[%s3304_s6 + $0x170] ss:$8 sps:$4 sm:$0xff]  }
  0xee   :  { %1122 = vmatprep.mubr.bf16.mxu0 %v2797_v12  ;;  %1175 = vmatprep.mubr.bf16.mxu1 %v2797_v12  ;;  %v2300_v12 = vld [vmem:[%s3304_s6 + $0x174] ss:$8 sps:$4 sm:$0xff]  }
  0xef   :  { %1751 = vmatprep.subr.bf16.mxu1 %v2300_v12  ;;  %1699 = vmatpush1.bf16.msra.mxu0 %v2295_v10  ;;  %v2390_v10 = vld [vmem:[%s3304_s6 + $0x184] ss:$8 sps:$4 sm:$0xff]  }
  0xf0   :  { %1752 = vmatpush1.bf16.msra.mxu1 %v2298_v5  ;;  %1700 = vmatprep.subr.bf16.mxu0 %v2303_v15  ;;  %v2388_v5 = vld [vmem:[%s3304_s6 + $0x180] ss:$8 sps:$4 sm:$0xff]  }
  0xf1   :  { %1753 = vmatprep.subr.bf16.mxu1 %v2306_v17 }
  0xf3   :  { %1701 = vmatpush1.bf16.msra.mxu0 %v2301_v14 }
  0xf4   :  { %1702 = vmatprep.subr.bf16.mxu0 %v2309_v18 }
  0xf5   :  { %1123 = vmatmul.mubr.bf16.gmra.mxu0 %v2815_v16  ;;  %1176 = vmatmul.mubr.bf16.gmra.mxu1 %v2815_v16  ;;  %v2304_v16 = vld [vmem:[%s3304_s6 + $0x160] ss:$8 sps:$4 sm:$0xff]  }
  0xf6   :  { %1754 = vmatpush1.bf16.msra.mxu1 %v2304_v16 }
  0xf7   :  { %1755 = vmatprep.subr.bf16.mxu1 %v2312_v20  ;;  %1703 = vmatpush1.bf16.msra.mxu0 %v2307_v19 }
  0xf8   :  { %1704 = vmatprep.subr.bf16.mxu0 %v2315_v22 }
  0xfa   :  { %1756 = vmatpush1.bf16.msra.mxu1 %v2310_v21 }
  0xfb   :  { %1757 = vmatprep.subr.bf16.mxu1 %v2318_v23  ;;  %1705 = vmatpush1.bf16.msra.mxu0 %v2313_v24 }
  0xfc   :  { %1706 = vmatprep.subr.bf16.mxu0 %v2321_v26 }
  0xfe   :  { %1758 = vmatpush1.bf16.msra.mxu1 %v2316_v25 }
  0xff   :  { %1759 = vmatprep.subr.bf16.mxu1 %v2324_v27  ;;  %1707 = vmatpush1.bf16.msra.mxu0 %v2319_v28  ;;  %v738_v27 = vld [vmem:[%s3305_s5] sm:$0xf]  ;;  %v218_v28 = vsub.s32 2, %v2762_v43 }
 0x100   :  { %1708 = vmatprep.subr.bf16.mxu0 %v2327_v30  ;;  %v743_v30 = vrot.slane %v738_v27, %v2771_v46 }
 0x102   :  { %1760 = vmatpush1.bf16.msra.mxu1 %v2322_v29  ;;  %v222_v29 = vsub.s32 3, %v2762_v43 }
 0x103   :  { %1761 = vmatprep.subr.bf16.mxu1 %v2330_v31  ;;  %1709 = vmatpush1.bf16.msra.mxu0 %v2325_v32  ;;  %v751_v31 = vrot.slane %v738_v27, %v218_v28 }
 0x104   :  { %1710 = vmatprep.subr.bf16.mxu0 %v2333_v34  ;;  %v747_v34 = vrot.slane %v738_v27, %v2765_v44 }
 0x106   :  { %1762 = vmatpush1.bf16.msra.mxu1 %v2328_v33 }
 0x107   :  { %1763 = vmatprep.subr.bf16.mxu1 %v2336_v35  ;;  %1711 = vmatpush1.bf16.msra.mxu0 %v2331_v36  ;;  %v755_v35 = vrot.slane %v738_v27, %v222_v29 }
 0x108   :  { %1712 = vmatprep.subr.bf16.mxu0 %v2339_v38 }
 0x10a   :  { %1764 = vmatpush1.bf16.msra.mxu1 %v2334_v37 }
 0x10b   :  { %1765 = vmatprep.subr.bf16.mxu1 %v2342_v39  ;;  %1713 = vmatpush1.bf16.msra.mxu0 %v2337_v40 }
 0x10c   :  { %1714 = vmatprep.subr.bf16.mxu0 %v2345_v42 }
 0x10e   :  { %1766 = vmatpush1.bf16.msra.mxu1 %v2340_v41 }
 0x10f   :  { %1767 = vmatprep.subr.bf16.mxu1 %v2348_v45  ;;  %1715 = vmatpush2.bf16.msra.mxu0 %v2343_v47 }
 0x110   :  { %1716 = vmatprep.subr.bf16.mxu0 %v2351_v49 }
 0x112   :  { %1768 = vmatpush2.bf16.msra.mxu1 %v2346_v48 }
 0x113   :  { %1769 = vmatprep.subr.bf16.mxu1 %v2354_v50  ;;  %1717 = vmatpush2.bf16.msra.mxu0 %v2349_v51 }
 0x114   :  { %1718 = vmatprep.subr.bf16.mxu0 %v2357_v53 }
 0x116   :  { %1770 = vmatpush2.bf16.msra.mxu1 %v2352_v52 }
 0x117   :  { %1771 = vmatprep.subr.bf16.mxu1 %v2360_v54  ;;  %1719 = vmatpush2.bf16.msra.mxu0 %v2355_v55 }
 0x118   :  { %1720 = vmatprep.subr.bf16.mxu0 %v2363_v57 }
 0x11a   :  { %1772 = vmatpush2.bf16.msra.mxu1 %v2358_v56 }
 0x11b   :  { %1773 = vmatprep.subr.bf16.mxu1 %v2366_v58  ;;  %1721 = vmatpush2.bf16.msra.mxu0 %v2361_v59 }
 0x11c   :  { %1722 = vmatprep.subr.bf16.mxu0 %v2369_v61 }
 0x11e   :  { %1774 = vmatpush2.bf16.msra.mxu1 %v2364_v60 }
 0x11f   :  { %1775 = vmatprep.subr.bf16.mxu1 %v2372_v1  ;;  %1723 = vmatpush2.bf16.msra.mxu0 %v2367_v62 }
 0x120   :  { %1724 = vmatprep.subr.bf16.mxu0 %v2375_v0 }
 0x122   :  { %1776 = vmatpush2.bf16.msra.mxu1 %v2370_v63 }
 0x123   :  { %1777 = vmatprep.subr.bf16.mxu1 %v2378_v3  ;;  %1725 = vmatpush2.bf16.msra.mxu0 %v2373_v4 }
 0x124   :  { %1726 = vmatprep.subr.bf16.mxu0 %v2381_v13 }
 0x126   :  { %1778 = vmatpush2.bf16.msra.mxu1 %v2376_v8 }
 0x127   :  { %1779 = vmatprep.subr.bf16.mxu1 %v2384_v6  ;;  %1727 = vmatpush2.bf16.msra.mxu0 %v2379_v2 }
 0x128   :  { %1728 = vmatprep.subr.bf16.mxu0 %v2387_v9 }
 0x12a   :  { %1780 = vmatpush2.bf16.msra.mxu1 %v2382_v7 }
 0x12b   :  { %1781 = vmatprep.subr.bf16.mxu1 %v2390_v10  ;;  %1729 = vmatpush2.bf16.msra.mxu0 %v2385_v11 }
 0x12e   :  { %1782 = vmatpush2.bf16.msra.mxu1 %v2388_v5 }
 0x16d   :  { %v3179_v12 = vpop.f32.mrf.mxu0  ;;  %v3181_v14 = vpop.f32.mrf.mxu1 }
 0x16f   :  { %v3183_v15 = vpop.f32.mrf.mxu0  ;;  %v3185_v16 = vpop.f32.mrf.mxu1 }
 0x171   :  { %v3187_v17 = vpop.f32.mrf.mxu0  ;;  %v3189_v18 = vpop.f32.mrf.mxu1 }
 0x173   :  { %v3191_v19 = vpop.f32.mrf.mxu0  ;;  %v3193_v20 = vpop.f32.mrf.mxu1 }
 0x175   :  { %v3195_v21 = vpop.f32.mrf.mxu0  ;;  %v3197_v22 = vpop.f32.mrf.mxu1 }
 0x177   :  { %v3199_v23 = vpop.f32.mrf.mxu0  ;;  %v3201_v24 = vpop.f32.mrf.mxu1 }
 0x179   :  { %v3203_v25 = vpop.f32.mrf.mxu0  ;;  %v3205_v26 = vpop.f32.mrf.mxu1 }
 0x17b   :  { %v3215_v32 = vpop.f32.mrf.mxu0  ;;  %v3217_v33 = vpop.f32.mrf.mxu1 }
 0x1ad   :  { %v1114_v36 = vpop.f32.mrf.mxu0  ;;  %v1167_v37 = vpop.f32.mrf.mxu1 }
 0x1ae   :  { %v1115_v38 = vadd.f32 %v1114_v36, %v743_v30  ;;  %v1168_v39 = vadd.f32 %v1167_v37, %v751_v31 }
 0x1af   :  { %v1116_v40 = vpop.f32.mrf.mxu0  ;;  %v1169_v41 = vpop.f32.mrf.mxu1 }
 0x1b0   :  { %v2015_v42 = vmul.f32 -1.442695, %v1115_v38  ;;  %v2017_v45 = vmul.f32 -1.442695, %v1168_v39  ;;  %v1117_v47 = vadd.f32 %v1116_v40, %v747_v34  ;;  %v1170_v48 = vadd.f32 %v1169_v41, %v755_v35 }
 0x1b1   :  { %v1118_v49 = vpop.f32.mrf.mxu0  ;;  %v1171_v50 = vpop.f32.mrf.mxu1 }
 0x1b2   :  { %2399 = vpow2.f32 %v2015_v42  ;;  %v2016_v51 = vmul.f32 -1.442695, %v1117_v47  ;;  %v2018_v52 = vmul.f32 -1.442695, %v1170_v48  ;;  %v1119_v53 = vadd.f32 %v1118_v49, %v743_v30 }
 0x1b3   :  { %2401 = vpow2.f32 %v2017_v45  ;;  %v1172_v54 = vadd.f32 %v1171_v50, %v751_v31  ;;  %v1120_v55 = vpop.f32.mrf.mxu0  ;;  %v1173_v56 = vpop.f32.mrf.mxu1 }
 0x1b4   :  { %2403 = vpow2.f32 %v2016_v51  ;;  %v2019_v57 = vmul.f32 -1.442695, %v1119_v53  ;;  %v1121_v58 = vadd.f32 %v1120_v55, %v747_v34  ;;  %v1174_v59 = vadd.f32 %v1173_v56, %v755_v35 }
 0x1b5   :  { %2405 = vpow2.f32 %v2018_v52  ;;  %v2021_v60 = vmul.f32 -1.442695, %v1172_v54  ;;  %v1124_v61 = vpop.f32.mrf.mxu0  ;;  %v1177_v1 = vpop.f32.mrf.mxu1 }
 0x1b6   :  { %2407 = vpow2.f32 %v2019_v57  ;;  %v2020_v62 = vmul.f32 -1.442695, %v1121_v58  ;;  %v2022_v63 = vmul.f32 -1.442695, %v1174_v59  ;;  %v1125_v0 = vadd.f32 %v1124_v61, %v743_v30 }
 0x1b7   :  { %2409 = vpow2.f32 %v2021_v60  ;;  %v1178_v3 = vadd.f32 %v1177_v1, %v751_v31  ;;  %v1126_v4 = vpop.f32.mrf.mxu0  ;;  %v1179_v8 = vpop.f32.mrf.mxu1 }
 0x1b8   :  { %2411 = vpow2.f32 %v2020_v62  ;;  %v2023_v2 = vmul.f32 -1.442695, %v1125_v0  ;;  %v1127_v13 = vadd.f32 %v1126_v4, %v747_v34  ;;  %v1180_v7 = vadd.f32 %v1179_v8, %v755_v35 }
 0x1b9   :  { %2413 = vpow2.f32 %v2022_v63  ;;  %v2025_v6 = vmul.f32 -1.442695, %v1178_v3  ;;  %v1128_v9 = vpop.f32.mrf.mxu0  ;;  %v1181_v10 = vpop.f32.mrf.mxu1 }
 0x1ba   :  { %2415 = vpow2.f32 %v2023_v2  ;;  %v2024_v11 = vmul.f32 -1.442695, %v1127_v13  ;;  %v2026_v5 = vmul.f32 -1.442695, %v1180_v7  ;;  %v1129_v27 = vadd.f32 %v1128_v9, %v743_v30 }
 0x1bb   :  { %2417 = vpow2.f32 %v2025_v6  ;;  %v1182_v36 = vadd.f32 %v1181_v10, %v751_v31  ;;  %v1130_v37 = vpop.f32.mrf.mxu0  ;;  %v1183_v38 = vpop.f32.mrf.mxu1  ;;  %v206_v10 = vld [vmem:[%s3306_s3] sm:$0xf] }
 0x1bc   :  { %2419 = vpow2.f32 %v2024_v11  ;;  %v2027_v39 = vmul.f32 -1.442695, %v1129_v27  ;;  %v1131_v40 = vadd.f32 %v1130_v37, %v747_v34  ;;  %v1184_v41 = vadd.f32 %v1183_v38, %v755_v35 }
 0x1bd   :  { %2421 = vpow2.f32 %v2026_v5  ;;  %v2029_v42 = vmul.f32 -1.442695, %v1182_v36  ;;  %v215_v37 = vrot.slane %v206_v10, %v2765_v44 }
 0x1be   :  { %2423 = vpow2.f32 %v2027_v39  ;;  %v2028_v45 = vmul.f32 -1.442695, %v1131_v40  ;;  %v2030_v47 = vmul.f32 -1.442695, %v1184_v41  ;;  %v211_v39 = vrot.slane %v206_v10, %v2771_v46 }
 0x1bf   :  { %v2400_v48 = vpop.eup %2399  ;;  %2425 = vpow2.f32 %v2029_v42  ;;  %v223_v40 = vrot.slane %v206_v10, %v222_v29  ;;  %v219_v42 = vrot.slane %v206_v10, %v218_v28 }
 0x1c0   :  { %v2402_v49 = vpop.eup %2401  ;;  %v1234_v50 = vadd.f32 1.0, %v2400_v48  ;;  %2427 = vpow2.f32 %v2028_v45 }
 0x1c1   :  { %v2404_v51 = vpop.eup %2403  ;;  %v1236_v30 = vadd.f32 1.0, %v2402_v49  ;;  %2429 = vpow2.f32 %v2030_v47  ;;  %v607_v47 = vadd.f32 %v3187_v17, %v211_v39  ;;  %v605_v49 = vadd.f32 %v3183_v15, %v215_v37 }
 0x1c2   :  { %v2406_v31 = vpop.eup %2405  ;;  %2431 = vrcp.f32 %v1234_v50  ;;  %v1235_v52 = vadd.f32 1.0, %v2404_v51  ;;  %v660_v50 = vadd.f32 %v3189_v18, %v219_v42  ;;  %v609_v51 = vadd.f32 %v3191_v19, %v215_v37 }
 0x1c3   :  { %v2408_v53 = vpop.eup %2407  ;;  %2433 = vrcp.f32 %v1236_v30  ;;  %v1237_v34 = vadd.f32 1.0, %v2406_v31  ;;  %v603_v31 = vadd.f32 %v3179_v12, %v211_v39  ;;  %v658_v29 = vadd.f32 %v3185_v16, %v223_v40 }
 0x1c4   :  { %v2410_v35 = vpop.eup %2409  ;;  %2435 = vrcp.f32 %v1235_v52  ;;  %v1238_v54 = vadd.f32 1.0, %v2408_v53  ;;  %v662_v52 = vadd.f32 %v3193_v20, %v223_v40  ;;  %v656_v28 = vadd.f32 %v3181_v14, %v219_v42 }
 0x1c5   :  { %v2412_v55 = vpop.eup %2411  ;;  %2437 = vrcp.f32 %v1237_v34  ;;  %v1240_v56 = vadd.f32 1.0, %v2410_v35 }
 0x1c6   :  { %v2414_v57 = vpop.eup %2413  ;;  %2439 = vrcp.f32 %v1238_v54  ;;  %v1239_v58 = vadd.f32 1.0, %v2412_v55 }
 0x1c7   :  { %v2416_v59 = vpop.eup %2415  ;;  %2441 = vrcp.f32 %v1240_v56  ;;  %v1241_v60 = vadd.f32 1.0, %v2414_v57 }
 0x1c8   :  { %v2418_v61 = vpop.eup %2417  ;;  %2443 = vrcp.f32 %v1239_v58  ;;  %v1242_v1 = vadd.f32 1.0, %v2416_v59 }
 0x1c9   :  { %v2420_v62 = vpop.eup %2419  ;;  %2445 = vrcp.f32 %v1241_v60  ;;  %v1244_v63 = vadd.f32 1.0, %v2418_v61  ;;  %v617_v61 = vadd.f32 %v3203_v25, %v211_v39  ;;  %v666_v25 = vadd.f32 %v3197_v22, %v219_v42 }
 0x1ca   :  { %v2422_v0 = vpop.eup %2421  ;;  %2447 = vrcp.f32 %v1242_v1  ;;  %v1243_v3 = vadd.f32 1.0, %v2420_v62  ;;  %v615_v1 = vadd.f32 %v3199_v23, %v215_v37  ;;  %v670_v62 = vadd.f32 %v3205_v26, %v219_v42 }
 0x1cb   :  { %v2424_v4 = vpop.eup %2423  ;;  %2449 = vrcp.f32 %v1244_v63  ;;  %v1245_v8 = vadd.f32 1.0, %v2422_v0  ;;  %v619_v63 = vadd.f32 %v3215_v32, %v215_v37 }
 0x1cc   :  { %v2426_v2 = vpop.eup %2425  ;;  %2451 = vrcp.f32 %v1243_v3  ;;  %v1246_v13 = vadd.f32 1.0, %v2424_v4  ;;  %v613_v3 = vadd.f32 %v3195_v21, %v211_v39  ;;  %v668_v4 = vadd.f32 %v3201_v24, %v223_v40  ;;  %v1847_v24 = vld [vmem:[%s3307_s7] sm:$0x3] }
 0x1cd   :  { %v2428_v7 = vpop.eup %2427  ;;  %2453 = vrcp.f32 %v1245_v8  ;;  %v1248_v6 = vadd.f32 1.0, %v2426_v2  ;;  %v672_v8 = vadd.f32 %v3217_v33, %v223_v40 }
 0x1ce   :  { %v2430_v9 = vpop.eup %2429  ;;  %2455 = vrcp.f32 %v1246_v13  ;;  %v1247_v11 = vadd.f32 1.0, %v2428_v7 }
 0x1cf   :  { %v2432_v5 = vpop.eup %2431  ;;  %2457 = vrcp.f32 %v1248_v6  ;;  %v1249_v27 = vadd.f32 1.0, %v2430_v9 }
 0x1d0   :  { %v2434_v36 = vpop.eup %2433  ;;  %2459 = vrcp.f32 %v1247_v11  ;;  %v1282_v18 = vmul.f32 %v2432_v5, %v603_v31 }
 0x1d1   :  { %v2436_v38 = vpop.eup %2435  ;;  %2461 = vrcp.f32 %v1249_v27  ;;  %v1284_v57 = vmul.f32 %v2434_v36, %v656_v28  ;;  %v1823_v36 = vld [vmem:[%s3300_s0] sm:$0xff] }
 0x1d2   :  { %v2438_v41 = vpop.eup %2437  ;;  %v1283_v34 = vmul.f32 %v2436_v38, %v605_v49  ;;  %v1852_v38 = vrot.slane %v1847_v24, %v2771_v46 }
 0x1d3   :  { %v2440_v45 = vpop.eup %2439  ;;  %v1285_v15 = vmul.f32 %v2438_v41, %v658_v29  ;;  %v1824_v41 = vld [vmem:[%s3300_s0 + $0x8] sm:$0xff] }
 0x1d4   :  { %v2442_v48 = vpop.eup %2441  ;;  %v1286_v53 = vmul.f32 %v2440_v45, %v607_v47  ;;  %v1856_v47 = vrot.slane %v1847_v24, %v2765_v44 }
 0x1d5   :  { %v2444_v30 = vpop.eup %2443  ;;  %v1288_v35 = vmul.f32 %v2442_v48, %v660_v50  ;;  %v1825_v50 = vld [vmem:[%s3300_s0 + $0x10] sm:$0xff] }
 0x1d6   :  { %v2446_v43 = vpop.eup %2445  ;;  %v1287_v17 = vmul.f32 %v2444_v30, %v609_v51  ;;  %v1306_v59 = vpack.c.bf16 %v1286_v53, %v1282_v18 }
 0x1d7   :  { %v2448_v54 = vpop.eup %2447  ;;  %v1289_v55 = vmul.f32 %v2446_v43, %v662_v52  ;;  %v1308_v20 = vpack.c.bf16 %v1288_v35, %v1284_v57  ;;  %v1826_v52 = vld [vmem:[%s3300_s0 + $0x18] sm:$0xff] }
 0x1d8   :  { %v2450_v56 = vpop.eup %2449  ;;  %v1307_v19 = vpack.c.bf16 %v1287_v17, %v1283_v34  ;;  %v1290_v26 = vmul.f32 %v2448_v54, %v613_v3  ;;  %v1827_v17 = vld [vmem:[%s3300_s0 + $0x20] sm:$0xff] }
 0x1d9   :  { %v2452_v58 = vpop.eup %2451  ;;  %v1309_v12 = vpack.c.bf16 %v1289_v55, %v1285_v15  ;;  %v1292_v32 = vmul.f32 %v2450_v56, %v666_v25  ;;  %v1828_v56 = vld [vmem:[%s3300_s0 + $0x28] sm:$0xff] }
 0x1da   :  { %v2454_v16 = vpop.eup %2453  ;;  %1730 = vmatprep.mubr.bf16.mxu0 %v1307_v19  ;;  %v1291_v7 = vmul.f32 %v2452_v58, %v615_v1 }
 0x1db   :  { %v2456_v60 = vpop.eup %2455  ;;  %1783 = vmatprep.mubr.bf16.mxu1 %v1309_v12  ;;  %1731 = vmatmul.mubr.bf16.vlgmr.msra.gmra.mxu0 %v1306_v59  ;;  %v1293_v23 = vmul.f32 %v2454_v16, %v668_v4  ;;  %v1829_v16 = vld [vmem:[%s3300_s0 + $0x30] sm:$0xff] }
 0x1dc   :  { %v2458_v14 = vpop.eup %2457  ;;  %1784 = vmatmul.mubr.bf16.vlgmr.msra.gmra.mxu1 %v1308_v20  ;;  %v1294_v2 = vmul.f32 %v2456_v60, %v617_v61 }
 0x1dd   :  { %v2460_v0 = vpop.eup %2459  ;;  %v1296_v9 = vmul.f32 %v2458_v14, %v670_v62  ;;  %v1830_v62 = vld [vmem:[%s3300_s0 + $0x38] sm:$0xff] }
 0x1de   :  { %v2462_v13 = vpop.eup %2461  ;;  %v1295_v6 = vmul.f32 %v2460_v0, %v619_v63  ;;  %v1310_v27 = vpack.c.bf16 %v1294_v2, %v1290_v26 }
 0x1df   :  { %v1297_v10 = vmul.f32 %v2462_v13, %v672_v8  ;;  %v1312_v21 = vpack.c.bf16 %v1296_v9, %v1292_v32 }
 0x1e0   :  { %v1311_v11 = vpack.c.bf16 %v1295_v6, %v1291_v7 }
 0x1e1   :  { %v1313_v5 = vpack.c.bf16 %v1297_v10, %v1293_v23 }
 0x1e2   :  { %1740 = vmatprep.mubr.bf16.mxu0 %v1311_v11 }
 0x1e3   :  { %1793 = vmatprep.mubr.bf16.mxu1 %v1313_v5  ;;  %1741 = vmatmul.mubr.bf16.gmra.mxu0 %v1310_v27 }
 0x1e4   :  { %1794 = vmatmul.mubr.bf16.gmra.mxu1 %v1312_v21 }
 0x29b   :  { %v1732_v22 = vpop.f32.mrf.mxu0 }
 0x29c   :  { %v1785_v33 = vpop.f32.mrf.mxu1 }
 0x29d   :  { %v1786_v37 = vadd.f32 %v1785_v33, %v1732_v22  ;;  %v1734_v39 = vpop.f32.mrf.mxu0 }
 0x29e   :  { %v1787_v40 = vpop.f32.mrf.mxu1 }
 0x29f   :  { %v1839_v42 = vadd.f32 %v1823_v36, %v1786_v37  ;;  %v1788_v45 = vadd.f32 %v1787_v40, %v1734_v39  ;;  %v1736_v48 = vpop.f32.mrf.mxu0 }
 0x2a0   :  { %v1789_v49 = vpop.f32.mrf.mxu1 }
 0x2a1   :  { %v1859_v51 = vadd.f32 %v1852_v38, %v1839_v42  ;;  %v1840_v30 = vadd.f32 %v1824_v41, %v1788_v45  ;;  %v1790_v31 = vadd.f32 %v1789_v49, %v1736_v48  ;;  %v1738_v46 = vpop.f32.mrf.mxu0 }
 0x2a2   :  { %v1791_v29 = vpop.f32.mrf.mxu1 }
 0x2a3   :  { %1867 = vst [vmem:[%s3308_s8] sm:$0xff] %v1859_v51  ;;  %v1860_v44 = vadd.f32 %v1856_v47, %v1840_v30  ;;  %v1841_v53 = vadd.f32 %v1825_v50, %v1790_v31  ;;  %v1792_v43 = vadd.f32 %v1791_v29, %v1738_v46  ;;  %v1742_v28 = vpop.f32.mrf.mxu0 }
 0x2a4   :  { %v1795_v34 = vpop.f32.mrf.mxu1 }
 0x2a5   :  { %1868 = vst [vmem:[%s3308_s8 + $0x8] sm:$0xff] %v1860_v44  ;;  %v1861_v35 = vadd.f32 %v1852_v38, %v1841_v53  ;;  %v1842_v54 = vadd.f32 %v1826_v52, %v1792_v43  ;;  %v1796_v15 = vadd.f32 %v1795_v34, %v1742_v28  ;;  %v1744_v55 = vpop.f32.mrf.mxu0 }
 0x2a6   :  { %v1797_v18 = vpop.f32.mrf.mxu1 }
 0x2a7   :  { %1869 = vst [vmem:[%s3308_s8 + $0x10] sm:$0xff] %v1861_v35  ;;  %v1862_v19 = vadd.f32 %v1856_v47, %v1842_v54  ;;  %v1843_v57 = vadd.f32 %v1827_v17, %v1796_v15  ;;  %v1798_v58 = vadd.f32 %v1797_v18, %v1744_v55  ;;  %v1746_v12 = vpop.f32.mrf.mxu0 }
 0x2a8   :  { %v1799_v59 = vpop.f32.mrf.mxu1 }
 0x2a9   :  { %1870 = vst [vmem:[%s3308_s8 + $0x18] sm:$0xff] %v1862_v19  ;;  %v1863_v20 = vadd.f32 %v1852_v38, %v1843_v57  ;;  %v1844_v60 = vadd.f32 %v1828_v56, %v1798_v58  ;;  %v1800_v61 = vadd.f32 %v1799_v59, %v1746_v12  ;;  %v1748_v14 = vpop.f32.mrf.mxu0 }
 0x2aa   :  { %v1801_v1 = vpop.f32.mrf.mxu1 }
 0x2ab   :  { %1871 = vst [vmem:[%s3308_s8 + $0x20] sm:$0xff] %v1863_v20  ;;  %v1864_v63 = vadd.f32 %v1856_v47, %v1844_v60  ;;  %v1845_v0 = vadd.f32 %v1829_v16, %v1800_v61  ;;  %v1802_v3 = vadd.f32 %v1801_v1, %v1748_v14 }
 0x2ad   :  { %1872 = vst [vmem:[%s3308_s8 + $0x28] sm:$0xff] %v1864_v63  ;;  %v1865_v4 = vadd.f32 %v1852_v38, %v1845_v0  ;;  %v1846_v8 = vadd.f32 %v1830_v62, %v1802_v3 }
 0x2af   :  { %1873 = vst [vmem:[%s3308_s8 + $0x30] sm:$0xff] %v1865_v4  ;;  %v1866_v2 = vadd.f32 %v1856_v47, %v1846_v8 }
 0x2b1   :  { %1874 = vst [vmem:[%s3308_s8 + $0x38] sm:$0xff] %v1866_v2 }

</bundles_post_ra>
